<compile_context>
chip_gen: v7x
topology: tpu7x:2x2x1
jax: 0.10.0
libtpu: 0.0.40
codegen_flags: <defaults>
</compile_context>

<pallas_src>
import functools
import math

import jax
import jax.numpy as jnp
import numpy as np
from jax.experimental import pallas as pl
from jax.experimental.pallas import tpu as pltpu


# ----------------------------------------------------------------------------
# VMEM budgeting / tile-size helpers (generation aware)
# ----------------------------------------------------------------------------
def _usable_vmem_bytes():
    """~75% of physical VMEM (~96 MiB on v5e/v6e, ~48 MiB on v7x)."""
    try:
        cap = int(pltpu.get_tpu_info().vmem_capacity_bytes)
    except Exception:                       # not on TPU / older API: assume 128 MiB
        cap = 128 * 2 ** 20
    return int(cap * 3 // 4)


def _vmem_limit(stream_bytes, resident_bytes, usable):
    """Double-buffered streamed blocks + resident scratch + headroom."""
    need = 2 * stream_bytes + resident_bytes + 2 * 2 ** 20
    return int(min(max(need, 8 * 2 ** 20), usable))


def _largest_divisor(n, cap, mult=1):
    """Largest d | n with d <= cap and d % mult == 0 (falls back to n)."""
    best = None
    for d in range(mult, min(n, max(cap, mult)) + 1, mult):
        if n % d == 0:
            best = d
    return best if best is not None else n
    # TODO(synk): ragged sizes fall back to the full extent; add a masked tail.


# ----------------------------------------------------------------------------
# Pallas kernel 1: offset/mask conv, reads the padded image directly
# ----------------------------------------------------------------------------
def _offset_conv_kernel(x_ref, w_ref, b_ref, o_ref, col_ref, *,
                        k, stride, dil, tr, wout, cin):
    # x_ref:   (1, Hp, Wp, Cin) bf16, resident across row tiles
    # w_ref:   (KK*Cin, Com_pad) bf16      b_ref: (1, Com_pad) f32
    # o_ref:   (1, tr, wout, Com_pad) f32
    # col_ref: (tr*wout, KK*Cin) bf16 scratch (im2col slab, VMEM only)
    r = pl.program_id(1)
    row0 = r * (tr * stride)
    if (tr * stride) % 8 == 0:
        row0 = pl.multiple_of(row0, 8)      # aligned sublane window loads
    for ki in range(k):
        for kj in range(k):
            t = ki * k + kj
            if stride == 1:
                slab = x_ref[0, pl.ds(row0 + ki * dil, tr),
                             kj * dil:kj * dil + wout, :]
            else:
                # TODO(synk): stride > 1 strided-window path untested on HW.
                slab = x_ref[0, pl.ds(row0 + ki * dil, tr, stride),
                             pl.ds(kj * dil, wout, stride), :]
            col_ref[:, t * cin:(t + 1) * cin] = slab.reshape(tr * wout, cin)
    # single long-K (KK*Cin) MXU matmul with f32 accumulation
    y = jnp.dot(col_ref[...], w_ref[...],
                preferred_element_type=jnp.float32) + b_ref[...]
    o_ref[0] = y.reshape(tr, wout, -1)


def offset_conv_pallas(xp_cl, w_om, b_om, k, stride, dil, hout, wout,
                       row_tile=None):
    n, hp, wp, cin = xp_cl.shape
    kk = k * k
    kc = kk * cin
    com_pad = w_om.shape[-1]

    usable = _usable_vmem_bytes()
    fixed = 2 * (hp * wp * cin * 2 + kc * com_pad * 2 + com_pad * 4)
    per_row = 2 * (wout * com_pad * 4) + wout * kc * 2       # out blocks + col slab
    if row_tile is not None and hout % row_tile == 0:
        tr = row_tile
    else:
        cap_rows = max(1, min(1024 // max(wout, 1),
                              (usable // 2 - fixed) // max(per_row, 1)))
        tr = _largest_divisor(hout, cap_rows, 1)

    kern = functools.partial(_offset_conv_kernel, k=k, stride=stride, dil=dil,
                             tr=tr, wout=wout, cin=cin)
    stream = (hp * wp * cin * 2 + kc * com_pad * 2 + com_pad * 4
              + tr * wout * com_pad * 4)
    scratch = tr * wout * kc * 2
    vmem = _vmem_limit(stream, scratch, usable)

    return pl.pallas_call(
        kern,
        out_shape=jax.ShapeDtypeStruct((n, hout, wout, com_pad), jnp.float32),
        grid=(n, hout // tr),
        in_specs=[
            # TODO(synk): on v7x swap this for memory_space=pl.ANY + manual
            # halo'd row-slab double buffering (make_async_copy).
            pl.BlockSpec((1, hp, wp, cin), lambda i, r: (i, 0, 0, 0)),
            pl.BlockSpec((kc, com_pad), lambda i, r: (0, 0)),
            pl.BlockSpec((1, com_pad), lambda i, r: (0, 0)),
        ],
        out_specs=pl.BlockSpec((1, tr, wout, com_pad), lambda i, r: (i, r, 0, 0)),
        scratch_shapes=[pltpu.VMEM((tr * wout, kc), jnp.bfloat16)],
        compiler_params=pltpu.CompilerParams(
            dimension_semantics=("parallel", "parallel"),
            vmem_limit_bytes=vmem),
    )(xp_cl, w_om, b_om)


def offset_conv_reference(xp_cl, w_om, b_om, k, stride, dil, hout, wout):
    # pure-JAX reference with the same bf16 input/weight quantization
    x32 = xp_cl.astype(jnp.float32)
    cin = xp_cl.shape[-1]
    kk = k * k
    w32 = w_om.astype(jnp.float32).reshape(kk, cin, -1)
    acc = 0.0
    for ki in range(k):
        for kj in range(k):
            slab = x32[:, ki * dil: ki * dil + (hout - 1) * stride + 1: stride,
                          kj * dil: kj * dil + (wout - 1) * stride + 1: stride, :]
            acc = acc + jnp.einsum("nhwc,cm->nhwm", slab, w32[ki * k + kj],
                                   precision=jax.lax.Precision.HIGHEST)
    return acc + b_om[0]


# ----------------------------------------------------------------------------
# Pallas kernel 2: modulated deformable conv + BN(eval) + SiLU, fused
# ----------------------------------------------------------------------------
def _deform_kernel(vt_ref, vb_ref, wts_ref, w_ref, shift_ref, o_ref, val_ref,
                   *, kk, cin):
    # vt/vb:  (1, TP, KK*Cin) bf16 — horizontally (lx) pre-lerped top/bottom rows
    # wts:    (1, TP, 2*KK) bf16   — [(1-ly)*mask | ly*mask] per tap (packed)
    # w_ref:  (KK*Cin, Cout) bf16 (BN scale folded)   shift_ref: (1, Cout) f32
    # val:    (TP, KK*Cin) bf16 scratch
    for t in range(kk):
        c0, c1 = t * cin, (t + 1) * cin
        wt = wts_ref[0, :, t:t + 1]                    # (TP, 1) bf16
        wb = wts_ref[0, :, kk + t:kk + t + 1]
        # bf16 vertical (ly) combine, mask already folded into wt/wb
        val_ref[:, c0:c1] = wt * vt_ref[0, :, c0:c1] + wb * vb_ref[0, :, c0:c1]
    # single long-K (KK*Cin) MXU matmul with f32 accumulation
    y = jnp.dot(val_ref[...], w_ref[...],
                preferred_element_type=jnp.float32) + shift_ref[...]
    o_ref[0] = y * jax.nn.sigmoid(y)                   # SiLU (Conv.default_act)


def deform_conv_pallas(vtop, vbot, wts, w_dcn, shift, cin, p_tile=None):
    n, p, kc = vtop.shape
    kk = kc // cin
    cout = w_dcn.shape[-1]

    usable = _usable_vmem_bytes()
    fixed = 2 * (kc * cout * 2 + cout * 4)
    per_p = 2 * (2 * kc * 2 + 2 * kk * 2 + cout * 4) + kc * 2
    if p_tile is not None and p % p_tile == 0:
        tp = p_tile
    else:
        cap = max(8, min(512, (usable // 2 - fixed) // max(per_p, 1)))
        tp = _largest_divisor(p, cap, 8)

    kern = functools.partial(_deform_kernel, kk=kk, cin=cin)
    per_tile = lambda i, j: (i, j, 0)
    stream = (2 * tp * kc * 2 + tp * 2 * kk * 2
              + kc * cout * 2 + cout * 4 + tp * cout * 4)
    scratch = tp * kc * 2
    vmem = _vmem_limit(stream, scratch, usable)

    return pl.pallas_call(
        kern,
        out_shape=jax.ShapeDtypeStruct((n, p, cout), jnp.float32),
        grid=(n, p // tp),
        in_specs=[pl.BlockSpec((1, tp, kc), per_tile),
                  pl.BlockSpec((1, tp, kc), per_tile),
                  pl.BlockSpec((1, tp, 2 * kk), per_tile),
                  pl.BlockSpec((kc, cout), lambda i, j: (0, 0)),
                  pl.BlockSpec((1, cout), lambda i, j: (0, 0))],
        out_specs=pl.BlockSpec((1, tp, cout), per_tile),
        scratch_shapes=[pltpu.VMEM((tp, kc), jnp.bfloat16)],
        compiler_params=pltpu.CompilerParams(
            dimension_semantics=("parallel", "parallel"),
            vmem_limit_bytes=vmem),
    )(vtop, vbot, wts, w_dcn, shift)


def deform_reference(vtop, vbot, wts, w_dcn, shift, cin):
    n, p, kc = vtop.shape
    kk = kc // cin
    f32 = jnp.float32
    vt = vtop.astype(f32).reshape(n, p, kk, cin)
    vb = vbot.astype(f32).reshape(n, p, kk, cin)
    wt = wts[..., :kk].astype(f32)[..., None]
    wb = wts[..., kk:].astype(f32)[..., None]
    # emulate the kernel's bf16 combine (bf16 mul, bf16 add)
    val = ((wt * vt).astype(jnp.bfloat16).astype(f32)
           + (wb * vb).astype(jnp.bfloat16).astype(f32)).astype(jnp.bfloat16)
    val = val.astype(f32).reshape(n, p, kc)
    y = jnp.einsum("npd,dc->npc", val, w_dcn.astype(f32),
                   precision=jax.lax.Precision.HIGHEST) + shift
    return y * jax.nn.sigmoid(y)


# ----------------------------------------------------------------------------
# JAX glue: offset unpacking + bilinear corner gather (data-dependent).
# The gather, the horizontal (lx) lerp and the sigmoid(mask) fold fuse into a
# single XLA pass, so only TWO bf16 value tensors hit HBM.
# ----------------------------------------------------------------------------
def build_bilinear_inputs(x, offset, mlog, k, stride, pad, dil, hout, wout):
    # x: [N,Cin,H,W]; offset: [N,P,KK,2] (dy,dx per tap); mlog: [N,P,KK]
    n, cin, h, w = x.shape
    kk = k * k
    p = hout * wout

    oy = jnp.arange(hout) * stride - pad
    ox = jnp.arange(wout) * stride - pad
    ki = jnp.arange(k) * dil
    kj = jnp.arange(k) * dil
    base_y = oy[:, None, None, None] + ki[None, None, :, None]
    base_x = ox[None, :, None, None] + kj[None, None, None, :]
    base_y = jnp.broadcast_to(base_y, (hout, wout, k, k)).reshape(p, kk)
    base_x = jnp.broadcast_to(base_x, (hout, wout, k, k)).reshape(p, kk)

    py = base_y[None].astype(jnp.float32) + offset[..., 0]        # [N,P,KK]
    px = base_x[None].astype(jnp.float32) + offset[..., 1]

    y0f = jnp.floor(py)
    x0f = jnp.floor(px)
    ly = py - y0f
    lx = px - x0f
    y0 = y0f.astype(jnp.int32)
    x0 = x0f.astype(jnp.int32)
    y1 = y0 + 1
    x1 = x0 + 1

    xcl = x.transpose(0, 2, 3, 1).reshape(n, h * w, cin)           # channels-last

    def gather(yi, xi):
        # torchvision deform_conv2d semantics: out-of-range corners contribute 0
        valid = (yi >= 0) & (yi <= h - 1) & (xi >= 0) & (xi <= w - 1)
        yc = jnp.clip(yi, 0, h - 1)
        xc = jnp.clip(xi, 0, w - 1)
        flat = (yc * w + xc).reshape(n, p * kk)
        g = jnp.take_along_axis(xcl, flat[:, :, None], axis=1)
        return g.reshape(n, p, kk, cin) * valid[..., None].astype(x.dtype)

    lxe = lx[..., None]
    vtop = (1.0 - lxe) * gather(y0, x0) + lxe * gather(y0, x1)
    vbot = (1.0 - lxe) * gather(y1, x0) + lxe * gather(y1, x1)
    vtop = vtop.reshape(n, p, kk * cin).astype(jnp.bfloat16)
    vbot = vbot.reshape(n, p, kk * cin).astype(jnp.bfloat16)

    m = jax.nn.sigmoid(mlog)
    wts = jnp.concatenate([(1.0 - ly) * m, ly * m], axis=-1).astype(jnp.bfloat16)
    return vtop, vbot, wts


# ----------------------------------------------------------------------------
# Full forward (Pallas path and pure-JAX reference path)
# ----------------------------------------------------------------------------
def dydcnv2_forward(x, params, cfg, use_pallas=True):
    k, stride, pad, dil = cfg["k"], cfg["stride"], cfg["pad"], cfg["dil"]
    kk = k * k
    n, cin, h, w = x.shape
    hout = (h + 2 * pad - dil * (k - 1) - 1) // stride + 1
    wout = (w + 2 * pad - dil * (k - 1) - 1) // stride + 1
    p = hout * wout

    # channels-last padded input, bf16 (shared by kernel and reference)
    xp = jnp.pad(x, ((0, 0), (0, 0), (pad, pad), (pad, pad)))
    xp_cl = jnp.transpose(xp, (0, 2, 3, 1)).astype(jnp.bfloat16)

    if use_pallas:
        om_full = offset_conv_pallas(xp_cl, params["w_om"], params["b_om"],
                                     k, stride, dil, hout, wout,
                                     row_tile=cfg.get("row_tile"))
    else:
        om_full = offset_conv_reference(xp_cl, params["w_om"], params["b_om"],
                                        k, stride, dil, hout, wout)

    om = om_full[..., :3 * kk].reshape(n, p, 3 * kk)
    o1 = om[..., :kk]
    o2 = om[..., kk:2 * kk]
    mlog = om[..., 2 * kk:3 * kk]
    # mirrors the PyTorch cat(o1,o2) + torchvision interleaved-(dy,dx) layout
    offset = jnp.concatenate([o1, o2], axis=-1).reshape(n, p, kk, 2)

    vtop, vbot, wts = build_bilinear_inputs(x, offset, mlog, k, stride, pad,
                                            dil, hout, wout)

    if use_pallas:
        out = deform_conv_pallas(vtop, vbot, wts, params["w_dcn"],
                                 params["shift"], cin=cin,
                                 p_tile=cfg.get("p_tile"))
    else:
        out = deform_reference(vtop, vbot, wts, params["w_dcn"],
                               params["shift"], cin)

    return out.reshape(n, hout, wout, -1).transpose(0, 3, 1, 2)   # NCHW


# ----------------------------------------------------------------------------
# Deterministic parameter init (shapes from DyDCNv2.__init__, eval-mode BN)
# ----------------------------------------------------------------------------
def init_params(key, cin, cout, k, dg=1):
    kk = k * k
    com = dg * 3 * kk
    com_pad = ((com + 127) // 128) * 128          # lane-dense offset-conv output
    k1, k2, k3, k4, k5, k6 = jax.random.split(key, 6)

    std = 1.0 / math.sqrt(cin * kk)
    w_dcn_4d = jax.random.uniform(k1, (cout, cin, k, k), jnp.float32, -std, std)
    b_dcn = jnp.zeros((cout,), jnp.float32)       # reset_parameters: zero

    # NOTE: reset_parameters() zeros conv_offset_mask; use small deterministic
    # random values instead so the deformable sampling path is exercised.
    w_om_4d = 0.1 * jax.random.normal(k2, (com, cin, k, k), jnp.float32)
    b_om = 0.05 * jax.random.normal(k3, (com,), jnp.float32)

    gamma = 1.0 + 0.1 * jax.random.normal(k4, (cout,), jnp.float32)
    beta = 0.1 * jax.random.normal(k5, (cout,), jnp.float32)
    running_mean = 0.1 * jax.random.normal(k6, (cout,), jnp.float32)
    running_var = jnp.ones((cout,), jnp.float32)
    eps = 1e-5
    bn_scale = gamma / jnp.sqrt(running_var + eps)
    bn_shift = beta - running_mean * bn_scale

    # offset conv weight: (KK*Cin, Com) tap-major rows, zero-padded to 128 lanes
    w_om_t = jnp.transpose(w_om_4d, (2, 3, 1, 0)).reshape(kk * cin, com)
    w_om_pad = jnp.zeros((kk * cin, com_pad), jnp.float32)
    w_om_pad = w_om_pad.at[:, :com].set(w_om_t).astype(jnp.bfloat16)
    b_om_pad = jnp.zeros((1, com_pad), jnp.float32).at[0, :com].set(b_om)

    # dcn weight: (KK*Cin, Cout) with BN scale folded; bias + BN shift folded
    w_dcn_t = jnp.transpose(w_dcn_4d, (2, 3, 1, 0)).reshape(kk * cin, cout)
    w_dcn_fold = (w_dcn_t * bn_scale[None, :]).astype(jnp.bfloat16)
    shift = (bn_shift + b_dcn * bn_scale).reshape(1, cout)

    return {"w_om": w_om_pad, "b_om": b_om_pad,
            "w_dcn": w_dcn_fold, "shift": shift}


if __name__ == "__main__":
    key = jax.random.PRNGKey(0)
    N, Cin, H, W = 2, 8, 16, 16
    Cout, k = 8, 3
    # small tiles so the (batch, spatial-tile) grids are actually exercised
    cfg = dict(k=k, stride=1, pad=1, dil=1, p_tile=128, row_tile=8)

    kx, kp = jax.random.split(key)
    x = jax.random.normal(kx, (N, Cin, H, W), jnp.float32)
    params = init_params(kp, Cin, Cout, k)

    fwd = jax.jit(functools.partial(dydcnv2_forward, cfg=cfg, use_pallas=True))
    ref_fwd = jax.jit(functools.partial(dydcnv2_forward, cfg=cfg,
                                        use_pallas=False))

    out = jax.block_until_ready(fwd(x, params))
    assert out.shape == (N, Cout, H, W), out.shape

    ref = jax.block_until_ready(ref_fwd(x, params))
    np.testing.assert_allclose(np.asarray(out), np.asarray(ref),
                               rtol=2e-2, atol=2e-2)

    print("KERNEL_OK")
</pallas_src>

<mosaic_0001>
module attributes {stable_mosaic.version = 11 : i64} {
  func.func @_offset_conv_kernel(%arg0: i32, %arg1: i32, %arg2: memref<1x18x18x8xbf16, #tpu.memory_space<vmem>>, %arg3: memref<72x128xbf16, #tpu.memory_space<vmem>>, %arg4: memref<1x128xf32, #tpu.memory_space<vmem>>, %arg5: memref<1x8x16x128xf32, #tpu.memory_space<vmem>>, %arg6: memref<128x72xbf16, #tpu.memory_space<vmem>>) attributes {dimension_semantics = [#tpu.dimension_semantics<parallel>, #tpu.dimension_semantics<parallel>], iteration_bounds = array<i64: 2, 2>, scalar_prefetch = 0 : i64, scratch_operands = 1 : i64, tpu.core_type = #tpu.core_type<tc>, window_params = [{transform_indices = @transform_0, window_bounds = array<i64: 1, 18, 18, 8>}, {pipeline_mode = #tpu.pipeline_mode<synchronous>, transform_indices = @transform_1, window_bounds = array<i64: 72, 128>}, {pipeline_mode = #tpu.pipeline_mode<synchronous>, transform_indices = @transform_2, window_bounds = array<i64: 1, 128>}, {transform_indices = @transform_3, window_bounds = array<i64: 1, 8, 16, 128>}]} {
    %c8_i32 = arith.constant 8 : i32
    %0 = arith.muli %arg1, %c8_i32 : i32
    %1 = tpu.assume_multiple %0, 8 : i32
    %c0_i32 = arith.constant 0 : i32
    %2 = arith.addi %1, %c0_i32 : i32
    %c0 = arith.constant 0 : index
    %3 = arith.index_cast %2 : i32 to index
    %c0_0 = arith.constant 0 : index
    %c0_1 = arith.constant 0 : index
    %4 = vector.load %arg2[%c0, %3, %c0_0, %c0_1] : memref<1x18x18x8xbf16, #tpu.memory_space<vmem>>, vector<1x8x16x8xbf16>
    %5 = vector.shape_cast %4 : vector<1x8x16x8xbf16> to vector<8x16x8xbf16>
    %6 = vector.shape_cast %5 : vector<8x16x8xbf16> to vector<128x8xbf16>
    %c0_2 = arith.constant 0 : index
    %c0_3 = arith.constant 0 : index
    %7 = vector.load %arg6[%c0_2, %c0_3] : memref<128x72xbf16, #tpu.memory_space<vmem>>, vector<128x8xbf16>
    tpu.vector_store %arg6[%c0_2, %c0_3], %6 {strides = array<i32>} : memref<128x72xbf16, #tpu.memory_space<vmem>>, vector<128x8xbf16>,
    %c0_i32_4 = arith.constant 0 : i32
    %8 = arith.addi %1, %c0_i32_4 : i32
    %c0_5 = arith.constant 0 : index
    %9 = arith.index_cast %8 : i32 to index
    %c1 = arith.constant 1 : index
    %c0_6 = arith.constant 0 : index
    %10 = vector.load %arg2[%c0_5, %9, %c1, %c0_6] : memref<1x18x18x8xbf16, #tpu.memory_space<vmem>>, vector<1x8x16x8xbf16>
    %11 = vector.shape_cast %10 : vector<1x8x16x8xbf16> to vector<8x16x8xbf16>
    %12 = vector.shape_cast %11 : vector<8x16x8xbf16> to vector<128x8xbf16>
    %c0_7 = arith.constant 0 : index
    %c8 = arith.constant 8 : index
    %13 = vector.load %arg6[%c0_7, %c8] : memref<128x72xbf16, #tpu.memory_space<vmem>>, vector<128x8xbf16>
    tpu.vector_store %arg6[%c0_7, %c8], %12 {strides = array<i32>} : memref<128x72xbf16, #tpu.memory_space<vmem>>, vector<128x8xbf16>,
    %c0_i32_8 = arith.constant 0 : i32
    %14 = arith.addi %1, %c0_i32_8 : i32
    %c0_9 = arith.constant 0 : index
    %15 = arith.index_cast %14 : i32 to index
    %c2 = arith.constant 2 : index
    %c0_10 = arith.constant 0 : index
    %16 = vector.load %arg2[%c0_9, %15, %c2, %c0_10] : memref<1x18x18x8xbf16, #tpu.memory_space<vmem>>, vector<1x8x16x8xbf16>
    %17 = vector.shape_cast %16 : vector<1x8x16x8xbf16> to vector<8x16x8xbf16>
    %18 = vector.shape_cast %17 : vector<8x16x8xbf16> to vector<128x8xbf16>
    %c0_11 = arith.constant 0 : index
    %c16 = arith.constant 16 : index
    %19 = vector.load %arg6[%c0_11, %c16] : memref<128x72xbf16, #tpu.memory_space<vmem>>, vector<128x8xbf16>
    tpu.vector_store %arg6[%c0_11, %c16], %18 {strides = array<i32>} : memref<128x72xbf16, #tpu.memory_space<vmem>>, vector<128x8xbf16>,
    %c1_i32 = arith.constant 1 : i32
    %20 = arith.addi %1, %c1_i32 : i32
    %c0_12 = arith.constant 0 : index
    %21 = arith.index_cast %20 : i32 to index
    %c0_13 = arith.constant 0 : index
    %c0_14 = arith.constant 0 : index
    %22 = vector.load %arg2[%c0_12, %21, %c0_13, %c0_14] : memref<1x18x18x8xbf16, #tpu.memory_space<vmem>>, vector<1x8x16x8xbf16>
    %23 = vector.shape_cast %22 : vector<1x8x16x8xbf16> to vector<8x16x8xbf16>
    %24 = vector.shape_cast %23 : vector<8x16x8xbf16> to vector<128x8xbf16>
    %c0_15 = arith.constant 0 : index
    %c24 = arith.constant 24 : index
    %25 = vector.load %arg6[%c0_15, %c24] : memref<128x72xbf16, #tpu.memory_space<vmem>>, vector<128x8xbf16>
    tpu.vector_store %arg6[%c0_15, %c24], %24 {strides = array<i32>} : memref<128x72xbf16, #tpu.memory_space<vmem>>, vector<128x8xbf16>,
    %c1_i32_16 = arith.constant 1 : i32
    %26 = arith.addi %1, %c1_i32_16 : i32
    %c0_17 = arith.constant 0 : index
    %27 = arith.index_cast %26 : i32 to index
    %c1_18 = arith.constant 1 : index
    %c0_19 = arith.constant 0 : index
    %28 = vector.load %arg2[%c0_17, %27, %c1_18, %c0_19] : memref<1x18x18x8xbf16, #tpu.memory_space<vmem>>, vector<1x8x16x8xbf16>
    %29 = vector.shape_cast %28 : vector<1x8x16x8xbf16> to vector<8x16x8xbf16>
    %30 = vector.shape_cast %29 : vector<8x16x8xbf16> to vector<128x8xbf16>
    %c0_20 = arith.constant 0 : index
    %c32 = arith.constant 32 : index
    %31 = vector.load %arg6[%c0_20, %c32] : memref<128x72xbf16, #tpu.memory_space<vmem>>, vector<128x8xbf16>
    tpu.vector_store %arg6[%c0_20, %c32], %30 {strides = array<i32>} : memref<128x72xbf16, #tpu.memory_space<vmem>>, vector<128x8xbf16>,
    %c1_i32_21 = arith.constant 1 : i32
    %32 = arith.addi %1, %c1_i32_21 : i32
    %c0_22 = arith.constant 0 : index
    %33 = arith.index_cast %32 : i32 to index
    %c2_23 = arith.constant 2 : index
    %c0_24 = arith.constant 0 : index
    %34 = vector.load %arg2[%c0_22, %33, %c2_23, %c0_24] : memref<1x18x18x8xbf16, #tpu.memory_space<vmem>>, vector<1x8x16x8xbf16>
    %35 = vector.shape_cast %34 : vector<1x8x16x8xbf16> to vector<8x16x8xbf16>
    %36 = vector.shape_cast %35 : vector<8x16x8xbf16> to vector<128x8xbf16>
    %c0_25 = arith.constant 0 : index
    %c40 = arith.constant 40 : index
    %37 = vector.load %arg6[%c0_25, %c40] : memref<128x72xbf16, #tpu.memory_space<vmem>>, vector<128x8xbf16>
    tpu.vector_store %arg6[%c0_25, %c40], %36 {strides = array<i32>} : memref<128x72xbf16, #tpu.memory_space<vmem>>, vector<128x8xbf16>,
    %c2_i32 = arith.constant 2 : i32
    %38 = arith.addi %1, %c2_i32 : i32
    %c0_26 = arith.constant 0 : index
    %39 = arith.index_cast %38 : i32 to index
    %c0_27 = arith.constant 0 : index
    %c0_28 = arith.constant 0 : index
    %40 = vector.load %arg2[%c0_26, %39, %c0_27, %c0_28] : memref<1x18x18x8xbf16, #tpu.memory_space<vmem>>, vector<1x8x16x8xbf16>
    %41 = vector.shape_cast %40 : vector<1x8x16x8xbf16> to vector<8x16x8xbf16>
    %42 = vector.shape_cast %41 : vector<8x16x8xbf16> to vector<128x8xbf16>
    %c0_29 = arith.constant 0 : index
    %c48 = arith.constant 48 : index
    %43 = vector.load %arg6[%c0_29, %c48] : memref<128x72xbf16, #tpu.memory_space<vmem>>, vector<128x8xbf16>
    tpu.vector_store %arg6[%c0_29, %c48], %42 {strides = array<i32>} : memref<128x72xbf16, #tpu.memory_space<vmem>>, vector<128x8xbf16>,
    %c2_i32_30 = arith.constant 2 : i32
    %44 = arith.addi %1, %c2_i32_30 : i32
    %c0_31 = arith.constant 0 : index
    %45 = arith.index_cast %44 : i32 to index
    %c1_32 = arith.constant 1 : index
    %c0_33 = arith.constant 0 : index
    %46 = vector.load %arg2[%c0_31, %45, %c1_32, %c0_33] : memref<1x18x18x8xbf16, #tpu.memory_space<vmem>>, vector<1x8x16x8xbf16>
    %47 = vector.shape_cast %46 : vector<1x8x16x8xbf16> to vector<8x16x8xbf16>
    %48 = vector.shape_cast %47 : vector<8x16x8xbf16> to vector<128x8xbf16>
    %c0_34 = arith.constant 0 : index
    %c56 = arith.constant 56 : index
    %49 = vector.load %arg6[%c0_34, %c56] : memref<128x72xbf16, #tpu.memory_space<vmem>>, vector<128x8xbf16>
    tpu.vector_store %arg6[%c0_34, %c56], %48 {strides = array<i32>} : memref<128x72xbf16, #tpu.memory_space<vmem>>, vector<128x8xbf16>,
    %c2_i32_35 = arith.constant 2 : i32
    %50 = arith.addi %1, %c2_i32_35 : i32
    %c0_36 = arith.constant 0 : index
    %51 = arith.index_cast %50 : i32 to index
    %c2_37 = arith.constant 2 : index
    %c0_38 = arith.constant 0 : index
    %52 = vector.load %arg2[%c0_36, %51, %c2_37, %c0_38] : memref<1x18x18x8xbf16, #tpu.memory_space<vmem>>, vector<1x8x16x8xbf16>
    %53 = vector.shape_cast %52 : vector<1x8x16x8xbf16> to vector<8x16x8xbf16>
    %54 = vector.shape_cast %53 : vector<8x16x8xbf16> to vector<128x8xbf16>
    %c0_39 = arith.constant 0 : index
    %c64 = arith.constant 64 : index
    %55 = vector.load %arg6[%c0_39, %c64] : memref<128x72xbf16, #tpu.memory_space<vmem>>, vector<128x8xbf16>
    tpu.vector_store %arg6[%c0_39, %c64], %54 {strides = array<i32>} : memref<128x72xbf16, #tpu.memory_space<vmem>>, vector<128x8xbf16>,
    %c0_40 = arith.constant 0 : index
    %c0_41 = arith.constant 0 : index
    %56 = vector.load %arg6[%c0_40, %c0_41] : memref<128x72xbf16, #tpu.memory_space<vmem>>, vector<128x72xbf16>
    %c0_42 = arith.constant 0 : index
    %c0_43 = arith.constant 0 : index
    %57 = vector.load %arg3[%c0_42, %c0_43] : memref<72x128xbf16, #tpu.memory_space<vmem>>, vector<72x128xbf16>
    %cst = arith.constant dense<0.000000e+00> : vector<128x128xf32>
    %58 = tpu.matmul %56, %57, %cst {dimension_numbers = #tpu.dot_dimension_numbers<[1], [0], [0], [1], [0, 0, 1, 1], [], []>} : vector<128x72xbf16>, vector<72x128xbf16>, vector<128x128xf32> -> vector<128x128xf32>
    %c0_44 = arith.constant 0 : index
    %c0_45 = arith.constant 0 : index
    %59 = vector.load %arg4[%c0_44, %c0_45] : memref<1x128xf32, #tpu.memory_space<vmem>>, vector<1x128xf32>
    %60 = vector.broadcast %59 : vector<1x128xf32> to vector<128x128xf32>
    %61 = arith.addf %58, %60 : vector<128x128xf32>
    %62 = vector.shape_cast %61 : vector<128x128xf32> to vector<8x16x128xf32>
    %c0_46 = arith.constant 0 : index
    %c0_47 = arith.constant 0 : index
    %c0_48 = arith.constant 0 : index
    %c0_49 = arith.constant 0 : index
    %63 = vector.load %arg5[%c0_46, %c0_47, %c0_48, %c0_49] : memref<1x8x16x128xf32, #tpu.memory_space<vmem>>, vector<1x8x16x128xf32>
    %64 = vector.shape_cast %63 : vector<1x8x16x128xf32> to vector<8x16x128xf32>
    %65 = vector.shape_cast %62 : vector<8x16x128xf32> to vector<1x8x16x128xf32>
    tpu.vector_store %arg5[%c0_46, %c0_47, %c0_48, %c0_49], %65 {strides = array<i32>} : memref<1x8x16x128xf32, #tpu.memory_space<vmem>>, vector<1x8x16x128xf32>,
    return
  }
  func.func @transform_0(%arg0: i32, %arg1: i32) -> (i32, i32, i32, i32) {
    %c0_i32 = arith.constant 0 : i32
    %c0_i32_0 = arith.constant 0 : i32
    %c0_i32_1 = arith.constant 0 : i32
    %c0_i32_2 = arith.constant 0 : i32
    return %arg0, %c0_i32, %c0_i32_0, %c0_i32_1 : i32, i32, i32, i32
  }
  func.func @transform_1(%arg0: i32, %arg1: i32) -> (i32, i32) {
    %c0_i32 = arith.constant 0 : i32
    %c0_i32_0 = arith.constant 0 : i32
    %c0_i32_1 = arith.constant 0 : i32
    return %c0_i32, %c0_i32_0 : i32, i32
  }
  func.func @transform_2(%arg0: i32, %arg1: i32) -> (i32, i32) {
    %c0_i32 = arith.constant 0 : i32
    %c0_i32_0 = arith.constant 0 : i32
    %c0_i32_1 = arith.constant 0 : i32
    return %c0_i32, %c0_i32_0 : i32, i32
  }
  func.func @transform_3(%arg0: i32, %arg1: i32) -> (i32, i32, i32, i32) {
    %c0_i32 = arith.constant 0 : i32
    %c0_i32_0 = arith.constant 0 : i32
    %c0_i32_1 = arith.constant 0 : i32
    return %arg0, %arg1, %c0_i32, %c0_i32_0 : i32, i32, i32, i32
  }
}

module attributes {stable_mosaic.version = 11 : i64} {
  func.func @_deform_kernel(%arg0: i32, %arg1: i32, %arg2: memref<1x128x72xbf16, #tpu.memory_space<vmem>>, %arg3: memref<1x128x72xbf16, #tpu.memory_space<vmem>>, %arg4: memref<1x128x18xbf16, #tpu.memory_space<vmem>>, %arg5: memref<72x8xbf16, #tpu.memory_space<vmem>>, %arg6: memref<1x8xf32, #tpu.memory_space<vmem>>, %arg7: memref<1x128x8xf32, #tpu.memory_space<vmem>>, %arg8: memref<128x72xbf16, #tpu.memory_space<vmem>>) attributes {dimension_semantics = [#tpu.dimension_semantics<parallel>, #tpu.dimension_semantics<parallel>], iteration_bounds = array<i64: 2, 2>, scalar_prefetch = 0 : i64, scratch_operands = 1 : i64, tpu.core_type = #tpu.core_type<tc>, window_params = [{transform_indices = @transform_0, window_bounds = array<i64: 1, 128, 72>}, {transform_indices = @transform_1, window_bounds = array<i64: 1, 128, 72>}, {transform_indices = @transform_2, window_bounds = array<i64: 1, 128, 18>}, {pipeline_mode = #tpu.pipeline_mode<synchronous>, transform_indices = @transform_3, window_bounds = array<i64: 72, 8>}, {pipeline_mode = #tpu.pipeline_mode<synchronous>, transform_indices = @transform_4, window_bounds = array<i64: 1, 8>}, {transform_indices = @transform_5, window_bounds = array<i64: 1, 128, 8>}]} {
    %c0 = arith.constant 0 : index
    %c0_0 = arith.constant 0 : index
    %c0_1 = arith.constant 0 : index
    %0 = vector.load %arg4[%c0, %c0_0, %c0_1] : memref<1x128x18xbf16, #tpu.memory_space<vmem>>, vector<1x128x1xbf16>
    %1 = vector.shape_cast %0 : vector<1x128x1xbf16> to vector<128x1xbf16>
    %c0_2 = arith.constant 0 : index
    %c0_3 = arith.constant 0 : index
    %c9 = arith.constant 9 : index
    %2 = vector.load %arg4[%c0_2, %c0_3, %c9] : memref<1x128x18xbf16, #tpu.memory_space<vmem>>, vector<1x128x1xbf16>
    %3 = vector.shape_cast %2 : vector<1x128x1xbf16> to vector<128x1xbf16>
    %c0_4 = arith.constant 0 : index
    %c0_5 = arith.constant 0 : index
    %c0_6 = arith.constant 0 : index
    %4 = vector.load %arg2[%c0_4, %c0_5, %c0_6] : memref<1x128x72xbf16, #tpu.memory_space<vmem>>, vector<1x128x8xbf16>
    %5 = vector.shape_cast %4 : vector<1x128x8xbf16> to vector<128x8xbf16>
    %6 = vector.broadcast %1 : vector<128x1xbf16> to vector<128x8xbf16>
    %7 = arith.mulf %6, %5 : vector<128x8xbf16>
    %c0_7 = arith.constant 0 : index
    %c0_8 = arith.constant 0 : index
    %c0_9 = arith.constant 0 : index
    %8 = vector.load %arg3[%c0_7, %c0_8, %c0_9] : memref<1x128x72xbf16, #tpu.memory_space<vmem>>, vector<1x128x8xbf16>
    %9 = vector.shape_cast %8 : vector<1x128x8xbf16> to vector<128x8xbf16>
    %10 = vector.broadcast %3 : vector<128x1xbf16> to vector<128x8xbf16>
    %11 = arith.mulf %10, %9 : vector<128x8xbf16>
    %12 = arith.addf %7, %11 : vector<128x8xbf16>
    %c0_10 = arith.constant 0 : index
    %c0_11 = arith.constant 0 : index
    %13 = vector.load %arg8[%c0_10, %c0_11] : memref<128x72xbf16, #tpu.memory_space<vmem>>, vector<128x8xbf16>
    tpu.vector_store %arg8[%c0_10, %c0_11], %12 {strides = array<i32>} : memref<128x72xbf16, #tpu.memory_space<vmem>>, vector<128x8xbf16>,
    %c0_12 = arith.constant 0 : index
    %c0_13 = arith.constant 0 : index
    %c1 = arith.constant 1 : index
    %14 = vector.load %arg4[%c0_12, %c0_13, %c1] : memref<1x128x18xbf16, #tpu.memory_space<vmem>>, vector<1x128x1xbf16>
    %15 = vector.shape_cast %14 : vector<1x128x1xbf16> to vector<128x1xbf16>
    %c0_14 = arith.constant 0 : index
    %c0_15 = arith.constant 0 : index
    %c10 = arith.constant 10 : index
    %16 = vector.load %arg4[%c0_14, %c0_15, %c10] : memref<1x128x18xbf16, #tpu.memory_space<vmem>>, vector<1x128x1xbf16>
    %17 = vector.shape_cast %16 : vector<1x128x1xbf16> to vector<128x1xbf16>
    %c0_16 = arith.constant 0 : index
    %c0_17 = arith.constant 0 : index
    %c8 = arith.constant 8 : index
    %18 = vector.load %arg2[%c0_16, %c0_17, %c8] : memref<1x128x72xbf16, #tpu.memory_space<vmem>>, vector<1x128x8xbf16>
    %19 = vector.shape_cast %18 : vector<1x128x8xbf16> to vector<128x8xbf16>
    %20 = vector.broadcast %15 : vector<128x1xbf16> to vector<128x8xbf16>
    %21 = arith.mulf %20, %19 : vector<128x8xbf16>
    %c0_18 = arith.constant 0 : index
    %c0_19 = arith.constant 0 : index
    %c8_20 = arith.constant 8 : index
    %22 = vector.load %arg3[%c0_18, %c0_19, %c8_20] : memref<1x128x72xbf16, #tpu.memory_space<vmem>>, vector<1x128x8xbf16>
    %23 = vector.shape_cast %22 : vector<1x128x8xbf16> to vector<128x8xbf16>
    %24 = vector.broadcast %17 : vector<128x1xbf16> to vector<128x8xbf16>
    %25 = arith.mulf %24, %23 : vector<128x8xbf16>
    %26 = arith.addf %21, %25 : vector<128x8xbf16>
    %c0_21 = arith.constant 0 : index
    %c8_22 = arith.constant 8 : index
    %27 = vector.load %arg8[%c0_21, %c8_22] : memref<128x72xbf16, #tpu.memory_space<vmem>>, vector<128x8xbf16>
    tpu.vector_store %arg8[%c0_21, %c8_22], %26 {strides = array<i32>} : memref<128x72xbf16, #tpu.memory_space<vmem>>, vector<128x8xbf16>,
    %c0_23 = arith.constant 0 : index
    %c0_24 = arith.constant 0 : index
    %c2 = arith.constant 2 : index
    %28 = vector.load %arg4[%c0_23, %c0_24, %c2] : memref<1x128x18xbf16, #tpu.memory_space<vmem>>, vector<1x128x1xbf16>
    %29 = vector.shape_cast %28 : vector<1x128x1xbf16> to vector<128x1xbf16>
    %c0_25 = arith.constant 0 : index
    %c0_26 = arith.constant 0 : index
    %c11 = arith.constant 11 : index
    %30 = vector.load %arg4[%c0_25, %c0_26, %c11] : memref<1x128x18xbf16, #tpu.memory_space<vmem>>, vector<1x128x1xbf16>
    %31 = vector.shape_cast %30 : vector<1x128x1xbf16> to vector<128x1xbf16>
    %c0_27 = arith.constant 0 : index
    %c0_28 = arith.constant 0 : index
    %c16 = arith.constant 16 : index
    %32 = vector.load %arg2[%c0_27, %c0_28, %c16] : memref<1x128x72xbf16, #tpu.memory_space<vmem>>, vector<1x128x8xbf16>
    %33 = vector.shape_cast %32 : vector<1x128x8xbf16> to vector<128x8xbf16>
    %34 = vector.broadcast %29 : vector<128x1xbf16> to vector<128x8xbf16>
    %35 = arith.mulf %34, %33 : vector<128x8xbf16>
    %c0_29 = arith.constant 0 : index
    %c0_30 = arith.constant 0 : index
    %c16_31 = arith.constant 16 : index
    %36 = vector.load %arg3[%c0_29, %c0_30, %c16_31] : memref<1x128x72xbf16, #tpu.memory_space<vmem>>, vector<1x128x8xbf16>
    %37 = vector.shape_cast %36 : vector<1x128x8xbf16> to vector<128x8xbf16>
    %38 = vector.broadcast %31 : vector<128x1xbf16> to vector<128x8xbf16>
    %39 = arith.mulf %38, %37 : vector<128x8xbf16>
    %40 = arith.addf %35, %39 : vector<128x8xbf16>
    %c0_32 = arith.constant 0 : index
    %c16_33 = arith.constant 16 : index
    %41 = vector.load %arg8[%c0_32, %c16_33] : memref<128x72xbf16, #tpu.memory_space<vmem>>, vector<128x8xbf16>
    tpu.vector_store %arg8[%c0_32, %c16_33], %40 {strides = array<i32>} : memref<128x72xbf16, #tpu.memory_space<vmem>>, vector<128x8xbf16>,
    %c0_34 = arith.constant 0 : index
    %c0_35 = arith.constant 0 : index
    %c3 = arith.constant 3 : index
    %42 = vector.load %arg4[%c0_34, %c0_35, %c3] : memref<1x128x18xbf16, #tpu.memory_space<vmem>>, vector<1x128x1xbf16>
    %43 = vector.shape_cast %42 : vector<1x128x1xbf16> to vector<128x1xbf16>
    %c0_36 = arith.constant 0 : index
    %c0_37 = arith.constant 0 : index
    %c12 = arith.constant 12 : index
    %44 = vector.load %arg4[%c0_36, %c0_37, %c12] : memref<1x128x18xbf16, #tpu.memory_space<vmem>>, vector<1x128x1xbf16>
    %45 = vector.shape_cast %44 : vector<1x128x1xbf16> to vector<128x1xbf16>
    %c0_38 = arith.constant 0 : index
    %c0_39 = arith.constant 0 : index
    %c24 = arith.constant 24 : index
    %46 = vector.load %arg2[%c0_38, %c0_39, %c24] : memref<1x128x72xbf16, #tpu.memory_space<vmem>>, vector<1x128x8xbf16>
    %47 = vector.shape_cast %46 : vector<1x128x8xbf16> to vector<128x8xbf16>
    %48 = vector.broadcast %43 : vector<128x1xbf16> to vector<128x8xbf16>
    %49 = arith.mulf %48, %47 : vector<128x8xbf16>
    %c0_40 = arith.constant 0 : index
    %c0_41 = arith.constant 0 : index
    %c24_42 = arith.constant 24 : index
    %50 = vector.load %arg3[%c0_40, %c0_41, %c24_42] : memref<1x128x72xbf16, #tpu.memory_space<vmem>>, vector<1x128x8xbf16>
    %51 = vector.shape_cast %50 : vector<1x128x8xbf16> to vector<128x8xbf16>
    %52 = vector.broadcast %45 : vector<128x1xbf16> to vector<128x8xbf16>
    %53 = arith.mulf %52, %51 : vector<128x8xbf16>
    %54 = arith.addf %49, %53 : vector<128x8xbf16>
    %c0_43 = arith.constant 0 : index
    %c24_44 = arith.constant 24 : index
    %55 = vector.load %arg8[%c0_43, %c24_44] : memref<128x72xbf16, #tpu.memory_space<vmem>>, vector<128x8xbf16>
    tpu.vector_store %arg8[%c0_43, %c24_44], %54 {strides = array<i32>} : memref<128x72xbf16, #tpu.memory_space<vmem>>, vector<128x8xbf16>,
    %c0_45 = arith.constant 0 : index
    %c0_46 = arith.constant 0 : index
    %c4 = arith.constant 4 : index
    %56 = vector.load %arg4[%c0_45, %c0_46, %c4] : memref<1x128x18xbf16, #tpu.memory_space<vmem>>, vector<1x128x1xbf16>
    %57 = vector.shape_cast %56 : vector<1x128x1xbf16> to vector<128x1xbf16>
    %c0_47 = arith.constant 0 : index
    %c0_48 = arith.constant 0 : index
    %c13 = arith.constant 13 : index
    %58 = vector.load %arg4[%c0_47, %c0_48, %c13] : memref<1x128x18xbf16, #tpu.memory_space<vmem>>, vector<1x128x1xbf16>
    %59 = vector.shape_cast %58 : vector<1x128x1xbf16> to vector<128x1xbf16>
    %c0_49 = arith.constant 0 : index
    %c0_50 = arith.constant 0 : index
    %c32 = arith.constant 32 : index
    %60 = vector.load %arg2[%c0_49, %c0_50, %c32] : memref<1x128x72xbf16, #tpu.memory_space<vmem>>, vector<1x128x8xbf16>
    %61 = vector.shape_cast %60 : vector<1x128x8xbf16> to vector<128x8xbf16>
    %62 = vector.broadcast %57 : vector<128x1xbf16> to vector<128x8xbf16>
    %63 = arith.mulf %62, %61 : vector<128x8xbf16>
    %c0_51 = arith.constant 0 : index
    %c0_52 = arith.constant 0 : index
    %c32_53 = arith.constant 32 : index
    %64 = vector.load %arg3[%c0_51, %c0_52, %c32_53] : memref<1x128x72xbf16, #tpu.memory_space<vmem>>, vector<1x128x8xbf16>
    %65 = vector.shape_cast %64 : vector<1x128x8xbf16> to vector<128x8xbf16>
    %66 = vector.broadcast %59 : vector<128x1xbf16> to vector<128x8xbf16>
    %67 = arith.mulf %66, %65 : vector<128x8xbf16>
    %68 = arith.addf %63, %67 : vector<128x8xbf16>
    %c0_54 = arith.constant 0 : index
    %c32_55 = arith.constant 32 : index
    %69 = vector.load %arg8[%c0_54, %c32_55] : memref<128x72xbf16, #tpu.memory_space<vmem>>, vector<128x8xbf16>
    tpu.vector_store %arg8[%c0_54, %c32_55], %68 {strides = array<i32>} : memref<128x72xbf16, #tpu.memory_space<vmem>>, vector<128x8xbf16>,
    %c0_56 = arith.constant 0 : index
    %c0_57 = arith.constant 0 : index
    %c5 = arith.constant 5 : index
    %70 = vector.load %arg4[%c0_56, %c0_57, %c5] : memref<1x128x18xbf16, #tpu.memory_space<vmem>>, vector<1x128x1xbf16>
    %71 = vector.shape_cast %70 : vector<1x128x1xbf16> to vector<128x1xbf16>
    %c0_58 = arith.constant 0 : index
    %c0_59 = arith.constant 0 : index
    %c14 = arith.constant 14 : index
    %72 = vector.load %arg4[%c0_58, %c0_59, %c14] : memref<1x128x18xbf16, #tpu.memory_space<vmem>>, vector<1x128x1xbf16>
    %73 = vector.shape_cast %72 : vector<1x128x1xbf16> to vector<128x1xbf16>
    %c0_60 = arith.constant 0 : index
    %c0_61 = arith.constant 0 : index
    %c40 = arith.constant 40 : index
    %74 = vector.load %arg2[%c0_60, %c0_61, %c40] : memref<1x128x72xbf16, #tpu.memory_space<vmem>>, vector<1x128x8xbf16>
    %75 = vector.shape_cast %74 : vector<1x128x8xbf16> to vector<128x8xbf16>
    %76 = vector.broadcast %71 : vector<128x1xbf16> to vector<128x8xbf16>
    %77 = arith.mulf %76, %75 : vector<128x8xbf16>
    %c0_62 = arith.constant 0 : index
    %c0_63 = arith.constant 0 : index
    %c40_64 = arith.constant 40 : index
    %78 = vector.load %arg3[%c0_62, %c0_63, %c40_64] : memref<1x128x72xbf16, #tpu.memory_space<vmem>>, vector<1x128x8xbf16>
    %79 = vector.shape_cast %78 : vector<1x128x8xbf16> to vector<128x8xbf16>
    %80 = vector.broadcast %73 : vector<128x1xbf16> to vector<128x8xbf16>
    %81 = arith.mulf %80, %79 : vector<128x8xbf16>
    %82 = arith.addf %77, %81 : vector<128x8xbf16>
    %c0_65 = arith.constant 0 : index
    %c40_66 = arith.constant 40 : index
    %83 = vector.load %arg8[%c0_65, %c40_66] : memref<128x72xbf16, #tpu.memory_space<vmem>>, vector<128x8xbf16>
    tpu.vector_store %arg8[%c0_65, %c40_66], %82 {strides = array<i32>} : memref<128x72xbf16, #tpu.memory_space<vmem>>, vector<128x8xbf16>,
    %c0_67 = arith.constant 0 : index
    %c0_68 = arith.constant 0 : index
    %c6 = arith.constant 6 : index
    %84 = vector.load %arg4[%c0_67, %c0_68, %c6] : memref<1x128x18xbf16, #tpu.memory_space<vmem>>, vector<1x128x1xbf16>
    %85 = vector.shape_cast %84 : vector<1x128x1xbf16> to vector<128x1xbf16>
    %c0_69 = arith.constant 0 : index
    %c0_70 = arith.constant 0 : index
    %c15 = arith.constant 15 : index
    %86 = vector.load %arg4[%c0_69, %c0_70, %c15] : memref<1x128x18xbf16, #tpu.memory_space<vmem>>, vector<1x128x1xbf16>
    %87 = vector.shape_cast %86 : vector<1x128x1xbf16> to vector<128x1xbf16>
    %c0_71 = arith.constant 0 : index
    %c0_72 = arith.constant 0 : index
    %c48 = arith.constant 48 : index
    %88 = vector.load %arg2[%c0_71, %c0_72, %c48] : memref<1x128x72xbf16, #tpu.memory_space<vmem>>, vector<1x128x8xbf16>
    %89 = vector.shape_cast %88 : vector<1x128x8xbf16> to vector<128x8xbf16>
    %90 = vector.broadcast %85 : vector<128x1xbf16> to vector<128x8xbf16>
    %91 = arith.mulf %90, %89 : vector<128x8xbf16>
    %c0_73 = arith.constant 0 : index
    %c0_74 = arith.constant 0 : index
    %c48_75 = arith.constant 48 : index
    %92 = vector.load %arg3[%c0_73, %c0_74, %c48_75] : memref<1x128x72xbf16, #tpu.memory_space<vmem>>, vector<1x128x8xbf16>
    %93 = vector.shape_cast %92 : vector<1x128x8xbf16> to vector<128x8xbf16>
    %94 = vector.broadcast %87 : vector<128x1xbf16> to vector<128x8xbf16>
    %95 = arith.mulf %94, %93 : vector<128x8xbf16>
    %96 = arith.addf %91, %95 : vector<128x8xbf16>
    %c0_76 = arith.constant 0 : index
    %c48_77 = arith.constant 48 : index
    %97 = vector.load %arg8[%c0_76, %c48_77] : memref<128x72xbf16, #tpu.memory_space<vmem>>, vector<128x8xbf16>
    tpu.vector_store %arg8[%c0_76, %c48_77], %96 {strides = array<i32>} : memref<128x72xbf16, #tpu.memory_space<vmem>>, vector<128x8xbf16>,
    %c0_78 = arith.constant 0 : index
    %c0_79 = arith.constant 0 : index
    %c7 = arith.constant 7 : index
    %98 = vector.load %arg4[%c0_78, %c0_79, %c7] : memref<1x128x18xbf16, #tpu.memory_space<vmem>>, vector<1x128x1xbf16>
    %99 = vector.shape_cast %98 : vector<1x128x1xbf16> to vector<128x1xbf16>
    %c0_80 = arith.constant 0 : index
    %c0_81 = arith.constant 0 : index
    %c16_82 = arith.constant 16 : index
    %100 = vector.load %arg4[%c0_80, %c0_81, %c16_82] : memref<1x128x18xbf16, #tpu.memory_space<vmem>>, vector<1x128x1xbf16>
    %101 = vector.shape_cast %100 : vector<1x128x1xbf16> to vector<128x1xbf16>
    %c0_83 = arith.constant 0 : index
    %c0_84 = arith.constant 0 : index
    %c56 = arith.constant 56 : index
    %102 = vector.load %arg2[%c0_83, %c0_84, %c56] : memref<1x128x72xbf16, #tpu.memory_space<vmem>>, vector<1x128x8xbf16>
    %103 = vector.shape_cast %102 : vector<1x128x8xbf16> to vector<128x8xbf16>
    %104 = vector.broadcast %99 : vector<128x1xbf16> to vector<128x8xbf16>
    %105 = arith.mulf %104, %103 : vector<128x8xbf16>
    %c0_85 = arith.constant 0 : index
    %c0_86 = arith.constant 0 : index
    %c56_87 = arith.constant 56 : index
    %106 = vector.load %arg3[%c0_85, %c0_86, %c56_87] : memref<1x128x72xbf16, #tpu.memory_space<vmem>>, vector<1x128x8xbf16>
    %107 = vector.shape_cast %106 : vector<1x128x8xbf16> to vector<128x8xbf16>
    %108 = vector.broadcast %101 : vector<128x1xbf16> to vector<128x8xbf16>
    %109 = arith.mulf %108, %107 : vector<128x8xbf16>
    %110 = arith.addf %105, %109 : vector<128x8xbf16>
    %c0_88 = arith.constant 0 : index
    %c56_89 = arith.constant 56 : index
    %111 = vector.load %arg8[%c0_88, %c56_89] : memref<128x72xbf16, #tpu.memory_space<vmem>>, vector<128x8xbf16>
    tpu.vector_store %arg8[%c0_88, %c56_89], %110 {strides = array<i32>} : memref<128x72xbf16, #tpu.memory_space<vmem>>, vector<128x8xbf16>,
    %c0_90 = arith.constant 0 : index
    %c0_91 = arith.constant 0 : index
    %c8_92 = arith.constant 8 : index
    %112 = vector.load %arg4[%c0_90, %c0_91, %c8_92] : memref<1x128x18xbf16, #tpu.memory_space<vmem>>, vector<1x128x1xbf16>
    %113 = vector.shape_cast %112 : vector<1x128x1xbf16> to vector<128x1xbf16>
    %c0_93 = arith.constant 0 : index
    %c0_94 = arith.constant 0 : index
    %c17 = arith.constant 17 : index
    %114 = vector.load %arg4[%c0_93, %c0_94, %c17] : memref<1x128x18xbf16, #tpu.memory_space<vmem>>, vector<1x128x1xbf16>
    %115 = vector.shape_cast %114 : vector<1x128x1xbf16> to vector<128x1xbf16>
    %c0_95 = arith.constant 0 : index
    %c0_96 = arith.constant 0 : index
    %c64 = arith.constant 64 : index
    %116 = vector.load %arg2[%c0_95, %c0_96, %c64] : memref<1x128x72xbf16, #tpu.memory_space<vmem>>, vector<1x128x8xbf16>
    %117 = vector.shape_cast %116 : vector<1x128x8xbf16> to vector<128x8xbf16>
    %118 = vector.broadcast %113 : vector<128x1xbf16> to vector<128x8xbf16>
    %119 = arith.mulf %118, %117 : vector<128x8xbf16>
    %c0_97 = arith.constant 0 : index
    %c0_98 = arith.constant 0 : index
    %c64_99 = arith.constant 64 : index
    %120 = vector.load %arg3[%c0_97, %c0_98, %c64_99] : memref<1x128x72xbf16, #tpu.memory_space<vmem>>, vector<1x128x8xbf16>
    %121 = vector.shape_cast %120 : vector<1x128x8xbf16> to vector<128x8xbf16>
    %122 = vector.broadcast %115 : vector<128x1xbf16> to vector<128x8xbf16>
    %123 = arith.mulf %122, %121 : vector<128x8xbf16>
    %124 = arith.addf %119, %123 : vector<128x8xbf16>
    %c0_100 = arith.constant 0 : index
    %c64_101 = arith.constant 64 : index
    %125 = vector.load %arg8[%c0_100, %c64_101] : memref<128x72xbf16, #tpu.memory_space<vmem>>, vector<128x8xbf16>
    tpu.vector_store %arg8[%c0_100, %c64_101], %124 {strides = array<i32>} : memref<128x72xbf16, #tpu.memory_space<vmem>>, vector<128x8xbf16>,
    %c0_102 = arith.constant 0 : index
    %c0_103 = arith.constant 0 : index
    %126 = vector.load %arg8[%c0_102, %c0_103] : memref<128x72xbf16, #tpu.memory_space<vmem>>, vector<128x72xbf16>
    %c0_104 = arith.constant 0 : index
    %c0_105 = arith.constant 0 : index
    %127 = vector.load %arg5[%c0_104, %c0_105] : memref<72x8xbf16, #tpu.memory_space<vmem>>, vector<72x8xbf16>
    %cst = arith.constant dense<0.000000e+00> : vector<128x8xf32>
    %128 = tpu.matmul %126, %127, %cst {dimension_numbers = #tpu.dot_dimension_numbers<[1], [0], [0], [1], [0, 0, 1, 1], [], []>} : vector<128x72xbf16>, vector<72x8xbf16>, vector<128x8xf32> -> vector<128x8xf32>
    %c0_106 = arith.constant 0 : index
    %c0_107 = arith.constant 0 : index
    %129 = vector.load %arg6[%c0_106, %c0_107] : memref<1x8xf32, #tpu.memory_space<vmem>>, vector<1x8xf32>
    %130 = vector.broadcast %129 : vector<1x8xf32> to vector<128x8xf32>
    %131 = arith.addf %128, %130 : vector<128x8xf32>
    %132 = arith.negf %131 : vector<128x8xf32>
    %133 = math.exp %132 : vector<128x8xf32>
    %cst_108 = arith.constant 1.000000e+00 : f32
    %134 = vector.broadcast %cst_108 : f32 to vector<128x8xf32>
    %135 = arith.addf %134, %133 : vector<128x8xf32>
    %136 = arith.divf %134, %135 : vector<128x8xf32>
    %137 = arith.mulf %131, %136 : vector<128x8xf32>
    %c0_109 = arith.constant 0 : index
    %c0_110 = arith.constant 0 : index
    %c0_111 = arith.constant 0 : index
    %138 = vector.load %arg7[%c0_109, %c0_110, %c0_111] : memref<1x128x8xf32, #tpu.memory_space<vmem>>, vector<1x128x8xf32>
    %139 = vector.shape_cast %138 : vector<1x128x8xf32> to vector<128x8xf32>
    %140 = vector.shape_cast %137 : vector<128x8xf32> to vector<1x128x8xf32>
    tpu.vector_store %arg7[%c0_109, %c0_110, %c0_111], %140 {strides = array<i32>} : memref<1x128x8xf32, #tpu.memory_space<vmem>>, vector<1x128x8xf32>,
    return
  }
  func.func @transform_0(%arg0: i32, %arg1: i32) -> (i32, i32, i32) {
    %c0_i32 = arith.constant 0 : i32
    %c0_i32_0 = arith.constant 0 : i32
    return %arg0, %arg1, %c0_i32 : i32, i32, i32
  }
  func.func @transform_1(%arg0: i32, %arg1: i32) -> (i32, i32, i32) {
    %c0_i32 = arith.constant 0 : i32
    %c0_i32_0 = arith.constant 0 : i32
    return %arg0, %arg1, %c0_i32 : i32, i32, i32
  }
  func.func @transform_2(%arg0: i32, %arg1: i32) -> (i32, i32, i32) {
    %c0_i32 = arith.constant 0 : i32
    %c0_i32_0 = arith.constant 0 : i32
    return %arg0, %arg1, %c0_i32 : i32, i32, i32
  }
  func.func @transform_3(%arg0: i32, %arg1: i32) -> (i32, i32) {
    %c0_i32 = arith.constant 0 : i32
    %c0_i32_0 = arith.constant 0 : i32
    %c0_i32_1 = arith.constant 0 : i32
    return %c0_i32, %c0_i32_0 : i32, i32
  }
  func.func @transform_4(%arg0: i32, %arg1: i32) -> (i32, i32) {
    %c0_i32 = arith.constant 0 : i32
    %c0_i32_0 = arith.constant 0 : i32
    %c0_i32_1 = arith.constant 0 : i32
    return %c0_i32, %c0_i32_0 : i32, i32
  }
  func.func @transform_5(%arg0: i32, %arg1: i32) -> (i32, i32, i32) {
    %c0_i32 = arith.constant 0 : i32
    %c0_i32_0 = arith.constant 0 : i32
    return %arg0, %arg1, %c0_i32 : i32, i32, i32
  }
}

</mosaic_0001>

<bundles_post_ra>
// kernel: dydcnv2_forward.2
= control target key start
LH: loop header
LB: loop body
LE: loop exit
PB: predicated region body
PF: predicated region fallthrough
CT: control target
= control target key end

     0   :  { %8 = vsyncpa [#allocation4], 0  ;;  %s3350_s0 = inlined_call_operand.vmem [shape: bf16[2,18,18,8], index: 0, kind: input, shape index: {}]   ;;  %s3351_s1 = inlined_call_operand.hbm [shape: bf16[72,128], index: 1, kind: input, shape index: {}]   ;;  %s3352_s2 = inlined_call_operand.hbm [shape: f32[1,128], index: 2, kind: input, shape index: {}]   ;;  %s3353_s3 = inlined_call_operand.vmem [shape: f32[2,16,16,128], index: 3, kind: output, shape index: {}]  }
   0x1   :  { %9 = vsyncpa [#allocation6], 0  ;;  %s2661_s12 = smov 0   ;;  %s2663_s13 = smov 0  }
   0x2   :  { %s2665_s14 = smov 0   ;;  %s2667_s15 = smov 0  }
   0x3   :  { %s2669_s16 = smov 0  }
   0x4 LB: > { %s2111_s17 = sadd.s32 4294967295, %s2627_s16   ;;  %s24_s18 = sadd.s32 1, %s2619_s14  ;;  %s2627_s16 = sphi %s2669_s16, %s15_s16   ;;  %s2623_s15 = sphi %s2667_s15, %s3369_s15   ;;  %s2619_s14 = sphi %s2665_s14, %s3368_s14   ;;  %s2615_s13 = sphi %s2663_s13, %s3367_s13   ;;  %s2611_s12 = sphi %s2661_s12, %s3366_s12  }
   0x5   : > { %p25_p0 = scmp.ge.s32.totalorder %s24_s18, 2  ;;  %s27_s19 = sadd.s32 1, %s2623_s15 }
   0x6   : > { %p2113_p1 = scmp.ge.s32.totalorder %s2627_s16, 1  ;;  %p128_p2 = scmp.lt.s32.totalorder %s2627_s16, 5 }
   0x7   : > { %s3371_s18 = smov (%p25_p0, %s24_s18), 0  ;;  %s3373_s19 = smov (!%p25_p0, %s27_s19), %s2623_s15 }
   0x8   : > { %p2694_p3 = pnand %p2113_p1, %p128_p2  ;;  %p29_p4 = scmp.ge.s32.totalorder %s3373_s19, 2 }
   0x9   : > { %p2698_p5 = scmp.eq.s32.totalorder %s2111_s17, 0  ;;  %s2629_s22 = smov [#allocation3]  }
   0xa   : > { %s3357_s20 = scalar_select %p2694_p3, 1, 0 }
   0xb   : > { %s3358_s21 = scalar_select %p2698_p5, 1, 0 }
   0xc   : > { %p2433_p6 = pneg %p2694_p3  ;;  %s3375_s19 = smov (%p29_p4, %s3373_s19), 0 }
   0xd   : > { %s140_s23 = sshll.u32 %s2629_s22, 4  ;;  %s2525_s27 = scalar_lea.hbm %s3351_s1, 576  ;;  %s141_s23 = int_to_ptr.vmem [resolvable:$true] %s140_s23 }
   0xe   : > { %p2708_p7 = pnand %p2698_p5, %p2433_p6  ;;  %p2526_p8 = scmp.ne.s32.totalorder %s3351_s1, %s2525_s27 }
   0xf   : > { %p2532_p12 = scmp.lt.u32.totalorder %s2525_s27, %s3351_s1 }
  0x10   : > { %p2527_p9 = pneg %p2708_p7 }
  0x12   : > { %p2528_p10 = pnand %p2527_p9, %p2526_p8 }
  0x14   : > { %p2529_p11 = pneg %p2528_p10 }
  0x16   : > { %p2534_p13 = pnand %p2532_p12, %p2529_p11 }
  0x18   : > { %2537 = shalt.err (!%p2534_p13)
}
  0x19   : > { %s2538_s5 = scalar_lea.vmem %s141_s23, 576  ;;  %p2546_p4 = scmp.lt.s32.totalorder %s141_s23, %s141_s23 }
  0x1a   : > { %p2539_p0 = scmp.ne.s32.totalorder %s141_s23, %s2538_s5  ;;  %p2547_p6 = scmp.lt.s32.totalorder %s2538_s5, %s2538_s5 }
  0x1c   : > { %p2541_p1 = pnand %p2539_p0, %p2527_p9  ;;  %p2548_p5 = por %p2547_p6, %p2546_p4 }
  0x1e   : > { %p2542_p2 = pneg %p2541_p1 }
  0x20   : > { %p2549_p3 = pnand %p2548_p5, %p2542_p2 }
  0x22   : > { %2552 = shalt.err (!%p2549_p3)
}
  0x23   : > { %s2630_s6 = smov 64   ;;  %s2631_s7 = smov 4  }
  0x24   : > { %2436 = dma.hbm_to_vmem [thread:$0]  (!%p2708_p7), %s3351_s1, 576, %s141_s23, [#allocation4], %s2630_s6, %s2630_s6, %s2631_s7  }
  0x25   : > { %s2632_s10 = smov [#allocation5]   ;;  %s2553_s25 = scalar_lea.hbm %s3352_s2, 16 }
  0x26   : > { %s154_s11 = sshll.u32 %s2632_s10, 4  ;;  %p2554_p3 = scmp.ne.s32.totalorder %s3352_s2, %s2553_s25  ;;  %s155_s11 = int_to_ptr.vmem [resolvable:$true] %s154_s11 }
  0x27   : > { %p2560_p10 = scmp.lt.u32.totalorder %s2553_s25, %s3352_s2 }
  0x28   : > { %p2556_p5 = pnand %p2554_p3, %p2527_p9 }
  0x2a   : > { %p2557_p8 = pneg %p2556_p5 }
  0x2c   : > { %p2562_p11 = pnand %p2560_p10, %p2557_p8 }
  0x2e   : > { %2565 = shalt.err (!%p2562_p11)
}
  0x2f   : > { %s2566_s23 = scalar_lea.vmem %s155_s11, 16  ;;  %s2573_s30 = scalar_lea.vmem %s155_s11, 32 }
  0x30   : > { %p2567_p12 = scmp.ne.s32.totalorder %s155_s11, %s2566_s23  ;;  %p2574_p1 = scmp.lt.s32.totalorder %s155_s11, %s155_s11 }
  0x31   : > { %p2575_p2 = scmp.lt.s32.totalorder %s2573_s30, %s2566_s23 }
  0x32   : > { %p2569_p13 = pnand %p2567_p12, %p2527_p9 }
  0x33   : > { %p2576_p4 = por %p2575_p2, %p2574_p1 }
  0x34   : > { %p2570_p0 = pneg %p2569_p13 }
  0x36   : > { %p2577_p6 = pnand %p2576_p4, %p2570_p0 }
  0x38   : > { %2580 = shalt.err (!%p2577_p6)
}
  0x39   : > { %2439 = dma.hbm_to_vmem [thread:$0]  (!%p2708_p7), %s3352_s2, 16, %s155_s11, [#allocation6]  }
  0x3a   : > { %p3360_p3 = scmp.ne.s32.totalorder %s3357_s20, 0 }
  0x3b   : > { %p3361_p5 = scmp.ne.s32.totalorder (!%p3360_p3), %s3358_s21, 0 }
  0x3c   : > { %175 = sbr.rel (%p3360_p3) target bundleno = 574 (0x23e), region = 32 }
  0x43   : > { %2602 = dma.done.wait (%p3361_p5), [#allocation4], 576  }
  0x44   : > { %2604 = vsyncadd (%p3361_p5), [#allocation4], 4294966720 }
  0x45   : > { %2606 = dma.done.wait (%p3361_p5), [#allocation6], 16  }
  0x46   : > { %2608 = vsyncadd (%p3361_p5), [#allocation6], 4294967280  ;;  %p208_p9 = scmp.lt.s32.totalorder %s2615_s13, 1  ;;  %s2372_s20 = smul.u32 96, %s2611_s12  ;;  %vm626_vm0 = vcmask 1042432   ;;  %vm627_vm1 = vcmask 1046532  }
  0x47   : > { %vm2773_vm2 = vmor %vm626_vm0, %vm627_vm1  ;;  %s2633_s9 = smov 24   ;;  %vm326_vm3 = vsmask.f32 3328  ;;  %vm327_vm4 = vsmask.f32 7440  ;;  %s2634_s10 = smov 16  }
  0x48   : > { %s3377_s13 = smov (!%p208_p9, %s2615_s13), 1  ;;  %vm2829_vm5 = vmor %vm326_vm3, %vm327_vm4  ;;  %s2635_s11 = smov 8   ;;  %vm293_vm6 = vcmask 64512   ;;  %vm569_vm7 = vcmask 130112   ;;  %vm733_vm8 = vcmask 195712   ;;  %vm826_vm9 = vcmask 261312  }
  0x49   : > { %s2424_s24 = smul.u32 216, %s3377_s13  ;;  %s2636_s17 = smov 32   ;;  %vm1872_vm10 = vcmask 1043456   ;;  %vm1099_vm11 = vcmask 326912   ;;  %vm1260_vm12 = vcmask 392512   ;;  %vm1353_vm13 = vcmask 458112  }
  0x4a   : > { %s2637_s22 = smov 40   ;;  %s2638_s25 = smov 48   ;;  %vm1626_vm14 = vcmask 523712   ;;  %vm1787_vm15 = vcmask 589312   ;;  %vm1847_vm0 = vcmask 588800  }
  0x4b   : > { %s212_s8 = scalar_lea.vmem %s3350_s0, %s2424_s24  ;;  %s2639_s26 = smov 56  }
  0x4c   : > { %s2777_s21 = scalar_lea.vmem %s212_s8, %s2372_s20  ;;  %s2640_s27 = smov 64  }
  0x4d   : > { %v2496_v1 = vld [vmem:[%s2777_s21 + $0x3c] sm:$0xff]   ;;  %v2497_v2 = vld [vmem:[%s2777_s21 + $0xc] sm:$0xff]   ;;  %v591_v6 = vld [vmem:[%s2777_s21 + $0x34] sm:$0xf]  ;;  %s2121_s28 = sshll.u32 %s2611_s12, 3  ;;  %s2123_s23 = sshll.u32 %s3377_s13, 5 }
  0x4e   : > { %810 = vrot.lane.b32.xlu1 %v2496_v1, %s2633_s9  ;;  %v2498_v3 = vld [vmem:[%s2777_s21 + $0x48] sm:$0xff]   ;;  %802 = vrot.lane.b32.xlu0 %v2497_v2, %s2633_s9  ;;  %v2499_v4 = vld [vmem:[%s2777_s21 + $0x18] sm:$0xff]   ;;  %v659_v9 = vrot.slane %v591_v6, 5  ;;  %p216_p7 = scmp.lt.s32.totalorder %s2121_s28, 15 }
  0x4f   : > { %v590_v5 = vld [vmem:[%s2777_s21 + $0x30] sm:$0xe]  ;;  %v592_v7 = vld [vmem:[%s2777_s21 + $0x38] sm:$0x1]  ;;  %v578_v11 = vld [vmem:[%s2777_s21] sm:$0xe] }
  0x50   : > { %v2148_v8 = vrot.slane %v590_v5, 9  ;;  %v662_v10 = vrot.slane %v592_v7, 5  ;;  %v579_v12 = vld [vmem:[%s2777_s21 + $0x4] sm:$0xf]  ;;  %v580_v13 = vld [vmem:[%s2777_s21 + $0x8] sm:$0x1] }
  0x51   : > { %v2144_v14 = vrot.slane %v578_v11, 9  ;;  %v661_v16 = vrot.slane %v659_v9, 4  ;;  %v631_v17 = vrot.slane %v579_v12, 5  ;;  %v634_v18 = vrot.slane %v580_v13, 5  ;;  %v593_v19 = vld [vmem:[%s2777_s21 + $0x3c] sm:$0xe] }
  0x52   : > { %812 = vrot.lane.b32.xlu1 %v2498_v3, %s2633_s9  ;;  %804 = vrot.lane.b32.xlu0 %v2499_v4, %s2633_s9  ;;  %v660_v15 = vsel %vm2773_vm2, %v2148_v8, %v659_v9  ;;  %v594_v20 = vld [vmem:[%s2777_s21 + $0x40] sm:$0xf]  ;;  %v595_v21 = vld [vmem:[%s2777_s21 + $0x44] sm:$0x1]  ;;  %v2149_v22 = vrot.slane %v593_v19, 9  ;;  %s3379_s28 = smov (!%p216_p7, %s2121_s28), 15 }
  0x53   : > { %v663_v23 = vsel %vm2773_vm2, %v661_v16, %v662_v10  ;;  %v632_v24 = vsel %vm2773_vm2, %v2144_v14, %v631_v17  ;;  %v633_v25 = vrot.slane %v631_v17, 4  ;;  %v666_v26 = vrot.slane %v594_v20, 5  ;;  %v581_v27 = vld [vmem:[%s2777_s21 + $0xc] sm:$0xe]  ;;  %v582_v28 = vld [vmem:[%s2777_s21 + $0x10] sm:$0xf] }
  0x54   : > { %v2156_v29 = vcombine.low %v660_v15, %v663_v23  ;;  %v669_v30 = vrot.slane %v595_v21, 5  ;;  %v583_v31 = vld [vmem:[%s2777_s21 + $0x14] sm:$0x1]  ;;  %v2145_v32 = vrot.slane %v581_v27, 9  ;;  %v638_v33 = vrot.slane %v582_v28, 5  ;;  %s2122_s29 = sshll.u32 %s3379_s28, 1 }
  0x55   : > { %v635_v34 = vsel %vm2773_vm2, %v633_v25, %v634_v18  ;;  %v667_v35 = vsel %vm2773_vm2, %v2149_v22, %v666_v26  ;;  %v668_v36 = vrot.slane %v666_v26, 4  ;;  %v641_v37 = vrot.slane %v583_v31, 5  ;;  %v305_v38 = vld [vmem:[%s2777_s21 + $0xc] sm:$0xf]  ;;  %v306_v39 = vld [vmem:[%s2777_s21 + $0x10] sm:$0xf]  ;;  %s220_s30 = sadd.s32 %s2123_s23, %s2122_s29 }
  0x56   : > { %717 = vrot.lane.b32.xlu1 %v2156_v29, %s2634_s10  ;;  %v2152_v40 = vcombine.low %v632_v24, %v635_v34  ;;  %v639_v41 = vsel %vm2773_vm2, %v2145_v32, %v638_v33  ;;  %v640_v42 = vrot.slane %v638_v33, 4  ;;  %v307_v43 = vld [vmem:[%s2777_s21 + $0x14] sm:$0x1]  ;;  %v354_v44 = vshrl.u32 %v305_v38, 16  ;;  %v302_v45 = vld [vmem:[%s2777_s21] sm:$0xf] }
  0x57   : > { %v670_v46 = vsel %vm2773_vm2, %v668_v36, %v669_v30  ;;  %v357_v47 = vshll.u32 %v305_v38, 16  ;;  %v363_v48 = vshll.u32 %v306_v39, 16  ;;  %v367_v49 = vshrl.u32 %v306_v39, 16  ;;  %v303_v50 = vld [vmem:[%s2777_s21 + $0x4] sm:$0xf]  ;;  %s2124_s4 = sshll.u32 %s220_s30, 3 }
  0x58   : > { %709 = vrot.lane.b32.xlu0 %v2152_v40, %s2634_s10  ;;  %v2157_v51 = vcombine.low %v667_v35, %v670_v46  ;;  %v642_v52 = vsel %vm2773_vm2, %v640_v42, %v641_v37  ;;  %v356_v53 = vrot.slane %v354_v44, 4  ;;  %v373_v54 = vshll.u32 %v307_v43, 16  ;;  %v304_v55 = vld [vmem:[%s2777_s21 + $0x8] sm:$0x1]  ;;  %v317_v60 = vld [vmem:[%s2777_s21 + $0x3c] sm:$0xf]  ;;  %s3317_s24 = scalar_lea.vmem %s3353_s3, %s2124_s4 }
  0x59   : > { %v2153_v56 = vcombine.low %v639_v41, %v642_v52  ;;  %v359_v57 = vrot.slane %v357_v47, 5  ;;  %v365_v58 = vrot.slane %v363_v48, 5  ;;  %v369_v59 = vrot.slane %v367_v49, 4  ;;  %v318_v6 = vld [vmem:[%s2777_s21 + $0x40] sm:$0xf] }
  0x5a   : > { %719 = vrot.lane.b32.xlu1 %v2157_v51, %s2634_s10  ;;  %v375_v61 = vrot.slane %v373_v54, 5  ;;  %v330_v62 = vshrl.u32 %v302_v45, 16  ;;  %v333_v63 = vshll.u32 %v302_v45, 16  ;;  %v339_v1 = vshll.u32 %v303_v50, 16  ;;  %v319_v16 = vld [vmem:[%s2777_s21 + $0x44] sm:$0x1] }
  0x5b   : > { %v360_v2 = vor.u32 %v359_v57, %v356_v53  ;;  %v370_v3 = vor.u32 %v369_v59, %v365_v58  ;;  %v343_v4 = vshrl.u32 %v303_v50, 16  ;;  %v349_v5 = vshll.u32 %v304_v55, 16  ;;  %v314_v21 = vld [vmem:[%s2777_s21 + $0x30] sm:$0xf]  ;;  %v315_v26 = vld [vmem:[%s2777_s21 + $0x34] sm:$0xf] }
  0x5c   : > { %711 = vrot.lane.b32.xlu0 %v2153_v56, %s2634_s10  ;;  %v332_v8 = vrot.slane %v330_v62, 4  ;;  %v335_v9 = vrot.slane %v333_v63, 5  ;;  %v341_v10 = vrot.slane %v339_v1, 5  ;;  %v450_v11 = vshrl.u32 %v317_v60, 16  ;;  %v316_v37 = vld [vmem:[%s2777_s21 + $0x38] sm:$0x1] }
  0x5d   : > { %v361_v12 = vrot.slane %v360_v2, 4  ;;  %v371_v13 = vrot.slane %v370_v3, 4  ;;  %v345_v14 = vrot.slane %v343_v4, 4  ;;  %v351_v15 = vrot.slane %v349_v5, 5  ;;  %v2198_v40 = vld [vmem:[%s2777_s21 + $0x3c] sm:$0xf] }
  0x5e   : > { %v336_v17 = vor.u32 %v335_v9, %v332_v8  ;;  %v452_v18 = vrot.slane %v450_v11, 4  ;;  %v453_v19 = vshll.u32 %v317_v60, 16  ;;  %v459_v20 = vshll.u32 %v318_v6, 16  ;;  %v2199_v45 = vld [vmem:[%s2777_s21 + $0x40] sm:$0xf] }
  0x5f   : > { %v366_v22 = vsel %vm2829_vm5, %v361_v12, %v365_v58  ;;  %v376_v23 = vsel %vm2829_vm5, %v371_v13, %v375_v61  ;;  %v346_v24 = vor.u32 %v345_v14, %v341_v10  ;;  %v463_v25 = vshrl.u32 %v318_v6, 16  ;;  %v2200_v56 = vld [vmem:[%s2777_s21 + $0x44] sm:$0x1]  ;;  %v2186_v59 = vld [vmem:[%s2777_s21 + $0xc] sm:$0xf] }
  0x60   : > { %v2137_v27 = vcombine.low %v366_v22, %v376_v23  ;;  %v337_v28 = vrot.slane %v336_v17, 4  ;;  %v455_v29 = vrot.slane %v453_v19, 5  ;;  %v461_v30 = vrot.slane %v459_v20, 5  ;;  %v2187_v1 = vld [vmem:[%s2777_s21 + $0x10] sm:$0xf] }
  0x61   : > { %v347_v31 = vrot.slane %v346_v24, 4  ;;  %v465_v32 = vrot.slane %v463_v25, 4  ;;  %v469_v33 = vshll.u32 %v319_v16, 16  ;;  %v426_v34 = vshrl.u32 %v314_v21, 16  ;;  %v2188_v13 = vld [vmem:[%s2777_s21 + $0x14] sm:$0x1] }
  0x62   : > { %547 = vrot.lane.b32.xlu1 %v2137_v27, %s2635_s11  ;;  %v342_v35 = vsel %vm2829_vm5, %v337_v28, %v341_v10  ;;  %v456_v36 = vor.u32 %v455_v29, %v452_v18  ;;  %v429_v38 = vshll.u32 %v314_v21, 16  ;;  %v435_v39 = vshll.u32 %v315_v26, 16  ;;  %v2201_v16 = vld [vmem:[%s2777_s21 + $0x48] sm:$0xf]  ;;  %v2202_v28 = vld [vmem:[%s2777_s21 + $0x4c] sm:$0xf] }
  0x63   : > { %v352_v41 = vsel %vm2829_vm5, %v347_v31, %v351_v15  ;;  %v466_v42 = vor.u32 %v465_v32, %v461_v30  ;;  %v471_v43 = vrot.slane %v469_v33, 5  ;;  %v428_v44 = vrot.slane %v426_v34, 4  ;;  %v2203_v29 = vld [vmem:[%s2777_s21 + $0x50] sm:$0x1] }
  0x64   : > { %v2136_v46 = vcombine.low %v342_v35, %v352_v41  ;;  %v457_v47 = vrot.slane %v456_v36, 4  ;;  %v431_v48 = vrot.slane %v429_v38, 5  ;;  %v437_v49 = vrot.slane %v435_v39, 5  ;;  %v2189_v35 = vld [vmem:[%s2777_s21 + $0x18] sm:$0xf] }
  0x65   : > { %v467_v50 = vrot.slane %v466_v42, 4  ;;  %v439_v51 = vshrl.u32 %v315_v26, 16  ;;  %v445_v52 = vshll.u32 %v316_v37, 16  ;;  %v956_v53 = vshrl.u32 %v2198_v40, 16 }
  0x66   : > { %545 = vrot.lane.b32.xlu0 %v2136_v46, %s2635_s11  ;;  %v462_v54 = vsel %vm2829_vm5, %v457_v47, %v461_v30  ;;  %v432_v55 = vor.u32 %v431_v48, %v428_v44  ;;  %v959_v57 = vshll.u32 %v2198_v40, 16  ;;  %v965_v58 = vshll.u32 %v2199_v45, 16  ;;  %v2190_v40 = vld [vmem:[%s2777_s21 + $0x1c] sm:$0xf] }
  0x67   : > { %v472_v60 = vsel %vm2829_vm5, %v467_v50, %v471_v43  ;;  %v441_v61 = vrot.slane %v439_v51, 4  ;;  %v447_v62 = vrot.slane %v445_v52, 5  ;;  %v958_v63 = vrot.slane %v956_v53, 4  ;;  %v2230_v50 = vld [vmem:[%s2777_s21 + $0x3c] sm:$0xe] }
  0x68   : > { %v2141_v2 = vcombine.low %v462_v54, %v472_v60  ;;  %v433_v3 = vrot.slane %v432_v55, 4  ;;  %v961_v4 = vrot.slane %v959_v57, 5  ;;  %v967_v5 = vrot.slane %v965_v58, 5  ;;  %v2231_v55 = vld [vmem:[%s2777_s21 + $0x40] sm:$0xf] }
  0x69   : > { %v442_v6 = vor.u32 %v441_v61, %v437_v49  ;;  %v969_v8 = vshrl.u32 %v2199_v45, 16  ;;  %v975_v9 = vshll.u32 %v2200_v56, 16  ;;  %v860_v10 = vshrl.u32 %v2186_v59, 16  ;;  %v2191_v45 = vld [vmem:[%s2777_s21 + $0x20] sm:$0x1] }
  0x6a   : > { %555 = vrot.lane.b32.xlu1 %v2141_v2, %s2635_s11  ;;  %v438_v11 = vsel %vm2829_vm5, %v433_v3, %v437_v49  ;;  %v962_v12 = vor.u32 %v961_v4, %v958_v63  ;;  %v863_v14 = vshll.u32 %v2186_v59, 16  ;;  %v869_v15 = vshll.u32 %v2187_v1, 16 }
  0x6b   : > { %v443_v17 = vrot.slane %v442_v6, 4  ;;  %v971_v18 = vrot.slane %v969_v8, 4  ;;  %v977_v19 = vrot.slane %v975_v9, 5  ;;  %v862_v20 = vrot.slane %v860_v10, 4  ;;  %v2218_v6 = vld [vmem:[%s2777_s21 + $0xc] sm:$0xe] }
  0x6c   : > { %v963_v21 = vrot.slane %v962_v12, 4  ;;  %v865_v22 = vrot.slane %v863_v14, 5  ;;  %v871_v23 = vrot.slane %v869_v15, 5  ;;  %v873_v24 = vshrl.u32 %v2187_v1, 16  ;;  %v2219_v12 = vld [vmem:[%s2777_s21 + $0x10] sm:$0xf] }
  0x6d   : > { %v448_v25 = vsel %vm2829_vm5, %v443_v17, %v447_v62  ;;  %v972_v26 = vor.u32 %v971_v18, %v967_v5  ;;  %v879_v27 = vshll.u32 %v2188_v13, 16  ;;  %v980_v30 = vshrl.u32 %v2201_v16, 16  ;;  %v2220_v17 = vld [vmem:[%s2777_s21 + $0x14] sm:$0x1] }
  0x6e   : > { %v2140_v31 = vcombine.low %v438_v11, %v448_v25  ;;  %v968_v32 = vsel %vm2829_vm5, %v963_v21, %v967_v5  ;;  %v866_v33 = vor.u32 %v865_v22, %v862_v20  ;;  %v875_v34 = vrot.slane %v873_v24, 4  ;;  %v2232_v5 = vld [vmem:[%s2777_s21 + $0x44] sm:$0x1]  ;;  %v2233_v22 = vld [vmem:[%s2777_s21 + $0x48] sm:$0xe] }
  0x6f   : > { %v973_v36 = vrot.slane %v972_v26, 4  ;;  %v881_v37 = vrot.slane %v879_v27, 5  ;;  %v982_v38 = vrot.slane %v980_v30, 4  ;;  %v983_v39 = vshll.u32 %v2201_v16, 16  ;;  %v2234_v27 = vld [vmem:[%s2777_s21 + $0x4c] sm:$0xf] }
  0x70   : > { %553 = vrot.lane.b32.xlu0 %v2140_v31, %s2635_s11  ;;  %v867_v41 = vrot.slane %v866_v33, 4  ;;  %v876_v42 = vor.u32 %v875_v34, %v871_v23  ;;  %v989_v43 = vshll.u32 %v2202_v28, 16  ;;  %v993_v44 = vshrl.u32 %v2202_v28, 16  ;;  %v2235_v28 = vld [vmem:[%s2777_s21 + $0x50] sm:$0x1] }
  0x71   : > { %v978_v46 = vsel %vm2829_vm5, %v973_v36, %v977_v19  ;;  %v985_v47 = vrot.slane %v983_v39, 5  ;;  %v999_v48 = vshll.u32 %v2203_v29, 16  ;;  %v884_v49 = vshrl.u32 %v2189_v35, 16  ;;  %v2221_v33 = vld [vmem:[%s2777_s21 + $0x18] sm:$0xe] }
  0x72   : > { %v2214_v51 = vcombine.low %v968_v32, %v978_v46  ;;  %v872_v52 = vsel %vm2829_vm5, %v867_v41, %v871_v23  ;;  %v877_v53 = vrot.slane %v876_v42, 4  ;;  %v991_v54 = vrot.slane %v989_v43, 5  ;;  %v2223_v39 = vld [vmem:[%s2777_s21 + $0x20] sm:$0x1] }
  0x73   : > { %v986_v56 = vor.u32 %v985_v47, %v982_v38  ;;  %v995_v57 = vrot.slane %v993_v44, 4  ;;  %v1001_v58 = vrot.slane %v999_v48, 5  ;;  %v886_v59 = vrot.slane %v884_v49, 4  ;;  %v2222_v38 = vld [vmem:[%s2777_s21 + $0x1c] sm:$0xf] }
  0x74   : > { %1083 = vrot.lane.b32.xlu1 %v2214_v51, %s2636_s17  ;;  %v882_v60 = vsel %vm2829_vm5, %v877_v53, %v881_v37  ;;  %v887_v61 = vshll.u32 %v2189_v35, 16  ;;  %v893_v62 = vshll.u32 %v2190_v40, 16  ;;  %v897_v63 = vshrl.u32 %v2190_v40, 16  ;;  %v2296_v44 = vld [vmem:[%s2777_s21 + $0x48] sm:$0xf] }
  0x75   : > { %v2210_v1 = vcombine.low %v872_v52, %v882_v60  ;;  %v987_v2 = vrot.slane %v986_v56, 4  ;;  %v996_v3 = vor.u32 %v995_v57, %v991_v54  ;;  %v903_v4 = vshll.u32 %v2191_v45, 16  ;;  %v2297_v45 = vld [vmem:[%s2777_s21 + $0x4c] sm:$0xf] }
  0x76   : > { %v889_v8 = vrot.slane %v887_v61, 5  ;;  %v895_v9 = vrot.slane %v893_v62, 5  ;;  %v899_v10 = vrot.slane %v897_v63, 4  ;;  %v2246_v11 = vrot.slane %v2230_v50, 9 }
  0x77   : > { %1075 = vrot.lane.b32.xlu0 %v2210_v1, %s2636_s17  ;;  %v992_v13 = vsel %vm2829_vm5, %v987_v2, %v991_v54  ;;  %v997_v14 = vrot.slane %v996_v3, 4  ;;  %v905_v15 = vrot.slane %v903_v4, 5  ;;  %v1186_v16 = vrot.slane %v2231_v55, 5  ;;  %v2298_v54 = vld [vmem:[%s2777_s21 + $0x50] sm:$0x1] }
  0x78   : > { %v890_v18 = vor.u32 %v889_v8, %v886_v59  ;;  %v900_v19 = vor.u32 %v899_v10, %v895_v9  ;;  %v1189_v20 = vrot.slane %v2232_v5, 5  ;;  %v2242_v21 = vrot.slane %v2218_v6, 9  ;;  %v2284_v59 = vld [vmem:[%s2777_s21 + $0x18] sm:$0xf]  ;;  %v2285_v1 = vld [vmem:[%s2777_s21 + $0x1c] sm:$0xf] }
  0x79   : > { %v1002_v23 = vsel %vm2829_vm5, %v997_v14, %v1001_v58  ;;  %v1187_v24 = vsel %vm2773_vm2, %v2246_v11, %v1186_v16  ;;  %v1188_v25 = vrot.slane %v1186_v16, 4  ;;  %v1158_v26 = vrot.slane %v2219_v12, 5  ;;  %v2286_v10 = vld [vmem:[%s2777_s21 + $0x20] sm:$0x1]  ;;  %v2299_v16 = vld [vmem:[%s2777_s21 + $0x54] sm:$0xf] }
  0x7a   : > { %v2215_v29 = vcombine.low %v992_v13, %v1002_v23  ;;  %v891_v30 = vrot.slane %v890_v18, 4  ;;  %v901_v31 = vrot.slane %v900_v19, 4  ;;  %v1161_v32 = vrot.slane %v2220_v17, 5  ;;  %v2500_v17 = vld [vmem:[%s2777_s21 + $0x48] sm:$0xff]  }
  0x7b   : > { %v1190_v34 = vsel %vm2773_vm2, %v1188_v25, %v1189_v20  ;;  %v1159_v35 = vsel %vm2773_vm2, %v2242_v21, %v1158_v26  ;;  %v1160_v36 = vrot.slane %v1158_v26, 4  ;;  %v2247_v37 = vrot.slane %v2233_v22, 9  ;;  %v2300_v22 = vld [vmem:[%s2777_s21 + $0x58] sm:$0xf] }
  0x7c   : > { %1085 = vrot.lane.b32.xlu1 %v2215_v29, %s2636_s17  ;;  %v896_v40 = vsel %vm2829_vm5, %v891_v30, %v895_v9  ;;  %v906_v41 = vsel %vm2829_vm5, %v901_v31, %v905_v15  ;;  %v2254_v42 = vcombine.low %v1187_v24, %v1190_v34  ;;  %v1193_v43 = vrot.slane %v2234_v27, 5  ;;  %v2501_v27 = vld [vmem:[%s2777_s21 + $0x18] sm:$0xff]  }
  0x7d   : > { %v2211_v46 = vcombine.low %v896_v40, %v906_v41  ;;  %v1162_v47 = vsel %vm2773_vm2, %v1160_v36, %v1161_v32  ;;  %v1196_v48 = vrot.slane %v2235_v28, 5  ;;  %v2243_v49 = vrot.slane %v2221_v33, 9 }
  0x7e   : > { %v2250_v50 = vcombine.low %v1159_v35, %v1162_v47  ;;  %v1194_v51 = vsel %vm2773_vm2, %v2247_v37, %v1193_v43  ;;  %v1195_v52 = vrot.slane %v1193_v43, 4  ;;  %v1165_v53 = vrot.slane %v2222_v38, 5  ;;  %v2301_v35 = vld [vmem:[%s2777_s21 + $0x5c] sm:$0x1]  ;;  %v2287_v37 = vld [vmem:[%s2777_s21 + $0x24] sm:$0xf] }
  0x7f   : > { %1077 = vrot.lane.b32.xlu0 %v2211_v46, %s2636_s17  ;;  %v1168_v55 = vrot.slane %v2223_v39, 5  ;;  %v1483_v56 = vshrl.u32 %v2296_v44, 16  ;;  %v1486_v57 = vshll.u32 %v2296_v44, 16  ;;  %v1492_v58 = vshll.u32 %v2297_v45, 16  ;;  %v2502_v38 = vld [vmem:[%s2777_s21 + $0x54] sm:$0xff]  }
  0x80   : > { %1244 = vrot.lane.b32.xlu1 %v2254_v42, %s2637_s22  ;;  %v1197_v60 = vsel %vm2773_vm2, %v1195_v52, %v1196_v48  ;;  %v1166_v61 = vsel %vm2773_vm2, %v2243_v49, %v1165_v53  ;;  %v1167_v62 = vrot.slane %v1165_v53, 4  ;;  %v1496_v63 = vshrl.u32 %v2297_v45, 16  ;;  %v2288_v43 = vld [vmem:[%s2777_s21 + $0x28] sm:$0xf]  ;;  %v2289_v48 = vld [vmem:[%s2777_s21 + $0x2c] sm:$0x1] }
  0x81   : > { %v2255_v2 = vcombine.low %v1194_v51, %v1197_v60  ;;  %v1485_v3 = vrot.slane %v1483_v56, 4  ;;  %v1488_v4 = vrot.slane %v1486_v57, 5  ;;  %v1494_v5 = vrot.slane %v1492_v58, 5  ;;  %v2328_v53 = vld [vmem:[%s2777_s21 + $0x48] sm:$0xe] }
  0x82   : > { %v1169_v6 = vsel %vm2773_vm2, %v1167_v62, %v1168_v55  ;;  %v1498_v8 = vrot.slane %v1496_v63, 4  ;;  %v1502_v9 = vshll.u32 %v2298_v54, 16  ;;  %v1387_v11 = vshrl.u32 %v2284_v59, 16  ;;  %v2503_v54 = vld [vmem:[%s2777_s21 + $0x24] sm:$0xff]  }
  0x83   : > { %1236 = vrot.lane.b32.xlu0 %v2250_v50, %s2637_s22  ;;  %v2251_v12 = vcombine.low %v1166_v61, %v1169_v6  ;;  %v1489_v13 = vor.u32 %v1488_v4, %v1485_v3  ;;  %v1390_v14 = vshll.u32 %v2284_v59, 16  ;;  %v1396_v15 = vshll.u32 %v2285_v1, 16  ;;  %v2329_v59 = vld [vmem:[%s2777_s21 + $0x4c] sm:$0xf] }
  0x84   : > { %1246 = vrot.lane.b32.xlu1 %v2255_v2, %s2637_s22  ;;  %v1499_v18 = vor.u32 %v1498_v8, %v1494_v5  ;;  %v1504_v19 = vrot.slane %v1502_v9, 5  ;;  %v1389_v20 = vrot.slane %v1387_v11, 4  ;;  %v1400_v21 = vshrl.u32 %v2285_v1, 16  ;;  %v2330_v1 = vld [vmem:[%s2777_s21 + $0x50] sm:$0x1]  ;;  %v2516_v2 = vld [vmem:[#allocation3] sm:$0xff]  }
  0x85   : > { %v1490_v23 = vrot.slane %v1489_v13, 4  ;;  %v1392_v24 = vrot.slane %v1390_v14, 5  ;;  %v1398_v25 = vrot.slane %v1396_v15, 5  ;;  %v1406_v26 = vshll.u32 %v2286_v10, 16  ;;  %v2316_v8 = vld [vmem:[%s2777_s21 + $0x18] sm:$0xe]  ;;  %2386 = vmatprep.subr.bf16.mxu0 %v2516_v2  ;;  %2412 = vmatprep.subr.bf16.mxu1 %v2516_v2 }
  0x86   : > { %v1500_v28 = vrot.slane %v1499_v18, 4  ;;  %v1402_v29 = vrot.slane %v1400_v21, 4  ;;  %v1507_v30 = vshrl.u32 %v2299_v16, 16  ;;  %v1510_v31 = vshll.u32 %v2299_v16, 16  ;;  %v2317_v9 = vld [vmem:[%s2777_s21 + $0x1c] sm:$0xf]  ;;  %2387 = vmatpush3.bf16.msra.mxu0 %v2516_v2  ;;  %2417 = vmatpush3.bf16.msra.mxu1 %v2516_v2 }
  0x87   : > { %1238 = vrot.lane.b32.xlu0 %v2251_v12, %s2637_s22  ;;  %v1495_v32 = vsel %vm2829_vm5, %v1490_v23, %v1494_v5  ;;  %v1393_v33 = vor.u32 %v1392_v24, %v1389_v20  ;;  %v1408_v34 = vrot.slane %v1406_v26, 5  ;;  %v1516_v36 = vshll.u32 %v2300_v22, 16  ;;  %v2318_v18 = vld [vmem:[%s2777_s21 + $0x20] sm:$0x1]  ;;  %v320_v23 = vld [vmem:[%s2777_s21 + $0x48] sm:$0xf] }
  0x88   : > { %1337 = vrot.lane.b32.xlu1 %v2500_v17, %s2638_s25  ;;  %v1505_v39 = vsel %vm2829_vm5, %v1500_v28, %v1504_v19  ;;  %v1403_v40 = vor.u32 %v1402_v29, %v1398_v25  ;;  %v1509_v41 = vrot.slane %v1507_v30, 4  ;;  %v1512_v42 = vrot.slane %v1510_v31, 5  ;;  %v321_v28 = vld [vmem:[%s2777_s21 + $0x4c] sm:$0xf] }
  0x89   : > { %v2312_v44 = vcombine.low %v1495_v32, %v1505_v39  ;;  %v1394_v45 = vrot.slane %v1393_v33, 4  ;;  %v1518_v46 = vrot.slane %v1516_v36, 5  ;;  %v1520_v47 = vshrl.u32 %v2300_v22, 16  ;;  %v322_v33 = vld [vmem:[%s2777_s21 + $0x50] sm:$0x1] }
  0x8a   : > { %v1404_v49 = vrot.slane %v1403_v40, 4  ;;  %v1513_v50 = vor.u32 %v1512_v42, %v1509_v41  ;;  %v1526_v51 = vshll.u32 %v2301_v35, 16  ;;  %v1411_v52 = vshrl.u32 %v2287_v37, 16  ;;  %v308_v39 = vld [vmem:[%s2777_s21 + $0x18] sm:$0xf] }
  0x8b   : > { %1329 = vrot.lane.b32.xlu0 %v2501_v27, %s2638_s25  ;;  %v1399_v55 = vsel %vm2829_vm5, %v1394_v45, %v1398_v25  ;;  %v1522_v56 = vrot.slane %v1520_v47, 4  ;;  %v1414_v57 = vshll.u32 %v2287_v37, 16  ;;  %v1420_v58 = vshll.u32 %v2288_v43, 16  ;;  %v309_v40 = vld [vmem:[%s2777_s21 + $0x1c] sm:$0xf] }
  0x8c   : > { %1339 = vrot.lane.b32.xlu1 %v2502_v38, %s2638_s25  ;;  %v1409_v60 = vsel %vm2829_vm5, %v1404_v49, %v1408_v34  ;;  %v1514_v61 = vrot.slane %v1513_v50, 4  ;;  %v1528_v62 = vrot.slane %v1526_v51, 5  ;;  %v1413_v63 = vrot.slane %v1411_v52, 4  ;;  %v2517_v34 = vld [vmem:[#allocation3 + $0x8] sm:$0xff]   ;;  %v310_v45 = vld [vmem:[%s2777_s21 + $0x20] sm:$0x1] }
  0x8d   : > { %v2308_v3 = vcombine.low %v1399_v55, %v1409_v60  ;;  %v1523_v4 = vor.u32 %v1522_v56, %v1518_v46  ;;  %v1416_v5 = vrot.slane %v1414_v57, 5  ;;  %v2951_v6 = vrot.slane %v1420_v58, 5  ;;  %2388 = vmatprep.subr.bf16.mxu0 %v2517_v34  ;;  %v2331_v50 = vld [vmem:[%s2777_s21 + $0x54] sm:$0xe]  ;;  %2413 = vmatprep.subr.bf16.mxu1 %v2517_v34  ;;  %v2332_v55 = vld [vmem:[%s2777_s21 + $0x58] sm:$0xf] }
  0x8e   : > { %v1519_v10 = vsel %vm2829_vm5, %v1514_v61, %v1518_v46  ;;  %v1424_v11 = vshrl.u32 %v2288_v43, 16  ;;  %v1430_v12 = vshll.u32 %v2289_v48, 16  ;;  %v2344_v13 = vrot.slane %v2328_v53, 9  ;;  %2389 = vmatpush3.bf16.msra.mxu0 %v2517_v34  ;;  %v2333_v56 = vld [vmem:[%s2777_s21 + $0x5c] sm:$0x1]  ;;  %2418 = vmatpush3.bf16.msra.mxu1 %v2517_v34 }
  0x8f   : > { %1331 = vrot.lane.b32.xlu0 %v2503_v54, %s2638_s25  ;;  %v1524_v14 = vrot.slane %v1523_v4, 4  ;;  %v1417_v15 = vor.u32 %v1416_v5, %v1413_v63  ;;  %v1713_v16 = vrot.slane %v2329_v59, 5  ;;  %v1716_v17 = vrot.slane %v2330_v1, 5  ;;  %v2319_v61 = vld [vmem:[%s2777_s21 + $0x24] sm:$0xe] }
  0x90   : > { %1610 = vrot.lane.b32.xlu1 %v2312_v44, %s2639_s26  ;;  %v1426_v19 = vrot.slane %v1424_v11, 4  ;;  %v1432_v20 = vrot.slane %v1430_v12, 5  ;;  %v2340_v21 = vrot.slane %v2316_v8, 9  ;;  %v1685_v22 = vrot.slane %v2317_v9, 5  ;;  %v2320_v4 = vld [vmem:[%s2777_s21 + $0x28] sm:$0xf] }
  0x91   : > { %v1529_v24 = vsel %vm2829_vm5, %v1524_v14, %v1528_v62  ;;  %v1418_v25 = vrot.slane %v1417_v15, 4  ;;  %v1714_v26 = vsel %vm2773_vm2, %v2344_v13, %v1713_v16  ;;  %v1715_v27 = vrot.slane %v1713_v16, 4  ;;  %v2520_v62 = vld [vmem:[#allocation3 + $0x10] sm:$0xff]  }
  0x92   : > { %v2313_v29 = vcombine.low %v1519_v10, %v1529_v24  ;;  %v1427_v30 = vor.u32 %v1426_v19, %v2951_v6  ;;  %v2969_v31 = vsel %vm2773_vm2, %v2340_v21, %v1685_v22  ;;  %v1687_v32 = vrot.slane %v1685_v22, 4  ;;  %v2321_v10 = vld [vmem:[%s2777_s21 + $0x2c] sm:$0x1]  ;;  %2390 = vmatprep.subr.bf16.mxu0 %v2520_v62  ;;  %2414 = vmatprep.subr.bf16.mxu1 %v2520_v62  ;;  %v2521_v24 = vld [vmem:[#allocation3 + $0x18] sm:$0xff]  }
  0x93   : > { %1602 = vrot.lane.b32.xlu0 %v2308_v3, %s2639_s26  ;;  %v1423_v35 = vsel %vm2829_vm5, %v1418_v25, %v2951_v6  ;;  %v1717_v36 = vsel %vm2773_vm2, %v1715_v27, %v1716_v17  ;;  %v1688_v37 = vrot.slane %v2318_v18, 5  ;;  %v474_v38 = vshrl.u32 %v320_v23, 16  ;;  %2391 = vmatpush3.bf16.msra.mxu0 %v2520_v62 }
  0x94   : > { %1612 = vrot.lane.b32.xlu1 %v2313_v29, %s2639_s26  ;;  %v1428_v41 = vrot.slane %v1427_v30, 4  ;;  %v2352_v42 = vcombine.low %v1714_v26, %v1717_v36  ;;  %v477_v43 = vshll.u32 %v320_v23, 16  ;;  %v483_v44 = vshll.u32 %v321_v28, 16  ;;  %2419 = vmatpush3.bf16.msra.mxu1 %v2520_v62  ;;  %v323_v23 = vld [vmem:[%s2777_s21 + $0x54] sm:$0xf] }
  0x95   : > { %v1689_v46 = vsel %vm2773_vm2, %v1687_v32, %v1688_v37  ;;  %v476_v47 = vrot.slane %v474_v38, 4  ;;  %v487_v48 = vshrl.u32 %v321_v28, 16  ;;  %v493_v49 = vshll.u32 %v322_v33, 16  ;;  %v324_v33 = vld [vmem:[%s2777_s21 + $0x58] sm:$0xf]  ;;  %2392 = vmatprep.subr.bf16.mxu0 %v2521_v24  ;;  %2415 = vmatprep.subr.bf16.mxu1 %v2521_v24 }
  0x96   : > { %v1433_v51 = vsel %vm2829_vm5, %v1428_v41, %v1432_v20  ;;  %v2348_v52 = vcombine.low %v2969_v31, %v1689_v46  ;;  %v479_v53 = vrot.slane %v477_v43, 5  ;;  %v485_v54 = vrot.slane %v483_v44, 5  ;;  %v325_v37 = vld [vmem:[%s2777_s21 + $0x5c] sm:$0x1]  ;;  %v311_v43 = vld [vmem:[%s2777_s21 + $0x24] sm:$0xf] }
  0x97   : > { %v2309_v57 = vcombine.low %v1423_v35, %v1433_v51  ;;  %v489_v58 = vrot.slane %v487_v48, 4  ;;  %v495_v59 = vrot.slane %v493_v49, 5  ;;  %v378_v60 = vshrl.u32 %v308_v39, 16  ;;  %2393 = vmatpush3.bf16.msra.mxu0 %v2521_v24  ;;  %v312_v44 = vld [vmem:[%s2777_s21 + $0x28] sm:$0xf] }
  0x98   : > { %1771 = vrot.lane.b32.xlu1 %v2352_v42, %s2640_s27  ;;  %v480_v63 = vor.u32 %v479_v53, %v476_v47  ;;  %v381_v1 = vshll.u32 %v308_v39, 16  ;;  %v387_v2 = vshll.u32 %v309_v40, 16  ;;  %v391_v3 = vshrl.u32 %v309_v40, 16  ;;  %2420 = vmatpush3.bf16.msra.mxu1 %v2521_v24  ;;  %v313_v49 = vld [vmem:[%s2777_s21 + $0x2c] sm:$0x1] }
  0x99   : > { %1604 = vrot.lane.b32.xlu0 %v2309_v57, %s2639_s26  ;;  %v490_v5 = vor.u32 %v489_v58, %v485_v54  ;;  %v380_v6 = vrot.slane %v378_v60, 4  ;;  %v397_v8 = vshll.u32 %v310_v45, 16  ;;  %v2345_v9 = vrot.slane %v2331_v50, 9  ;;  %v596_v50 = vld [vmem:[%s2777_s21 + $0x48] sm:$0xe] }
  0x9a   : > { %v481_v11 = vrot.slane %v480_v63, 4  ;;  %v383_v12 = vrot.slane %v381_v1, 5  ;;  %v389_v13 = vrot.slane %v387_v2, 5  ;;  %v393_v14 = vrot.slane %v391_v3, 4  ;;  %v598_v60 = vld [vmem:[%s2777_s21 + $0x50] sm:$0x1] }
  0x9b   : > { %v491_v15 = vrot.slane %v490_v5, 4  ;;  %v399_v16 = vrot.slane %v397_v8, 5  ;;  %v1720_v17 = vrot.slane %v2332_v55, 5  ;;  %v1723_v18 = vrot.slane %v2333_v56, 5  ;;  %v597_v55 = vld [vmem:[%s2777_s21 + $0x4c] sm:$0xf] }
  0x9c   : > { %v486_v19 = vsel %vm2829_vm5, %v481_v11, %v485_v54  ;;  %v384_v20 = vor.u32 %v383_v12, %v380_v6  ;;  %v394_v21 = vor.u32 %v393_v14, %v389_v13  ;;  %v2341_v22 = vrot.slane %v2319_v61, 9  ;;  %v584_v2 = vld [vmem:[%s2777_s21 + $0x18] sm:$0xe]  ;;  %v585_v8 = vld [vmem:[%s2777_s21 + $0x1c] sm:$0xf] }
  0x9d   : > { %1763 = vrot.lane.b32.xlu0 %v2348_v52, %s2640_s27  ;;  %v496_v25 = vsel %vm2829_vm5, %v491_v15, %v495_v59  ;;  %v1721_v26 = vsel %vm2773_vm2, %v2345_v9, %v1720_v17  ;;  %v1722_v27 = vrot.slane %v1720_v17, 4  ;;  %v1692_v28 = vrot.slane %v2320_v4, 5  ;;  %v601_v24 = vld [vmem:[%s2777_s21 + $0x5c] sm:$0x1] }
  0x9e   : > { %v2142_v29 = vcombine.low %v486_v19, %v496_v25  ;;  %v385_v30 = vrot.slane %v384_v20, 4  ;;  %v395_v31 = vrot.slane %v394_v21, 4  ;;  %v1695_v32 = vrot.slane %v2321_v10, 5 }
  0x9f   : > { %v1724_v34 = vsel %vm2773_vm2, %v1722_v27, %v1723_v18  ;;  %v1693_v35 = vsel %vm2773_vm2, %v2341_v22, %v1692_v28  ;;  %v1694_v36 = vrot.slane %v1692_v28, 4  ;;  %v498_v38 = vshrl.u32 %v323_v23, 16  ;;  %v599_v18 = vld [vmem:[%s2777_s21 + $0x54] sm:$0xe] }
  0xa0   : > { %557 = vrot.lane.b32.xlu1 %v2142_v29, %s2635_s11  ;;  %v390_v39 = vsel %vm2829_vm5, %v385_v30, %v389_v13  ;;  %v400_v40 = vsel %vm2829_vm5, %v395_v31, %v399_v16  ;;  %v2353_v41 = vcombine.low %v1721_v26, %v1724_v34  ;;  %v501_v42 = vshll.u32 %v323_v23, 16  ;;  %v586_v13 = vld [vmem:[%s2777_s21 + $0x20] sm:$0x1]  ;;  %v600_v23 = vld [vmem:[%s2777_s21 + $0x58] sm:$0xf] }
  0xa1   : > { %v2138_v45 = vcombine.low %v390_v39, %v400_v40  ;;  %v1696_v46 = vsel %vm2773_vm2, %v1694_v36, %v1695_v32  ;;  %v500_v47 = vrot.slane %v498_v38, 4  ;;  %v507_v48 = vshll.u32 %v324_v33, 16  ;;  %v587_v29 = vld [vmem:[%s2777_s21 + $0x24] sm:$0xe]  ;;  %v588_v34 = vld [vmem:[%s2777_s21 + $0x28] sm:$0xf] }
  0xa2   : > { %v2349_v51 = vcombine.low %v1693_v35, %v1696_v46  ;;  %v503_v52 = vrot.slane %v501_v42, 5  ;;  %v511_v53 = vshrl.u32 %v324_v33, 16  ;;  %v517_v54 = vshll.u32 %v325_v37, 16  ;;  %v589_v39 = vld [vmem:[%s2777_s21 + $0x2c] sm:$0x1] }
  0xa3   : > { %549 = vrot.lane.b32.xlu0 %v2138_v45, %s2635_s11  ;;  %v509_v56 = vrot.slane %v507_v48, 5  ;;  %v402_v57 = vshrl.u32 %v311_v43, 16  ;;  %v405_v58 = vshll.u32 %v311_v43, 16  ;;  %v411_v59 = vshll.u32 %v312_v44, 16  ;;  %v2204_v40 = vld [vmem:[%s2777_s21 + $0x54] sm:$0xf] }
  0xa4   : > { %1773 = vrot.lane.b32.xlu1 %v2353_v41, %s2640_s27  ;;  %v504_v61 = vor.u32 %v503_v52, %v500_v47  ;;  %v513_v62 = vrot.slane %v511_v53, 4  ;;  %v519_v63 = vrot.slane %v517_v54, 5  ;;  %v415_v1 = vshrl.u32 %v312_v44, 16  ;;  %v2205_v41 = vld [vmem:[%s2777_s21 + $0x58] sm:$0xf] }
  0xa5   : > { %v404_v3 = vrot.slane %v402_v57, 4  ;;  %v407_v4 = vrot.slane %v405_v58, 5  ;;  %v413_v5 = vrot.slane %v411_v59, 5  ;;  %v421_v6 = vshll.u32 %v313_v49, 16  ;;  %v2206_v46 = vld [vmem:[%s2777_s21 + $0x5c] sm:$0x1] }
  0xa6   : > { %v505_v9 = vrot.slane %v504_v61, 4  ;;  %v514_v10 = vor.u32 %v513_v62, %v509_v56  ;;  %v417_v11 = vrot.slane %v415_v1, 4  ;;  %v2150_v12 = vrot.slane %v596_v50, 9 }
  0xa7   : > { %1765 = vrot.lane.b32.xlu0 %v2349_v51, %s2640_s27  ;;  %v408_v14 = vor.u32 %v407_v4, %v404_v3  ;;  %v423_v15 = vrot.slane %v421_v6, 5  ;;  %v673_v16 = vrot.slane %v597_v55, 5  ;;  %v676_v17 = vrot.slane %v598_v60, 5  ;;  %v2192_v55 = vld [vmem:[%s2777_s21 + $0x24] sm:$0xf] }
  0xa8   : > { %v510_v19 = vsel %vm2829_vm5, %v505_v9, %v509_v56  ;;  %v515_v20 = vrot.slane %v514_v10, 4  ;;  %v418_v21 = vor.u32 %v417_v11, %v413_v5  ;;  %v2146_v22 = vrot.slane %v584_v2, 9  ;;  %v2193_v56 = vld [vmem:[%s2777_s21 + $0x28] sm:$0xf]  ;;  %v2194_v6 = vld [vmem:[%s2777_s21 + $0x2c] sm:$0x1] }
  0xa9   : > { %v409_v25 = vrot.slane %v408_v14, 4  ;;  %v674_v26 = vsel %vm2773_vm2, %v2150_v12, %v673_v16  ;;  %v675_v27 = vrot.slane %v673_v16, 4  ;;  %v645_v28 = vrot.slane %v585_v8, 5  ;;  %v2207_v12 = vld [vmem:[%s2777_s21 + $0x60] sm:$0xf] }
  0xaa   : > { %v520_v30 = vsel %vm2829_vm5, %v515_v20, %v519_v63  ;;  %v419_v31 = vrot.slane %v418_v21, 4  ;;  %v648_v32 = vrot.slane %v586_v13, 5  ;;  %v2151_v33 = vrot.slane %v599_v18, 9  ;;  %v2208_v21 = vld [vmem:[%s2777_s21 + $0x64] sm:$0xf] }
  0xab   : > { %v2143_v35 = vcombine.low %v510_v19, %v520_v30  ;;  %v414_v36 = vsel %vm2829_vm5, %v409_v25, %v413_v5  ;;  %v677_v37 = vsel %vm2773_vm2, %v675_v27, %v676_v17  ;;  %v646_v38 = vsel %vm2773_vm2, %v2146_v22, %v645_v28  ;;  %v2504_v22 = vld [vmem:[%s2777_s21 + $0x54] sm:$0xff]  }
  0xac   : > { %v424_v42 = vsel %vm2829_vm5, %v419_v31, %v423_v15  ;;  %v2158_v43 = vcombine.low %v674_v26, %v677_v37  ;;  %v647_v44 = vrot.slane %v645_v28, 4  ;;  %v680_v45 = vrot.slane %v600_v23, 5  ;;  %v2209_v31 = vld [vmem:[%s2777_s21 + $0x68] sm:$0x1]  ;;  %v2195_v37 = vld [vmem:[%s2777_s21 + $0x30] sm:$0xf] }
  0xad   : > { %559 = vrot.lane.b32.xlu1 %v2143_v35, %s2635_s11  ;;  %v2139_v47 = vcombine.low %v414_v36, %v424_v42  ;;  %v683_v48 = vrot.slane %v601_v24, 5  ;;  %v2147_v49 = vrot.slane %v587_v29, 9  ;;  %v652_v50 = vrot.slane %v588_v34, 5  ;;  %v2196_v42 = vld [vmem:[%s2777_s21 + $0x34] sm:$0xf] }
  0xae   : > { %v649_v51 = vsel %vm2773_vm2, %v647_v44, %v648_v32  ;;  %v681_v52 = vsel %vm2773_vm2, %v2151_v33, %v680_v45  ;;  %v682_v53 = vrot.slane %v680_v45, 4  ;;  %v655_v54 = vrot.slane %v589_v39, 5  ;;  %v2505_v32 = vld [vmem:[%s2777_s21 + $0x24] sm:$0xff]   ;;  %v2507_v44 = vld [vmem:[%s2777_s21 + $0x30] sm:$0xff]  }
  0xaf   : > { %551 = vrot.lane.b32.xlu0 %v2139_v47, %s2635_s11  ;;  %v2154_v57 = vcombine.low %v646_v38, %v649_v51  ;;  %v653_v58 = vsel %vm2773_vm2, %v2147_v49, %v652_v50  ;;  %v654_v59 = vrot.slane %v652_v50, 4  ;;  %v1004_v60 = vshrl.u32 %v2204_v40, 16 }
  0xb0   : > { %v684_v61 = vsel %vm2773_vm2, %v682_v53, %v683_v48  ;;  %v1007_v62 = vshll.u32 %v2204_v40, 16  ;;  %v1013_v63 = vshll.u32 %v2205_v41, 16  ;;  %v1017_v1 = vshrl.u32 %v2205_v41, 16 }
  0xb1   : > { %721 = vrot.lane.b32.xlu1 %v2158_v43, %s2634_s10  ;;  %v2159_v2 = vcombine.low %v681_v52, %v684_v61  ;;  %v656_v3 = vsel %vm2773_vm2, %v654_v59, %v655_v54  ;;  %v1006_v4 = vrot.slane %v1004_v60, 4  ;;  %v1023_v5 = vshll.u32 %v2206_v46, 16  ;;  %v2506_v43 = vld [vmem:[%s2777_s21 + $0x60] sm:$0xff]   ;;  %v2197_v52 = vld [vmem:[%s2777_s21 + $0x38] sm:$0x1] }
  0xb2   : > { %v2155_v8 = vcombine.low %v653_v58, %v656_v3  ;;  %v1009_v9 = vrot.slane %v1007_v62, 5  ;;  %v1015_v10 = vrot.slane %v1013_v63, 5  ;;  %v1019_v11 = vrot.slane %v1017_v1, 4  ;;  %v2236_v58 = vld [vmem:[%s2777_s21 + $0x54] sm:$0xe] }
  0xb3   : > { %713 = vrot.lane.b32.xlu0 %v2154_v57, %s2634_s10  ;;  %v1025_v13 = vrot.slane %v1023_v5, 5  ;;  %v908_v14 = vshrl.u32 %v2192_v55, 16  ;;  %v911_v15 = vshll.u32 %v2192_v55, 16  ;;  %v917_v16 = vshll.u32 %v2193_v56, 16  ;;  %v2237_v59 = vld [vmem:[%s2777_s21 + $0x58] sm:$0xf] }
  0xb4   : > { %v1010_v17 = vor.u32 %v1009_v9, %v1006_v4  ;;  %v1020_v18 = vor.u32 %v1019_v11, %v1015_v10  ;;  %v921_v19 = vshrl.u32 %v2193_v56, 16  ;;  %v927_v20 = vshll.u32 %v2194_v6, 16  ;;  %v2238_v1 = vld [vmem:[%s2777_s21 + $0x5c] sm:$0x1]  ;;  %v2226_v9 = vld [vmem:[%s2777_s21 + $0x2c] sm:$0x1] }
  0xb5   : > { %723 = vrot.lane.b32.xlu1 %v2159_v2, %s2634_s10  ;;  %v910_v23 = vrot.slane %v908_v14, 4  ;;  %v913_v24 = vrot.slane %v911_v15, 5  ;;  %v919_v25 = vrot.slane %v917_v16, 5  ;;  %v1028_v26 = vshrl.u32 %v2207_v12, 16  ;;  %v2224_v2 = vld [vmem:[%s2777_s21 + $0x24] sm:$0xe] }
  0xb6   : > { %v1011_v27 = vrot.slane %v1010_v17, 4  ;;  %v1021_v28 = vrot.slane %v1020_v18, 4  ;;  %v923_v29 = vrot.slane %v921_v19, 4  ;;  %v929_v30 = vrot.slane %v927_v20, 5  ;;  %v2239_v14 = vld [vmem:[%s2777_s21 + $0x60] sm:$0xe] }
  0xb7   : > { %715 = vrot.lane.b32.xlu0 %v2155_v8, %s2634_s10  ;;  %v914_v33 = vor.u32 %v913_v24, %v910_v23  ;;  %v1030_v34 = vrot.slane %v1028_v26, 4  ;;  %v1031_v35 = vshll.u32 %v2207_v12, 16  ;;  %v1037_v36 = vshll.u32 %v2208_v21, 16  ;;  %v2225_v8 = vld [vmem:[%s2777_s21 + $0x28] sm:$0xf] }
  0xb8   : > { %v1016_v38 = vsel %vm2829_vm5, %v1011_v27, %v1015_v10  ;;  %v1026_v39 = vsel %vm2829_vm5, %v1021_v28, %v1025_v13  ;;  %v924_v40 = vor.u32 %v923_v29, %v919_v25  ;;  %v1041_v41 = vshrl.u32 %v2208_v21, 16  ;;  %v2240_v19 = vld [vmem:[%s2777_s21 + $0x64] sm:$0xf]  ;;  %v2241_v20 = vld [vmem:[%s2777_s21 + $0x68] sm:$0x1] }
  0xb9   : > { %814 = vrot.lane.b32.xlu1 %v2504_v22, %s2633_s9  ;;  %v2216_v45 = vcombine.low %v1016_v38, %v1026_v39  ;;  %v915_v46 = vrot.slane %v914_v33, 4  ;;  %v1033_v47 = vrot.slane %v1031_v35, 5  ;;  %v1039_v48 = vrot.slane %v1037_v36, 5 }
  0xba   : > { %v925_v49 = vrot.slane %v924_v40, 4  ;;  %v1043_v50 = vrot.slane %v1041_v41, 4  ;;  %v1047_v51 = vshll.u32 %v2209_v31, 16  ;;  %v932_v53 = vshrl.u32 %v2195_v37, 16  ;;  %v2228_v31 = vld [vmem:[%s2777_s21 + $0x34] sm:$0xf] }
  0xbb   : > { %806 = vrot.lane.b32.xlu0 %v2505_v32, %s2633_s9  ;;  %v920_v54 = vsel %vm2829_vm5, %v915_v46, %v919_v25  ;;  %v1034_v55 = vor.u32 %v1033_v47, %v1030_v34  ;;  %v935_v56 = vshll.u32 %v2195_v37, 16  ;;  %v941_v57 = vshll.u32 %v2196_v42, 16  ;;  %v2227_v25 = vld [vmem:[%s2777_s21 + $0x30] sm:$0xe]  ;;  %v2229_v32 = vld [vmem:[%s2777_s21 + $0x38] sm:$0x1] }
  0xbc   : > { %v930_v60 = vsel %vm2829_vm5, %v925_v49, %v929_v30  ;;  %v1044_v61 = vor.u32 %v1043_v50, %v1039_v48  ;;  %v1049_v62 = vrot.slane %v1047_v51, 5  ;;  %v934_v63 = vrot.slane %v932_v53, 4  ;;  %v2302_v37 = vld [vmem:[%s2777_s21 + $0x60] sm:$0xf]  ;;  %v2303_v46 = vld [vmem:[%s2777_s21 + $0x64] sm:$0xf] }
  0xbd   : > { %816 = vrot.lane.b32.xlu1 %v2506_v43, %s2633_s9  ;;  %v2212_v3 = vcombine.low %v920_v54, %v930_v60  ;;  %v1035_v4 = vrot.slane %v1034_v55, 4  ;;  %v937_v5 = vrot.slane %v935_v56, 5  ;;  %v943_v6 = vrot.slane %v941_v57, 5  ;;  %v2304_v47 = vld [vmem:[%s2777_s21 + $0x68] sm:$0x1] }
  0xbe   : > { %v1045_v10 = vrot.slane %v1044_v61, 4  ;;  %v945_v11 = vshrl.u32 %v2196_v42, 16  ;;  %v951_v12 = vshll.u32 %v2197_v52, 16  ;;  %v2248_v13 = vrot.slane %v2236_v58, 9  ;;  %v2291_v54 = vld [vmem:[%s2777_s21 + $0x34] sm:$0xf] }
  0xbf   : > { %808 = vrot.lane.b32.xlu0 %v2507_v44, %s2633_s9  ;;  %v1040_v15 = vsel %vm2829_vm5, %v1035_v4, %v1039_v48  ;;  %v938_v16 = vor.u32 %v937_v5, %v934_v63  ;;  %v1200_v17 = vrot.slane %v2237_v59, 5  ;;  %v1203_v18 = vrot.slane %v2238_v1, 5  ;;  %v2290_v48 = vld [vmem:[%s2777_s21 + $0x30] sm:$0xf]  ;;  %v2292_v5 = vld [vmem:[%s2777_s21 + $0x38] sm:$0x1] }
  0xc0   : > { %v1050_v21 = vsel %vm2829_vm5, %v1045_v10, %v1049_v62  ;;  %v947_v22 = vrot.slane %v945_v11, 4  ;;  %v953_v23 = vrot.slane %v951_v12, 5  ;;  %v2244_v24 = vrot.slane %v2224_v2, 9  ;;  %v3106_v26 = vpop.permute.xlu1 %810  ;;  %v3124_v49 = vpop.permute.xlu0 %802  ;;  %v2306_v12 = vld [vmem:[%s2777_s21 + $0x70] sm:$0xf] }
  0xc1   : > { %1087 = vrot.lane.b32.xlu1 %v2216_v45, %s2636_s17  ;;  %v2217_v27 = vcombine.low %v1040_v15, %v1050_v21  ;;  %v939_v28 = vrot.slane %v938_v16, 4  ;;  %v1201_v29 = vsel %vm2773_vm2, %v2248_v13, %v1200_v17  ;;  %v1202_v30 = vrot.slane %v1200_v17, 4 }
  0xc2   : > { %v948_v33 = vor.u32 %v947_v22, %v943_v6  ;;  %v1172_v34 = vrot.slane %v2225_v8, 5  ;;  %v1175_v35 = vrot.slane %v2226_v9, 5  ;;  %v2249_v36 = vrot.slane %v2239_v14, 9 }
  0xc3   : > { %1079 = vrot.lane.b32.xlu0 %v2212_v3, %s2636_s17  ;;  %v944_v38 = vsel %vm2829_vm5, %v939_v28, %v943_v6  ;;  %v1204_v39 = vsel %vm2773_vm2, %v1202_v30, %v1203_v18  ;;  %v1207_v40 = vrot.slane %v2240_v19, 5  ;;  %v1210_v41 = vrot.slane %v2241_v20, 5  ;;  %v2305_v6 = vld [vmem:[%s2777_s21 + $0x6c] sm:$0xf] }
  0xc4   : > { %v949_v42 = vrot.slane %v948_v33, 4  ;;  %v2256_v43 = vcombine.low %v1201_v29, %v1204_v39  ;;  %v1173_v44 = vsel %vm2773_vm2, %v2244_v24, %v1172_v34  ;;  %v1174_v45 = vrot.slane %v1172_v34, 4  ;;  %v3134_v59 = vpop.permute.xlu1 %812  ;;  %v3147_v17 = vpop.permute.xlu0 %804  ;;  %v2508_v29 = vld [vmem:[%s2777_s21 + $0x60] sm:$0xff]   ;;  %v2293_v34 = vld [vmem:[%s2777_s21 + $0x3c] sm:$0xf]  ;;  %v2509_v39 = vld [vmem:[%s2777_s21 + $0x30] sm:$0xff]  }
  0xc5   : > { %1089 = vrot.lane.b32.xlu1 %v2217_v27, %s2636_s17  ;;  %v1208_v50 = vsel %vm2773_vm2, %v2249_v36, %v1207_v40  ;;  %v1209_v51 = vrot.slane %v1207_v40, 4  ;;  %v2245_v52 = vrot.slane %v2227_v25, 9  ;;  %v1179_v53 = vrot.slane %v2228_v31, 5  ;;  %v2307_v27 = vld [vmem:[%s2777_s21 + $0x74] sm:$0x1] }
  0xc6   : > { %v954_v55 = vsel %vm2829_vm5, %v949_v42, %v953_v23  ;;  %v1176_v56 = vsel %vm2773_vm2, %v1174_v45, %v1175_v35  ;;  %v1182_v57 = vrot.slane %v2229_v32, 5  ;;  %v1531_v58 = vshrl.u32 %v2302_v37, 16  ;;  %v2510_v45 = vld [vmem:[%s2777_s21 + $0x6c] sm:$0xff]  }
  0xc7   : > { %v2213_v60 = vcombine.low %v944_v38, %v954_v55  ;;  %v2252_v61 = vcombine.low %v1173_v44, %v1176_v56  ;;  %v1211_v62 = vsel %vm2773_vm2, %v1209_v51, %v1210_v41  ;;  %v1180_v63 = vsel %vm2773_vm2, %v2245_v52, %v1179_v53  ;;  %v2294_v44 = vld [vmem:[%s2777_s21 + $0x40] sm:$0xf] }
  0xc8   : > { %v2257_v1 = vcombine.low %v1208_v50, %v1211_v62  ;;  %v1181_v2 = vrot.slane %v1179_v53, 4  ;;  %v1533_v3 = vrot.slane %v1531_v58, 4  ;;  %v1534_v4 = vshll.u32 %v2302_v37, 16  ;;  %v3150_v28 = vpop.permute.xlu1 %717 }
  0xc9   : > { %1081 = vrot.lane.b32.xlu0 %v2213_v60, %s2636_s17  ;;  %1248 = vrot.lane.b32.xlu1 %v2256_v43, %s2637_s22  ;;  %v1540_v8 = vshll.u32 %v2303_v46, 16  ;;  %v1544_v9 = vshrl.u32 %v2303_v46, 16  ;;  %v1550_v10 = vshll.u32 %v2304_v47, 16  ;;  %v1435_v11 = vshrl.u32 %v2290_v48, 16  ;;  %v2295_v60 = vld [vmem:[%s2777_s21 + $0x44] sm:$0x1] }
  0xca   : > { %v1183_v13 = vsel %vm2773_vm2, %v1181_v2, %v1182_v57  ;;  %v1536_v14 = vrot.slane %v1534_v4, 5  ;;  %v1438_v15 = vshll.u32 %v2290_v48, 16  ;;  %v1444_v16 = vshll.u32 %v2291_v54, 16  ;;  %v3161_v51 = vpop.permute.xlu0 %709 }
  0xcb   : > { %v2253_v18 = vcombine.low %v1180_v63, %v1183_v13  ;;  %v1542_v19 = vrot.slane %v1540_v8, 5  ;;  %v1546_v20 = vrot.slane %v1544_v9, 4  ;;  %v1552_v21 = vrot.slane %v1550_v10, 5  ;;  %v2511_v63 = vld [vmem:[%s2777_s21 + $0x3c] sm:$0xff]  }
  0xcc   : > { %v1537_v22 = vor.u32 %v1536_v14, %v1533_v3  ;;  %v1437_v23 = vrot.slane %v1435_v11, 4  ;;  %v1440_v24 = vrot.slane %v1438_v15, 5  ;;  %v1446_v25 = vrot.slane %v1444_v16, 5  ;;  %v3170_v62 = vpop.permute.xlu1 %719  ;;  %v2335_v11 = vld [vmem:[%s2777_s21 + $0x64] sm:$0xf] }
  0xcd   : > { %1240 = vrot.lane.b32.xlu0 %v2252_v61, %s2637_s22  ;;  %1250 = vrot.lane.b32.xlu1 %v2257_v1, %s2637_s22  ;;  %v1547_v30 = vor.u32 %v1546_v20, %v1542_v19  ;;  %v1448_v31 = vshrl.u32 %v2291_v54, 16  ;;  %v1454_v32 = vshll.u32 %v2292_v5, 16  ;;  %v1555_v33 = vshrl.u32 %v2305_v6, 16  ;;  %v2334_v5 = vld [vmem:[%s2777_s21 + $0x60] sm:$0xe] }
  0xce   : > { %v1538_v35 = vrot.slane %v1537_v22, 4  ;;  %v1441_v36 = vor.u32 %v1440_v24, %v1437_v23  ;;  %v1558_v37 = vshll.u32 %v2305_v6, 16  ;;  %v1564_v38 = vshll.u32 %v2306_v12, 16  ;;  %v2336_v16 = vld [vmem:[%s2777_s21 + $0x68] sm:$0x1] }
  0xcf   : > { %v1548_v40 = vrot.slane %v1547_v30, 4  ;;  %v1450_v41 = vrot.slane %v1448_v31, 4  ;;  %v1456_v42 = vrot.slane %v1454_v32, 5  ;;  %v1557_v43 = vrot.slane %v1555_v33, 4  ;;  %v2323_v23 = vld [vmem:[%s2777_s21 + $0x34] sm:$0xf] }
  0xd0   : > { %v1543_v46 = vsel %vm2829_vm5, %v1538_v35, %v1542_v19  ;;  %v1442_v47 = vrot.slane %v1441_v36, 4  ;;  %v1560_v48 = vrot.slane %v1558_v37, 5  ;;  %v1566_v50 = vrot.slane %v1564_v38, 5  ;;  %v2324_v24 = vld [vmem:[%s2777_s21 + $0x38] sm:$0x1] }
  0xd1   : > { %1242 = vrot.lane.b32.xlu0 %v2253_v18, %s2637_s22  ;;  %1341 = vrot.lane.b32.xlu1 %v2508_v29, %s2638_s25  ;;  %v1553_v52 = vsel %vm2829_vm5, %v1548_v40, %v1552_v21  ;;  %v1451_v53 = vor.u32 %v1450_v41, %v1446_v25  ;;  %v1568_v54 = vshrl.u32 %v2306_v12, 16  ;;  %v1574_v55 = vshll.u32 %v2307_v27, 16  ;;  %v2322_v18 = vld [vmem:[%s2777_s21 + $0x30] sm:$0xe]  ;;  %v2337_v32 = vld [vmem:[%s2777_s21 + $0x6c] sm:$0xe] }
  0xd2   : > { %v2314_v56 = vcombine.low %v1543_v46, %v1553_v52  ;;  %v1447_v57 = vsel %vm2829_vm5, %v1442_v47, %v1446_v25  ;;  %v1561_v58 = vor.u32 %v1560_v48, %v1557_v43  ;;  %v1459_v61 = vshrl.u32 %v2293_v34, 16  ;;  %v3185_v25 = vpop.permute.xlu0 %711  ;;  %v2338_v37 = vld [vmem:[%s2777_s21 + $0x70] sm:$0xf]  ;;  %v2339_v43 = vld [vmem:[%s2777_s21 + $0x74] sm:$0x1]  ;;  %v2514_v52 = vld [vmem:[%s2777_s21 + $0x3c] sm:$0xff]  }
  0xd3   : > { %v1452_v1 = vrot.slane %v1451_v53, 4  ;;  %v1570_v2 = vrot.slane %v1568_v54, 4  ;;  %v1576_v3 = vrot.slane %v1574_v55, 5  ;;  %v1462_v4 = vshll.u32 %v2293_v34, 16  ;;  %v2512_v48 = vld [vmem:[%s2777_s21 + $0xc] sm:$0xff]   ;;  %v2519_v55 = vld [vmem:[%s2777_s21 + $0x18] sm:$0xff]  }
  0xd4   : > { %v1562_v6 = vrot.slane %v1561_v58, 4  ;;  %v1461_v8 = vrot.slane %v1459_v61, 4  ;;  %v1468_v9 = vshll.u32 %v2294_v44, 16  ;;  %v1472_v10 = vshrl.u32 %v2294_v44, 16  ;;  %v548_v38 = vpop.permute.xlu1 %547  ;;  %v2515_v53 = vld [vmem:[%s2777_s21 + $0x30] sm:$0xff]   ;;  %v2518_v54 = vld [vmem:[%s2777_s21 + $0x48] sm:$0xff]  }
  0xd5   : > { %1333 = vrot.lane.b32.xlu0 %v2509_v39, %s2638_s25  ;;  %1343 = vrot.lane.b32.xlu1 %v2510_v45, %s2638_s25  ;;  %v1457_v12 = vsel %vm2829_vm5, %v1452_v1, %v1456_v42  ;;  %v1571_v13 = vor.u32 %v1570_v2, %v1566_v50  ;;  %v1464_v14 = vrot.slane %v1462_v4, 5  ;;  %v1478_v15 = vshll.u32 %v2295_v60, 16  ;;  %v2325_v61 = vld [vmem:[%s2777_s21 + $0x3c] sm:$0xe]  ;;  %295 = vst.msk [vmem:[#allocation2 + $0x8] sm:$0xff] %vm293_vm6, %v2512_v48 }
  0xd6   : > { %v2310_v19 = vcombine.low %v1447_v57, %v1457_v12  ;;  %v1567_v20 = vsel %vm2829_vm5, %v1562_v6, %v1566_v50  ;;  %v1470_v21 = vrot.slane %v1468_v9, 5  ;;  %v1474_v22 = vrot.slane %v1472_v10, 4  ;;  %v2513_v50 = vld [vmem:[%s2777_s21] sm:$0xff]   ;;  %299 = vst.msk [vmem:[#allocation2 + $0x28] sm:$0xff] %vm293_vm6, %v2514_v52  ;;  %298 = vst.msk [vmem:[#allocation2 + $0x20] sm:$0xff] %vm293_vm6, %v2515_v53 }
  0xd7   : > { %v1572_v27 = vrot.slane %v1571_v13, 4  ;;  %v1465_v29 = vor.u32 %v1464_v14, %v1461_v8  ;;  %v1480_v30 = vrot.slane %v1478_v15, 5  ;;  %v2346_v31 = vrot.slane %v2334_v5, 9  ;;  %v2327_v5 = vld [vmem:[%s2777_s21 + $0x44] sm:$0x1]  ;;  %v2522_v8 = vld [vmem:[%s2777_s21 + $0x54] sm:$0xff]  }
  0xd8   : > { %v1475_v33 = vor.u32 %v1474_v22, %v1470_v21  ;;  %v1727_v34 = vrot.slane %v2335_v11, 5  ;;  %v1730_v35 = vrot.slane %v2336_v16, 5  ;;  %v2342_v36 = vrot.slane %v2322_v18, 9  ;;  %v546_v6 = vpop.permute.xlu0 %545  ;;  %v2523_v9 = vld [vmem:[%s2777_s21 + $0x24] sm:$0xff]   ;;  %294 = vst.msk [vmem:[#allocation2] sm:$0xff] %vm293_vm6, %v2513_v50  ;;  %300 = vst.msk [vmem:[#allocation2 + $0x30] sm:$0xff] %vm293_vm6, %v2518_v54 }
  0xd9   : > { %1335 = vrot.lane.b32.xlu0 %v2511_v63, %s2638_s25  ;;  %1614 = vrot.lane.b32.xlu1 %v2314_v56, %s2639_s26  ;;  %v1577_v39 = vsel %vm2829_vm5, %v1572_v27, %v1576_v3  ;;  %v1466_v40 = vrot.slane %v1465_v29, 4  ;;  %v1699_v41 = vrot.slane %v2323_v23, 5  ;;  %v1702_v42 = vrot.slane %v2324_v24, 5  ;;  %v2326_v63 = vld [vmem:[%s2777_s21 + $0x40] sm:$0xf]  ;;  %296 = vst.msk [vmem:[#allocation2 + $0x10] sm:$0xff] %vm293_vm6, %v2519_v55 }
  0xda   : > { %v2315_v44 = vcombine.low %v1567_v20, %v1577_v39  ;;  %v1476_v45 = vrot.slane %v1475_v33, 4  ;;  %v1728_v46 = vsel %vm2773_vm2, %v2346_v31, %v1727_v34  ;;  %v1729_v47 = vrot.slane %v1727_v34, 4  ;;  %301 = vst.msk [vmem:[#allocation2 + $0x38] sm:$0xff] %vm293_vm6, %v2522_v8  ;;  %297 = vst.msk [vmem:[#allocation2 + $0x18] sm:$0xff] %vm293_vm6, %v2523_v9 }
  0xdb   : > { %v1471_v56 = vsel %vm2829_vm5, %v1466_v40, %v1470_v21  ;;  %v1700_v57 = vsel %vm2773_vm2, %v2342_v36, %v1699_v41  ;;  %v1701_v58 = vrot.slane %v1699_v41, 4  ;;  %v2347_v60 = vrot.slane %v2337_v32, 9  ;;  %v2524_v21 = vld [vmem:[#allocation3 + $0x20] ss:$0 sps:$4 sm:$0xff]   ;;  %571 = vst.msk [vmem:[#allocation2 + $0x8] sm:$0xff] %vm569_vm7, %v548_v38  ;;  %570 = vst.msk [vmem:[#allocation2] sm:$0xff] %vm569_vm7, %v546_v6 }
  0xdc   : > { %v1481_v1 = vsel %vm2829_vm5, %v1476_v45, %v1480_v30  ;;  %v1731_v2 = vsel %vm2773_vm2, %v1729_v47, %v1730_v35  ;;  %v1734_v3 = vrot.slane %v2338_v37, 5  ;;  %v1737_v4 = vrot.slane %v2339_v43, 5  ;;  %v556_v16 = vpop.permute.xlu1 %555  ;;  %735 = vst.msk [vmem:[#allocation2 + $0x8] sm:$0xff] %vm733_vm8, %v3185_v25  ;;  %734 = vst.msk [vmem:[#allocation2] sm:$0xff] %vm733_vm8, %v3161_v51  ;;  %2422 = vmatprep.subr.msk.bf16.mxu0 %vm1872_vm10, %v2524_v21 }
  0xdd   : > { %1606 = vrot.lane.b32.xlu0 %v2310_v19, %s2639_s26  ;;  %1616 = vrot.lane.b32.xlu1 %v2315_v44, %s2639_s26  ;;  %v2311_v10 = vcombine.low %v1471_v56, %v1481_v1  ;;  %v2354_v11 = vcombine.low %v1728_v46, %v1731_v2  ;;  %v1703_v12 = vsel %vm2773_vm2, %v1701_v58, %v1702_v42  ;;  %v2343_v14 = vrot.slane %v2325_v61, 9 }
  0xde   : > { %v1735_v7 = vsel %vm2773_vm2, %v2347_v60, %v1734_v3  ;;  %v1736_v13 = vrot.slane %v1734_v3, 4  ;;  %v1706_v15 = vrot.slane %v2326_v63, 5  ;;  %v1709_v18 = vrot.slane %v2327_v5, 5  ;;  %575 = vst.msk [vmem:[#allocation2 + $0x28] sm:$0xff] %vm569_vm7, %v556_v16  ;;  %2423 = vmatprep.subr.msk.bf16.mxu1 %vm1872_vm10, %v2524_v21 }
  0xdf   : > { %v2350_v22 = vcombine.low %v1700_v57, %v1703_v12  ;;  %739 = vst.msk [vmem:[#allocation2 + $0x28] sm:$0xff] %vm733_vm8, %v3170_v62  ;;  %v1874_v0 = vsel %vm1872_vm10, %v2524_v21, 0 }
  0xe0   : > { %v1738_v19 = vsel %vm2773_vm2, %v1736_v13, %v1737_v4  ;;  %v1708_v20 = vrot.slane %v1706_v15, 4  ;;  %v1707_v24 = vsel %vm2773_vm2, %v2343_v14, %v1706_v15  ;;  %827 = vst.msk [vmem:[#allocation2] sm:$0xff] %vm826_vm9, %v3124_v49  ;;  %828 = vst.msk [vmem:[#allocation2 + $0x8] sm:$0xff] %vm826_vm9, %v3147_v17  ;;  %2395 = vmatpush3.bf16.msra.mxu0 %v1874_v0  ;;  %2421 = vmatpush3.bf16.msra.mxu1 %v1874_v0 }
  0xe1   : > { %1608 = vrot.lane.b32.xlu0 %v2311_v10, %s2639_s26  ;;  %1775 = vrot.lane.b32.xlu1 %v2354_v11, %s2640_s27  ;;  %v2355_v23 = vcombine.low %v1735_v7, %v1738_v19  ;;  %832 = vst.msk [vmem:[#allocation2 + $0x28] sm:$0xff] %vm826_vm9, %v3134_v59 }
  0xe2   : > { %v1710_v27 = vsel %vm2773_vm2, %v1708_v20, %v1709_v18  ;;  %v554_v29 = vpop.permute.xlu0 %553 }
  0xe3   : > { %574 = vst.msk [vmem:[#allocation2 + $0x20] sm:$0xff] %vm569_vm7, %v554_v29  ;;  %v2351_v51 = vcombine.low %v1707_v24, %v1710_v27  ;;  %v2356_v27 = vld [vmem:[#allocation5] ss:$0 sm:$0xff] }
  0xe4   : > { %738 = vst.msk [vmem:[#allocation2 + $0x20] sm:$0xff] %vm733_vm8, %v3150_v28 }
  0xe5   : > { %1767 = vrot.lane.b32.xlu0 %v2350_v22, %s2640_s27  ;;  %1777 = vrot.lane.b32.xlu1 %v2355_v23, %s2640_s27  ;;  %831 = vst.msk [vmem:[#allocation2 + $0x20] sm:$0xff] %vm826_vm9, %v3106_v26 }
  0xe6   : > { %v1084_v49 = vpop.permute.xlu1 %1083 }
  0xe7   : > { %1104 = vst.msk [vmem:[#allocation2 + $0x20] sm:$0xff] %vm1099_vm11, %v1084_v49 }
  0xe9   : > { %1769 = vrot.lane.b32.xlu0 %v2351_v51, %s2640_s27  ;;  %v1076_v59 = vpop.permute.xlu0 %1075 }
  0xea   : > { %1100 = vst.msk [vmem:[#allocation2] sm:$0xff] %vm1099_vm11, %v1076_v59 }
  0xee   : > { %v1086_v17 = vpop.permute.xlu1 %1085 }
  0xef   : > { %1105 = vst.msk [vmem:[#allocation2 + $0x28] sm:$0xff] %vm1099_vm11, %v1086_v17 }
  0xf1   : > { %v1078_v28 = vpop.permute.xlu0 %1077 }
  0xf2   : > { %1101 = vst.msk [vmem:[#allocation2 + $0x8] sm:$0xff] %vm1099_vm11, %v1078_v28  ;;  %v1245_v62 = vpop.permute.xlu1 %1244 }
  0xf3   : > { %1265 = vst.msk [vmem:[#allocation2 + $0x20] sm:$0xff] %vm1260_vm12, %v1245_v62 }
  0xf5   : > { %v1237_v26 = vpop.permute.xlu0 %1236 }
  0xf6   : > { %1261 = vst.msk [vmem:[#allocation2] sm:$0xff] %vm1260_vm12, %v1237_v26  ;;  %v1247_v25 = vpop.permute.xlu1 %1246 }
  0xf7   : > { %1266 = vst.msk [vmem:[#allocation2 + $0x28] sm:$0xff] %vm1260_vm12, %v1247_v25 }
  0xf9   : > { %v1239_v30 = vpop.permute.xlu0 %1238 }
  0xfa   : > { %1262 = vst.msk [vmem:[#allocation2 + $0x8] sm:$0xff] %vm1260_vm12, %v1239_v30  ;;  %v1338_v31 = vpop.permute.xlu1 %1337 }
  0xfb   : > { %1358 = vst.msk [vmem:[#allocation2 + $0x20] sm:$0xff] %vm1353_vm13, %v1338_v31 }
  0xfd   : > { %v1330_v32 = vpop.permute.xlu0 %1329 }
  0xfe   : > { %1354 = vst.msk [vmem:[#allocation2] sm:$0xff] %vm1353_vm13, %v1330_v32  ;;  %v1340_v33 = vpop.permute.xlu1 %1339 }
  0xff   : > { %1359 = vst.msk [vmem:[#allocation2 + $0x28] sm:$0xff] %vm1353_vm13, %v1340_v33 }
 0x101   : > { %v1332_v34 = vpop.permute.xlu0 %1331 }
 0x102   : > { %1355 = vst.msk [vmem:[#allocation2 + $0x8] sm:$0xff] %vm1353_vm13, %v1332_v34  ;;  %v1611_v35 = vpop.permute.xlu1 %1610 }
 0x103   : > { %1631 = vst.msk [vmem:[#allocation2 + $0x20] sm:$0xff] %vm1626_vm14, %v1611_v35 }
 0x105   : > { %v1603_v36 = vpop.permute.xlu0 %1602 }
 0x106   : > { %1627 = vst.msk [vmem:[#allocation2] sm:$0xff] %vm1626_vm14, %v1603_v36  ;;  %v1613_v37 = vpop.permute.xlu1 %1612 }
 0x107   : > { %1632 = vst.msk [vmem:[#allocation2 + $0x28] sm:$0xff] %vm1626_vm14, %v1613_v37 }
 0x10a   : > { %v1772_v38 = vpop.permute.xlu1 %1771 }
 0x10b   : > { %v1605_v39 = vpop.permute.xlu0 %1604  ;;  %1792 = vst.msk [vmem:[#allocation2 + $0x20] sm:$0xff] %vm1787_vm15, %v1772_v38 }
 0x10c   : > { %1628 = vst.msk [vmem:[#allocation2 + $0x8] sm:$0xff] %vm1626_vm14, %v1605_v39 }
 0x10f   : > { %v1764_v40 = vpop.permute.xlu0 %1763 }
 0x110   : > { %1788 = vst.msk [vmem:[#allocation2] sm:$0xff] %vm1787_vm15, %v1764_v40 }
 0x112   : > { %v558_v41 = vpop.permute.xlu1 %557  ;;  %v1800_v42 = vld [vmem:[#allocation2 + $0x20] sm:$0xff] }
 0x113   : > { %576 = vst.msk [vmem:[#allocation2 + $0x30] sm:$0xff] %vm569_vm7, %v558_v41  ;;  %2404 = vmatprep.mubr.msk.bf16.mxu1 %vm1847_vm0, %v1800_v42 }
 0x115   : > { %v550_v43 = vpop.permute.xlu0 %549 }
 0x116   : > { %572 = vst.msk [vmem:[#allocation2 + $0x10] sm:$0xff] %vm569_vm7, %v550_v43  ;;  %v1774_v44 = vpop.permute.xlu1 %1773 }
 0x117   : > { %1793 = vst.msk [vmem:[#allocation2 + $0x28] sm:$0xff] %vm1787_vm15, %v1774_v44  ;;  %v1796_v45 = vld [vmem:[#allocation2] sm:$0xff] }
 0x118   : > { %2396 = vmatprep.mubr.msk.bf16.mxu0 %vm1847_vm0, %v1796_v45 }
 0x119   : > { %v1766_v46 = vpop.permute.xlu0 %1765 }
 0x11a   : > { %1789 = vst.msk [vmem:[#allocation2 + $0x8] sm:$0xff] %vm1787_vm15, %v1766_v46 }
 0x11e   : > { %v1801_v47 = vld [vmem:[#allocation2 + $0x28] sm:$0xff] }
 0x11f   : > { %v560_v48 = vpop.permute.xlu1 %559  ;;  %2405 = vmatmul.mubr.msk.bf16.vlgmr.msra.gmra.mrb[0].mxu1 %vm1847_vm0, %v1801_v47 }
 0x120   : > { %577 = vst.msk [vmem:[#allocation2 + $0x38] sm:$0xff] %vm569_vm7, %v560_v48 }
 0x121   : > { %v552_v50 = vpop.permute.xlu0 %551  ;;  %v1797_v52 = vld [vmem:[#allocation2 + $0x8] sm:$0xff] }
 0x122   : > { %573 = vst.msk [vmem:[#allocation2 + $0x18] sm:$0xff] %vm569_vm7, %v552_v50  ;;  %2397 = vmatmul.mubr.msk.bf16.vlgmr.msra.gmra.mrb[0].mxu0 %vm1847_vm0, %v1797_v52 }
 0x123   : > { %v722_v53 = vpop.permute.xlu1 %721 }
 0x124   : > { %740 = vst.msk [vmem:[#allocation2 + $0x30] sm:$0xff] %vm733_vm8, %v722_v53 }
 0x125   : > { %v714_v54 = vpop.permute.xlu0 %713 }
 0x126   : > { %736 = vst.msk [vmem:[#allocation2 + $0x10] sm:$0xff] %vm733_vm8, %v714_v54 }
 0x127   : > { %v724_v55 = vpop.permute.xlu1 %723 }
 0x128   : > { %741 = vst.msk [vmem:[#allocation2 + $0x38] sm:$0xff] %vm733_vm8, %v724_v55 }
 0x129   : > { %v716_v56 = vpop.permute.xlu0 %715 }
 0x12a   : > { %737 = vst.msk [vmem:[#allocation2 + $0x18] sm:$0xff] %vm733_vm8, %v716_v56 }
 0x12b   : > { %v815_v57 = vpop.permute.xlu1 %814 }
 0x12c   : > { %833 = vst.msk [vmem:[#allocation2 + $0x30] sm:$0xff] %vm826_vm9, %v815_v57 }
 0x12d   : > { %v807_v58 = vpop.permute.xlu0 %806 }
 0x12e   : > { %829 = vst.msk [vmem:[#allocation2 + $0x10] sm:$0xff] %vm826_vm9, %v807_v58 }
 0x12f   : > { %v817_v60 = vpop.permute.xlu1 %816 }
 0x130   : > { %834 = vst.msk [vmem:[#allocation2 + $0x38] sm:$0xff] %vm826_vm9, %v817_v60 }
 0x131   : > { %v809_v61 = vpop.permute.xlu0 %808 }
 0x132   : > { %830 = vst.msk [vmem:[#allocation2 + $0x18] sm:$0xff] %vm826_vm9, %v809_v61 }
 0x133   : > { %v1088_v63 = vpop.permute.xlu1 %1087 }
 0x134   : > { %1106 = vst.msk [vmem:[#allocation2 + $0x30] sm:$0xff] %vm1099_vm11, %v1088_v63 }
 0x135   : > { %v1080_v1 = vpop.permute.xlu0 %1079 }
 0x136   : > { %1102 = vst.msk [vmem:[#allocation2 + $0x10] sm:$0xff] %vm1099_vm11, %v1080_v1 }
 0x137   : > { %v1090_v2 = vpop.permute.xlu1 %1089 }
 0x138   : > { %1107 = vst.msk [vmem:[#allocation2 + $0x38] sm:$0xff] %vm1099_vm11, %v1090_v2 }
 0x13b   : > { %v1082_v3 = vpop.permute.xlu0 %1081  ;;  %v1249_v4 = vpop.permute.xlu1 %1248 }
 0x13c   : > { %1103 = vst.msk [vmem:[#allocation2 + $0x18] sm:$0xff] %vm1099_vm11, %v1082_v3 }
 0x13d   : > { %1267 = vst.msk [vmem:[#allocation2 + $0x30] sm:$0xff] %vm1260_vm12, %v1249_v4 }
 0x13f   : > { %v1241_v5 = vpop.permute.xlu0 %1240  ;;  %v1251_v6 = vpop.permute.xlu1 %1250 }
 0x140   : > { %1263 = vst.msk [vmem:[#allocation2 + $0x10] sm:$0xff] %vm1260_vm12, %v1241_v5  ;;  %1268 = vst.msk [vmem:[#allocation2 + $0x38] sm:$0xff] %vm1260_vm12, %v1251_v6 }
 0x143   : > { %v1243_v8 = vpop.permute.xlu0 %1242  ;;  %v1342_v9 = vpop.permute.xlu1 %1341 }
 0x144   : > { %1264 = vst.msk [vmem:[#allocation2 + $0x18] sm:$0xff] %vm1260_vm12, %v1243_v8 }
 0x145   : > { %1360 = vst.msk [vmem:[#allocation2 + $0x30] sm:$0xff] %vm1353_vm13, %v1342_v9 }
 0x147   : > { %v1334_v10 = vpop.permute.xlu0 %1333  ;;  %v1344_v11 = vpop.permute.xlu1 %1343 }
 0x148   : > { %1356 = vst.msk [vmem:[#allocation2 + $0x10] sm:$0xff] %vm1353_vm13, %v1334_v10  ;;  %1361 = vst.msk [vmem:[#allocation2 + $0x38] sm:$0xff] %vm1353_vm13, %v1344_v11 }
 0x14b   : > { %v1336_v12 = vpop.permute.xlu0 %1335  ;;  %v1615_v7 = vpop.permute.xlu1 %1614 }
 0x14c   : > { %1357 = vst.msk [vmem:[#allocation2 + $0x18] sm:$0xff] %vm1353_vm13, %v1336_v12 }
 0x14d   : > { %1633 = vst.msk [vmem:[#allocation2 + $0x30] sm:$0xff] %vm1626_vm14, %v1615_v7 }
 0x14f   : > { %v1607_v13 = vpop.permute.xlu0 %1606  ;;  %v1617_v14 = vpop.permute.xlu1 %1616 }
 0x150   : > { %1629 = vst.msk [vmem:[#allocation2 + $0x10] sm:$0xff] %vm1626_vm14, %v1607_v13  ;;  %1634 = vst.msk [vmem:[#allocation2 + $0x38] sm:$0xff] %vm1626_vm14, %v1617_v14 }
 0x153   : > { %v1609_v15 = vpop.permute.xlu0 %1608  ;;  %v1776_v16 = vpop.permute.xlu1 %1775 }
 0x154   : > { %1630 = vst.msk [vmem:[#allocation2 + $0x18] sm:$0xff] %vm1626_vm14, %v1609_v15 }
 0x155   : > { %1794 = vst.msk [vmem:[#allocation2 + $0x30] sm:$0xff] %vm1787_vm15, %v1776_v16 }
 0x157   : > { %v1768_v18 = vpop.permute.xlu0 %1767  ;;  %v1778_v19 = vpop.permute.xlu1 %1777 }
 0x158   : > { %1790 = vst.msk [vmem:[#allocation2 + $0x10] sm:$0xff] %vm1787_vm15, %v1768_v18  ;;  %1795 = vst.msk [vmem:[#allocation2 + $0x38] sm:$0xff] %vm1787_vm15, %v1778_v19 }
 0x15b   : > { %v1770_v20 = vpop.permute.xlu0 %1769 }
 0x15c   : > { %v1802_v21 = vld [vmem:[#allocation2 + $0x30] sm:$0xff]  ;;  %1791 = vst.msk [vmem:[#allocation2 + $0x18] sm:$0xff] %vm1787_vm15, %v1770_v20 }
 0x15d   : > { %2408 = vmatprep.mubr.msk.bf16.mxu1 %vm1847_vm0, %v1802_v21 }
 0x15f   : > { %v1798_v22 = vld [vmem:[#allocation2 + $0x10] sm:$0xff]  ;;  %v1803_v23 = vld [vmem:[#allocation2 + $0x38] sm:$0xff] }
 0x160   : > { %2400 = vmatprep.mubr.msk.bf16.mxu0 %vm1847_vm0, %v1798_v22  ;;  %2409 = vmatmul.mubr.msk.bf16.gmra.mrb[4].mxu1 %vm1847_vm0, %v1803_v23 }
 0x163   : > { %v1799_v24 = vld [vmem:[#allocation2 + $0x18] sm:$0xff] }
 0x164   : > { %2401 = vmatmul.mubr.msk.bf16.gmra.mrb[4].mxu0 %vm1847_vm0, %v1799_v24 }
 0x1f2   : > { %v2406_v29 = vpop.f32.mrb[0].mxu1 }
 0x1f3   : > { %v1951_v0 = vadd.f32 %v2406_v29, %v2356_v27  ;;  %v1942_v51 = vpop.f32.mrb[1].mxu1 }
 0x1f4   : > { %v1943_v49 = vadd.f32 %v2356_v27, %v1942_v51  ;;  %v2407_v59 = vpop.f32.mrb[2].mxu1 }
 0x1f5   : > { %v2398_v17 = vpop.f32.mrb[0].mxu0  ;;  %1983 = vst [vmem:[%s3317_s24 + $0x50] sm:$0xff] %v1951_v0  ;;  %v1954_v28 = vadd.f32 %v2407_v59, %v2356_v27  ;;  %v1945_v62 = vpop.f32.mrb[3].mxu1 }
 0x1f6   : > { %v1919_v26 = vadd.f32 %v2398_v17, %v2356_v27  ;;  %v1910_v25 = vpop.f32.mrb[1].mxu0  ;;  %1981 = vst [vmem:[%s3317_s24 + $0x40] sm:$0xff] %v1943_v49  ;;  %v1946_v30 = vadd.f32 %v2356_v27, %v1945_v62 }
 0x1f7   : > { %v1911_v31 = vadd.f32 %v2356_v27, %v1910_v25  ;;  %v2399_v32 = vpop.f32.mrb[2].mxu0  ;;  %1984 = vst [vmem:[%s3317_s24 + $0x58] sm:$0xff] %v1954_v28 }
 0x1f8   : > { %1975 = vst [vmem:[%s3317_s24 + $0x10] sm:$0xff] %v1919_v26  ;;  %v1922_v33 = vadd.f32 %v2399_v32, %v2356_v27  ;;  %v1913_v34 = vpop.f32.mrb[3].mxu0  ;;  %1982 = vst [vmem:[%s3317_s24 + $0x48] sm:$0xff] %v1946_v30 }
 0x1f9   : > { %1973 = vst [vmem:[%s3317_s24] sm:$0xff] %v1911_v31  ;;  %v1914_v35 = vadd.f32 %v2356_v27, %v1913_v34 }
 0x1fa   : > { %1976 = vst [vmem:[%s3317_s24 + $0x18] sm:$0xff] %v1922_v33 }
 0x1fb   : > { %1974 = vst [vmem:[%s3317_s24 + $0x8] sm:$0xff] %v1914_v35 }
 0x233   : > { %v2410_v36 = vpop.f32.mrb[4].mxu1 }
 0x234   : > { %v1967_v37 = vadd.f32 %v2410_v36, %v2356_v27  ;;  %v1958_v38 = vpop.f32.mrb[5].mxu1 }
 0x235   : > { %v1959_v39 = vadd.f32 %v2356_v27, %v1958_v38  ;;  %v2411_v40 = vpop.f32.mrb[6].mxu1 }
 0x236   : > { %1987 = vst [vmem:[%s3317_s24 + $0x70] sm:$0xff] %v1967_v37  ;;  %v1970_v41 = vadd.f32 %v2411_v40, %v2356_v27  ;;  %v1961_v42 = vpop.f32.mrb[7].mxu1 }
 0x237   : > { %v2402_v43 = vpop.f32.mrb[4].mxu0  ;;  %1985 = vst [vmem:[%s3317_s24 + $0x60] sm:$0xff] %v1959_v39  ;;  %v1962_v44 = vadd.f32 %v2356_v27, %v1961_v42 }
 0x238   : > { %v1935_v45 = vadd.f32 %v2402_v43, %v2356_v27  ;;  %v1926_v46 = vpop.f32.mrb[5].mxu0  ;;  %1988 = vst [vmem:[%s3317_s24 + $0x78] sm:$0xff] %v1970_v41 }
 0x239   : > { %v1927_v47 = vadd.f32 %v2356_v27, %v1926_v46  ;;  %v2403_v48 = vpop.f32.mrb[6].mxu0  ;;  %1986 = vst [vmem:[%s3317_s24 + $0x68] sm:$0xff] %v1962_v44 }
 0x23a   : > { %1979 = vst [vmem:[%s3317_s24 + $0x30] sm:$0xff] %v1935_v45  ;;  %v1938_v50 = vadd.f32 %v2403_v48, %v2356_v27  ;;  %v1929_v52 = vpop.f32.mrb[7].mxu0 }
 0x23b   : > { %1977 = vst [vmem:[%s3317_s24 + $0x20] sm:$0xff] %v1927_v47  ;;  %v1930_v53 = vadd.f32 %v2356_v27, %v1929_v52 }
 0x23c   : > { %1980 = vst [vmem:[%s3317_s24 + $0x38] sm:$0xff] %v1938_v50 }
 0x23d   : > { %1978 = vst [vmem:[%s3317_s24 + $0x28] sm:$0xff] %v1930_v53 }
 0x23e PF: > { %s15_s16 = sadd.s32 1, %s2627_s16   ;;  %s3366_s12 = smov %s2619_s14 }
 0x23f   : > { %p12_p8 = scmp.ge.s32.totalorder %s15_s16, 6   ;;  %s3367_s13 = smov %s2623_s15 }
 0x240   : > { %s3368_s14 = smov %s3371_s18  ;;  %s3369_s15 = smov %s3375_s19 }
 0x241   :  { %14 = sbr.rel (!%p12_p8) target bundleno = 4 (0x4), region = 74 }
 0x248   :  { %2021 = vsyncpa [#allocation4], 1 }
 0x249   :  { %2023 = vsyncpa [#allocation4 + $0x1], 1 }
 0x24a   :  { %2024 = vsyncpa [#allocation6], 1 }

// kernel: dydcnv2_forward.3
= control target key start
LH: loop header
LB: loop body
LE: loop exit
PB: predicated region body
PF: predicated region fallthrough
CT: control target
= control target key end

     0   :  { %s5904_s18 = smov 0   ;;  %s5906_s19 = smov 0   ;;  %s7629_s0 = inlined_call_operand.vmem [shape: bf16[2,256,72], index: 0, kind: input, shape index: {}]   ;;  %s7630_s1 = inlined_call_operand.vmem [shape: bf16[2,256,72], index: 1, kind: input, shape index: {}]   ;;  %s7631_s2 = inlined_call_operand.vmem [shape: bf16[2,256,18], index: 2, kind: input, shape index: {}]   ;;  %s7632_s3 = inlined_call_operand.vmem [shape: bf16[72,8], index: 3, kind: input, shape index: {}]   ;;  %s7633_s4 = inlined_call_operand.vmem [shape: f32[1,8], index: 4, kind: input, shape index: {}]   ;;  %s7634_s5 = inlined_call_operand.vmem [shape: f32[2,256,8], index: 5, kind: output, shape index: {}]  }
   0x1   :  { %s5908_s20 = smov 0   ;;  %s5910_s21 = smov 0  }
   0x2   :  { %s5912_s22 = smov 0  }
   0x3 LB: > { %s24_s23 = sadd.s32 1, %s5845_s20  ;;  %s27_s24 = sadd.s32 1, %s5849_s21  ;;  %s5853_s22 = sphi %s5912_s22, %s15_s22   ;;  %s5849_s21 = sphi %s5910_s21, %s7647_s21   ;;  %s5845_s20 = sphi %s5908_s20, %s7646_s20   ;;  %s5841_s19 = sphi %s5906_s19, %s7645_s19   ;;  %s5837_s18 = sphi %s5904_s18, %s7644_s18  }
   0x4   : > { %p25_p0 = scmp.ge.s32.totalorder %s24_s23, 2  ;;  %p5461_p1 = scmp.ge.s32.totalorder %s5853_s22, 1 }
   0x5   : > { %p242_p2 = scmp.lt.s32.totalorder %s5853_s22, 5 }
   0x6   : > { %s7649_s23 = smov (%p25_p0, %s24_s23), 0  ;;  %s7651_s24 = smov (!%p25_p0, %s27_s24), %s5849_s21 }
   0x7   : > { %p243_p3 = pnand %p5461_p1, %p242_p2  ;;  %p29_p4 = scmp.ge.s32.totalorder %s7651_s24, 2 }
   0x8   : > { %s5462_s25 = sshll.u32 (!%p243_p3), %s5837_s18, 4  ;;  %p297_p5 = scmp.lt.s32.totalorder (!%p243_p3), %s5841_s19, 1  ;;  %v5855_v0 = vmov (!%p243_p3), 0   ;;  %v5856_v17 = vmov (!%p243_p3), 9   ;;  %v5857_v20 = vmov (!%p243_p3), 1   ;;  %v5858_v34 = vmov (!%p243_p3), 10  }
   0x9   : > { %s7653_s24 = smov (%p29_p4, %s7651_s24), 0  ;;  %246 = sbr.rel (%p243_p3) target bundleno = 1082 (0x43a), region = 40 }
   0xa   : > { %5689 = vset.pattern.permute.xlu1 (!%p243_p3), %v5855_v0  ;;  %5688 = vset.pattern.permute.xlu0 (!%p243_p3), %v5855_v0  ;;  %p299_p6 = scmp.lt.s32.totalorder (!%p243_p3), %s5462_s25, 31  ;;  %v5859_v38 = vmov (!%p243_p3), 2   ;;  %v5860_v57 = vmov (!%p243_p3), 839922192   ;;  %v377_v59 = vlaneseq (!%p243_p3)  ;;  %vm849_vm0 = vcmask (!%p243_p3), 64512  }
   0xb   : > { %v375_v58 = vunpack.c.l.s4 (!%p243_p3), %v5860_v57  ;;  %vm1370_vm1 = vcmask (!%p243_p3), 130112   ;;  %vm1891_vm2 = vcmask (!%p243_p3), 195712   ;;  %vm2412_vm3 = vcmask (!%p243_p3), 261312  }
   0xc   : > { %vm2933_vm4 = vcmask (!%p243_p3), 326912   ;;  %vm3454_vm5 = vcmask (!%p243_p3), 392512   ;;  %vm5102_vm6 = vcmask (!%p243_p3), 1043456   ;;  %vm3975_vm7 = vcmask (!%p243_p3), 458112  }
   0xd   : > { %v376_v0 = vunpack.c.0.s8 (!%p243_p3), %v375_v58  ;;  %vm4496_vm8 = vcmask (!%p243_p3), 523712   ;;  %vm5017_vm9 = vcmask (!%p243_p3), 589312   ;;  %vm5077_vm10 = vcmask (!%p243_p3), 588800  }
  0x10   : > { %s7655_s19 = smov (!%p297_p5, %s5841_s19), 1  ;;  %s7657_s25 = smov (!%p299_p6, %s5462_s25), 31 }
  0x11   : > { %s5463_s26 = sshll.u32 %s7655_s19, 5 }
  0x12   : > { %s5934_s27 = sadd.s32 %s5463_s26, %s7657_s25 }
  0x13   : > { %s5937_s28 = sshll.u32 %s5934_s27, 2 }
  0x14   : > { %s5943_s6 = scalar_lea.vmem %s7631_s2, %s5937_s28  ;;  %s6057_s9 = scalar_lea.vmem %s7629_s0, %s5937_s28 }
  0x15   : > { %v339_v1 = vld [vmem:[%s5943_s6 + $0x8] sm:$0xf]  ;;  %v337_v2 = vld [vmem:[%s5943_s6] sm:$0xf]  ;;  %v340_v3 = vld [vmem:[%s5943_s6 + $0xc] sm:$0xf]  ;;  %s6069_s12 = scalar_lea.vmem %s7630_s1, %s5937_s28 }
  0x16   : > { %395 = vperm.xlu1 %5689, %v339_v1   ;;  %371 = vperm.xlu0 %5688, %v337_v2   ;;  %v338_v4 = vld [vmem:[%s5943_s6 + $0x4] sm:$0xf]  ;;  %v342_v5 = vld [vmem:[%s5943_s6 + $0x14] sm:$0xf]  ;;  %v341_v6 = vld [vmem:[%s5943_s6 + $0x10] sm:$0xf] }
  0x17   : > { %v344_v7 = vld [vmem:[%s5943_s6 + $0x1c] sm:$0xf]  ;;  %v343_v8 = vld [vmem:[%s5943_s6 + $0x18] sm:$0xf]  ;;  %v346_v9 = vld [vmem:[%s5943_s6 + $0x24] sm:$0xf] }
  0x18   : > { %v345_v10 = vld [vmem:[%s5943_s6 + $0x20] sm:$0xf]  ;;  %v348_v11 = vld [vmem:[%s5943_s6 + $0x2c] sm:$0xf]  ;;  %v347_v12 = vld [vmem:[%s5943_s6 + $0x28] sm:$0xf] }
  0x19   : > { %v350_v13 = vld [vmem:[%s5943_s6 + $0x34] sm:$0xf]  ;;  %v349_v14 = vld [vmem:[%s5943_s6 + $0x30] sm:$0xf]  ;;  %v352_v15 = vld [vmem:[%s5943_s6 + $0x3c] sm:$0xf] }
  0x1a   : > { %407 = vperm.xlu1 %5689, %v340_v3   ;;  %383 = vperm.xlu0 %5688, %v338_v4   ;;  %v351_v16 = vld [vmem:[%s5943_s6 + $0x38] sm:$0xf]  ;;  %v858_v18 = vld [vmem:[%s5943_s6] sm:$0xf]  ;;  %v859_v19 = vld [vmem:[%s5943_s6 + $0x4] sm:$0xf] }
  0x1b   : > { %v860_v21 = vld [vmem:[%s5943_s6 + $0x8] sm:$0xf]  ;;  %v862_v22 = vld [vmem:[%s5943_s6 + $0x10] sm:$0xf]  ;;  %v861_v23 = vld [vmem:[%s5943_s6 + $0xc] sm:$0xf] }
  0x1c   : > { %v864_v24 = vld [vmem:[%s5943_s6 + $0x18] sm:$0xf]  ;;  %v863_v25 = vld [vmem:[%s5943_s6 + $0x14] sm:$0xf]  ;;  %v866_v26 = vld [vmem:[%s5943_s6 + $0x20] sm:$0xf] }
  0x1d   : > { %v865_v27 = vld [vmem:[%s5943_s6 + $0x1c] sm:$0xf]  ;;  %v868_v28 = vld [vmem:[%s5943_s6 + $0x28] sm:$0xf]  ;;  %v867_v29 = vld [vmem:[%s5943_s6 + $0x24] sm:$0xf] }
  0x1e   : > { %431 = vperm.xlu1 %5689, %v342_v5   ;;  %419 = vperm.xlu0 %5688, %v341_v6   ;;  %v870_v30 = vld [vmem:[%s5943_s6 + $0x30] sm:$0xf]  ;;  %v869_v31 = vld [vmem:[%s5943_s6 + $0x2c] sm:$0xf]  ;;  %v872_v32 = vld [vmem:[%s5943_s6 + $0x38] sm:$0xf] }
  0x1f   : > { %v871_v33 = vld [vmem:[%s5943_s6 + $0x34] sm:$0xf]  ;;  %v873_v35 = vld [vmem:[%s5943_s6 + $0x3c] sm:$0xf]  ;;  %v5978_v36 = vld [vmem:[%s5943_s6 + $0x4] sm:$0xf] }
  0x20   : > { %v5986_v40 = vld [vmem:[%s5943_s6 + $0x10] sm:$0xf]  ;;  %v1379_v43 = vld [vmem:[%s5943_s6] sm:$0xf]  ;;  %v5993_v44 = vld [vmem:[%s5943_s6 + $0x18] sm:$0xf] }
  0x21   : > { %v6001_v47 = vld [vmem:[%s5943_s6 + $0x8] sm:$0xf]  ;;  %v6004_v48 = vld [vmem:[%s5943_s6 + $0x20] sm:$0xf]  ;;  %v1382_v51 = vld [vmem:[%s5943_s6 + $0xc] sm:$0xf] }
  0x22   : > { %455 = vperm.xlu1 %5689, %v344_v7   ;;  %443 = vperm.xlu0 %5688, %v343_v8   ;;  %v6014_v52 = vld [vmem:[%s5943_s6 + $0x28] sm:$0xf]  ;;  %v1384_v55 = vld [vmem:[%s5943_s6 + $0x14] sm:$0xf]  ;;  %v6023_v56 = vld [vmem:[%s5943_s6 + $0x30] sm:$0xf] }
  0x23   : > { %v6031_v62 = vld [vmem:[%s5943_s6 + $0x1c] sm:$0xf]  ;;  %v6034_v63 = vld [vmem:[%s5943_s6 + $0x38] sm:$0xf] }
  0x26   : > { %479 = vperm.xlu1 %5689, %v346_v9   ;;  %467 = vperm.xlu0 %5688, %v345_v10  }
  0x2a   : > { %503 = vperm.xlu1 %5689, %v348_v11   ;;  %491 = vperm.xlu0 %5688, %v347_v12  }
  0x2e   : > { %527 = vperm.xlu1 %5689, %v350_v13   ;;  %515 = vperm.xlu0 %5688, %v349_v14  }
  0x32   : > { %551 = vperm.xlu1 %5689, %v352_v15   ;;  %539 = vperm.xlu0 %5688, %v351_v16  }
  0x36   : > { %5691 = vset.pattern.permute.xlu1 %v5856_v17  ;;  %5690 = vset.pattern.permute.xlu0 %v5856_v17  ;;  %v577_v17 = vld [vmem:[%s6069_s12] sm:$0xf] }
  0x37   : > { %605 = vperm.xlu1 %5691, %v338_v4   ;;  %594 = vperm.xlu0 %5690, %v337_v2   ;;  %v6043_v4 = vld [vmem:[%s5943_s6 + $0x24] sm:$0xf] }
  0x3b   : > { %616 = vperm.xlu1 %5691, %v339_v1   ;;  %627 = vperm.xlu0 %5690, %v340_v3   ;;  %v378_v1 = vshrl.u32 %v377_v59, 7 }
  0x3f   : > { %638 = vperm.xlu1 %5691, %v341_v6   ;;  %649 = vperm.xlu0 %5690, %v342_v5   ;;  %v6045_v5 = vsub.s32 %v376_v0, %v378_v1 }
  0x43   : > { %660 = vperm.xlu1 %5691, %v343_v8   ;;  %671 = vperm.xlu0 %5690, %v344_v7   ;;  %v5861_v8 = vmov 11  }
  0x47   : > { %682 = vperm.xlu1 %5691, %v345_v10   ;;  %693 = vperm.xlu0 %5690, %v346_v9  }
  0x4b   : > { %704 = vperm.xlu1 %5691, %v347_v12   ;;  %715 = vperm.xlu0 %5690, %v348_v11   ;;  %v6063_v11 = vld [vmem:[%s5943_s6 + $0x2c] sm:$0xf]  ;;  %v353_v12 = vld [vmem:[%s6057_s9] sm:$0xf] }
  0x4f   : > { %726 = vperm.xlu1 %5691, %v349_v14   ;;  %737 = vperm.xlu0 %5690, %v350_v13   ;;  %v354_v13 = vld [vmem:[%s6057_s9 + $0x4] sm:$0xf] }
  0x53   : > { %748 = vperm.xlu1 %5691, %v351_v16   ;;  %759 = vperm.xlu0 %5690, %v352_v15   ;;  %v578_v15 = vld [vmem:[%s6069_s12 + $0x4] sm:$0xf] }
  0x57   : > { %5692 = vset.pattern.permute.xlu1 %v5857_v20  ;;  %5693 = vset.pattern.permute.xlu0 %v5857_v20 }
  0x58   : > { %892 = vperm.xlu1 %5692, %v858_v18   ;;  %904 = vperm.xlu0 %5693, %v859_v19  }
  0x5c   : > { %916 = vperm.xlu1 %5692, %v860_v21   ;;  %940 = vperm.xlu0 %5693, %v862_v22  }
  0x60   : > { %928 = vperm.xlu1 %5692, %v861_v23   ;;  %964 = vperm.xlu0 %5693, %v864_v24  }
  0x64   : > { %952 = vperm.xlu1 %5692, %v863_v25   ;;  %988 = vperm.xlu0 %5693, %v866_v26  }
  0x68   : > { %976 = vperm.xlu1 %5692, %v865_v27   ;;  %1012 = vperm.xlu0 %5693, %v868_v28  }
  0x6c   : > { %1000 = vperm.xlu1 %5692, %v867_v29   ;;  %1036 = vperm.xlu0 %5693, %v870_v30  }
  0x70   : > { %1024 = vperm.xlu1 %5692, %v869_v31   ;;  %1060 = vperm.xlu0 %5693, %v872_v32  }
  0x74   : > { %1048 = vperm.xlu1 %5692, %v871_v33   ;;  %5694 = vset.pattern.permute.xlu0 %v5858_v34 }
  0x75   : > { %1115 = vperm.xlu0 %5694, %v858_v18  }
  0x78   : > { %1072 = vperm.xlu1 %5692, %v873_v35  }
  0x79   : > { %1148 = vperm.xlu0 %5694, %v861_v23  }
  0x7c   : > { %5695 = vset.pattern.permute.xlu1 %v5858_v34  ;;  %v357_v34 = vld [vmem:[%s6057_s9 + $0x10] sm:$0xf] }
  0x7d   : > { %1126 = vperm.xlu1 %5695, %v859_v19   ;;  %1170 = vperm.xlu0 %5694, %v863_v25  }
  0x81   : > { %1137 = vperm.xlu1 %5695, %v860_v21   ;;  %1192 = vperm.xlu0 %5694, %v865_v27  }
  0x85   : > { %1159 = vperm.xlu1 %5695, %v862_v22   ;;  %1214 = vperm.xlu0 %5694, %v867_v29   ;;  %v6079_v22 = vld [vmem:[%s5943_s6 + $0x34] sm:$0xf] }
  0x89   : > { %1181 = vperm.xlu1 %5695, %v864_v24   ;;  %1236 = vperm.xlu0 %5694, %v869_v31   ;;  %v355_v24 = vld [vmem:[%s6057_s9 + $0x8] sm:$0xf] }
  0x8a   : > { %v579_v31 = vld [vmem:[%s6069_s12 + $0x8] sm:$0xf] }
  0x8d   : > { %1203 = vperm.xlu1 %5695, %v866_v26   ;;  %1258 = vperm.xlu0 %5694, %v871_v33   ;;  %v580_v33 = vld [vmem:[%s6069_s12 + $0xc] sm:$0xf] }
  0x91   : > { %1225 = vperm.xlu1 %5695, %v868_v28   ;;  %1280 = vperm.xlu0 %5694, %v873_v35   ;;  %v356_v28 = vld [vmem:[%s6057_s9 + $0xc] sm:$0xf] }
  0x95   : > { %v5980_v37 = vpop.permute.xlu1 %395  ;;  %1247 = vperm.xlu1 %5695, %v870_v30   ;;  %5697 = vset.pattern.permute.xlu0 %v5859_v38  ;;  %v5982_v39 = vpop.permute.xlu0 %371 }
  0x96   : > { %1425 = vperm.xlu0 %5697, %v5978_v36   ;;  %v380_v9 = vrot.slane %v5982_v39, %v6045_v5  ;;  %v404_v23 = vrot.slane %v5980_v37, %v6045_v5 }
  0x98   : > { %v561_v18 = vmul.bf16 %v380_v9, %v353_v12  ;;  %v581_v9 = vld [vmem:[%s6069_s12 + $0x10] sm:$0xf]  ;;  %v582_v12 = vld [vmem:[%s6069_s12 + $0x14] sm:$0xf] }
  0x99   : > { %v5988_v41 = vpop.permute.xlu1 %407  ;;  %1269 = vperm.xlu1 %5695, %v872_v32   ;;  %v384_v42 = vpop.permute.xlu0 %383 }
  0x9a   : > { %1461 = vperm.xlu0 %5697, %v5986_v40   ;;  %v392_v10 = vrot.slane %v384_v42, %v6045_v5  ;;  %v416_v25 = vrot.slane %v5988_v41, %v6045_v5  ;;  %v6096_v41 = vld [vmem:[%s5943_s6 + $0x3c] sm:$0xf]  ;;  %v563_v42 = vmul.bf16 %v404_v23, %v355_v24 }
  0x9c   : > { %v562_v19 = vmul.bf16 %v392_v10, %v354_v13  ;;  %v359_v13 = vld [vmem:[%s6057_s9 + $0x18] sm:$0xf] }
  0x9d   : > { %v5995_v45 = vpop.permute.xlu1 %431  ;;  %5696 = vset.pattern.permute.xlu1 %v5859_v38  ;;  %v5997_v46 = vpop.permute.xlu0 %419 }
  0x9e   : > { %1413 = vperm.xlu1 %5696, %v1379_v43   ;;  %1485 = vperm.xlu0 %5697, %v5993_v44   ;;  %v428_v29 = vrot.slane %v5997_v46, %v6045_v5  ;;  %v564_v46 = vmul.bf16 %v416_v25, %v356_v28  ;;  %v584_v28 = vld [vmem:[%s6069_s12 + $0x1c] sm:$0xf] }
  0xa0   : > { %v565_v0 = vmul.bf16 %v428_v29, %v357_v34 }
  0xa1   : > { %v6006_v49 = vpop.permute.xlu1 %455  ;;  %v6008_v50 = vpop.permute.xlu0 %443 }
  0xa2   : > { %1437 = vperm.xlu1 %5696, %v6001_v47   ;;  %1509 = vperm.xlu0 %5697, %v6004_v48   ;;  %v452_v1 = vrot.slane %v6008_v50, %v6045_v5 }
  0xa4   : > { %v567_v23 = vmul.bf16 %v452_v1, %v359_v13  ;;  %v587_v13 = vld [vmem:[%s6069_s12 + $0x28] sm:$0xf] }
  0xa5   : > { %v6016_v53 = vpop.permute.xlu1 %479  ;;  %v6018_v54 = vpop.permute.xlu0 %467 }
  0xa6   : > { %1449 = vperm.xlu1 %5696, %v1382_v51   ;;  %1533 = vperm.xlu0 %5697, %v6014_v52   ;;  %v476_v24 = vrot.slane %v6018_v54, %v6045_v5  ;;  %v488_v54 = vrot.slane %v6016_v53, %v6045_v5 }
  0xa9   : > { %v6025_v60 = vpop.permute.xlu1 %503  ;;  %v6027_v61 = vpop.permute.xlu0 %491 }
  0xaa   : > { %1473 = vperm.xlu1 %5696, %v1384_v55   ;;  %1557 = vperm.xlu0 %5697, %v6023_v56  }
  0xad   : > { %v6036_v2 = vpop.permute.xlu1 %527  ;;  %v6038_v3 = vpop.permute.xlu0 %515 }
  0xae   : > { %1497 = vperm.xlu1 %5696, %v6031_v62   ;;  %1581 = vperm.xlu0 %5697, %v6034_v63  }
  0xb1   : > { %v6047_v6 = vpop.permute.xlu1 %551  ;;  %v6049_v7 = vpop.permute.xlu0 %539 }
  0xb2   : > { %1521 = vperm.xlu1 %5696, %v6043_v4   ;;  %5698 = vset.pattern.permute.xlu0 %v5861_v8 }
  0xb3   : > { %1636 = vperm.xlu0 %5698, %v1379_v43   ;;  %v440_v43 = vrot.slane %v5995_v45, %v6045_v5 }
  0xb6   : > { %1545 = vperm.xlu1 %5696, %v6063_v11   ;;  %v606_v14 = vpop.permute.xlu1 %605  ;;  %v595_v16 = vpop.permute.xlu0 %594 }
  0xb7   : > { %v614_v20 = vrot.slane %v606_v14, %v6045_v5  ;;  %v603_v21 = vrot.slane %v595_v16, %v6045_v5  ;;  %1669 = vperm.xlu0 %5698, %v1382_v51   ;;  %v358_v51 = vld [vmem:[%s6057_s9 + $0x14] sm:$0xf] }
  0xb8   : > { %v566_v50 = vmul.bf16 %v440_v43, %v358_v51 }
  0xb9   : > { %v770_v26 = vmul.bf16 %v614_v20, %v578_v15  ;;  %v769_v27 = vmul.bf16 %v603_v21, %v577_v17  ;;  %v464_v17 = vrot.slane %v6006_v49, %v6045_v5  ;;  %v360_v21 = vld [vmem:[%s6057_s9 + $0x1c] sm:$0xf] }
  0xba   : > { %1569 = vperm.xlu1 %5696, %v6079_v22   ;;  %v617_v30 = vpop.permute.xlu1 %616  ;;  %v628_v32 = vpop.permute.xlu0 %627 }
  0xbb   : > { %v786_v35 = vadd.bf16 %v770_v26, %v562_v19  ;;  %v785_v37 = vadd.bf16 %v769_v27, %v561_v18  ;;  %v625_v38 = vrot.slane %v617_v30, %v6045_v5  ;;  %v636_v39 = vrot.slane %v628_v32, %v6045_v5  ;;  %1691 = vperm.xlu0 %5698, %v1384_v55   ;;  %v583_v26 = vld [vmem:[%s6069_s12 + $0x18] sm:$0xf]  ;;  %v362_v32 = vld [vmem:[%s6057_s9 + $0x24] sm:$0xf] }
  0xbd   : > { %v5474_v57 = vcombine.low %v785_v37, %v786_v35  ;;  %v771_v58 = vmul.bf16 %v625_v38, %v579_v31  ;;  %v772_v59 = vmul.bf16 %v636_v39, %v580_v33  ;;  %v500_v38 = vrot.slane %v6027_v61, %v6045_v5 }
  0xbe   : > { %1593 = vperm.xlu1 %5696, %v6096_v41   ;;  %v639_v55 = vpop.permute.xlu1 %638  ;;  %v650_v10 = vpop.permute.xlu0 %649  ;;  %v570_v61 = vmul.bf16 %v488_v54, %v362_v32 }
  0xbf   : > { %850 = vst.msk [vmem:[#allocation2] sm:$0xff] %vm849_vm0, %v5474_v57  ;;  %v787_v45 = vadd.bf16 %v771_v58, %v563_v42  ;;  %v788_v14 = vadd.bf16 %v772_v59, %v564_v46  ;;  %v647_v15 = vrot.slane %v639_v55, %v6045_v5  ;;  %v658_v16 = vrot.slane %v650_v10, %v6045_v5  ;;  %v585_v42 = vld [vmem:[%s6069_s12 + $0x20] sm:$0xf]  ;;  %v586_v46 = vld [vmem:[%s6069_s12 + $0x24] sm:$0xf] }
  0xc0   : > { %1713 = vperm.xlu0 %5698, %v6031_v62   ;;  %v361_v62 = vld [vmem:[%s6057_s9 + $0x20] sm:$0xf]  ;;  %v512_v58 = vrot.slane %v6025_v60, %v6045_v5  ;;  %v364_v55 = vld [vmem:[%s6057_s9 + $0x2c] sm:$0xf]  ;;  %v524_v10 = vrot.slane %v6038_v3, %v6045_v5  ;;  %v536_v3 = vrot.slane %v6036_v2, %v6045_v5 }
  0xc1   : > { %v5475_v18 = vcombine.low %v787_v45, %v788_v14  ;;  %v773_v19 = vmul.bf16 %v647_v15, %v581_v9  ;;  %v774_v20 = vmul.bf16 %v658_v16, %v582_v12  ;;  %v569_v37 = vmul.bf16 %v476_v24, %v361_v62  ;;  %v588_v14 = vld [vmem:[%s6069_s12 + $0x2c] sm:$0xf] }
  0xc2   : > { %5699 = vset.pattern.permute.xlu1 %v5861_v8  ;;  %v661_v25 = vpop.permute.xlu1 %660  ;;  %v672_v27 = vpop.permute.xlu0 %671  ;;  %v568_v8 = vmul.bf16 %v464_v17, %v360_v21  ;;  %v366_v17 = vld [vmem:[%s6057_s9 + $0x34] sm:$0xf] }
  0xc3   : > { %851 = vst.msk [vmem:[#allocation2 + $0x8] sm:$0xff] %vm849_vm0, %v5475_v18  ;;  %v789_v49 = vadd.bf16 %v773_v19, %v565_v0  ;;  %v790_v29 = vadd.bf16 %v774_v20, %v566_v50  ;;  %v669_v30 = vrot.slane %v661_v25, %v6045_v5  ;;  %v680_v31 = vrot.slane %v672_v27, %v6045_v5  ;;  %v589_v25 = vld [vmem:[%s6069_s12 + $0x30] sm:$0xf]  ;;  %v590_v27 = vld [vmem:[%s6069_s12 + $0x34] sm:$0xf] }
  0xc4   : > { %1647 = vperm.xlu1 %5699, %v5978_v36   ;;  %1735 = vperm.xlu0 %5698, %v6043_v4   ;;  %v363_v36 = vld [vmem:[%s6057_s9 + $0x28] sm:$0xf]  ;;  %v572_v50 = vmul.bf16 %v512_v58, %v364_v55  ;;  %v6186_v58 = vld [vmem:[%s5943_s6 + $0x18] sm:$0xf] }
  0xc5   : > { %v5476_v33 = vcombine.low %v789_v49, %v790_v29  ;;  %v775_v34 = vmul.bf16 %v669_v30, %v583_v26  ;;  %v776_v35 = vmul.bf16 %v680_v31, %v584_v28  ;;  %v571_v9 = vmul.bf16 %v500_v38, %v363_v36 }
  0xc6   : > { %v683_v39 = vpop.permute.xlu1 %682  ;;  %v694_v43 = vpop.permute.xlu0 %693  ;;  %v574_v49 = vmul.bf16 %v536_v3, %v366_v17  ;;  %v560_v29 = vrot.slane %v6047_v6, %v6045_v5  ;;  %v5862_v6 = vmov 3   ;;  %v5863_v17 = vmov 12  }
  0xc7   : > { %852 = vst.msk [vmem:[#allocation2 + $0x10] sm:$0xff] %vm849_vm0, %v5476_v33  ;;  %v791_v53 = vadd.bf16 %v775_v34, %v567_v23  ;;  %v792_v4 = vadd.bf16 %v776_v35, %v568_v8  ;;  %v691_v51 = vrot.slane %v683_v39, %v6045_v5  ;;  %v702_v57 = vrot.slane %v694_v43, %v6045_v5  ;;  %v591_v33 = vld [vmem:[%s6069_s12 + $0x38] sm:$0xf]  ;;  %v592_v35 = vld [vmem:[%s6069_s12 + $0x3c] sm:$0xf] }
  0xc8   : > { %1658 = vperm.xlu1 %5699, %v6001_v47   ;;  %1757 = vperm.xlu0 %5698, %v6063_v11   ;;  %v365_v47 = vld [vmem:[%s6057_s9 + $0x30] sm:$0xf]  ;;  %v548_v23 = vrot.slane %v6049_v7, %v6045_v5  ;;  %v368_v7 = vld [vmem:[%s6057_s9 + $0x3c] sm:$0xf] }
  0xc9   : > { %v5477_v59 = vcombine.low %v791_v53, %v792_v4  ;;  %v777_v0 = vmul.bf16 %v691_v51, %v585_v42  ;;  %v778_v1 = vmul.bf16 %v702_v57, %v586_v46  ;;  %v573_v21 = vmul.bf16 %v524_v10, %v365_v47  ;;  %v6178_v53 = vld [vmem:[%s5943_s6 + $0x10] sm:$0xf]  ;;  %v1903_v47 = vld [vmem:[%s5943_s6 + $0xc] sm:$0xf] }
  0xca   : > { %v705_v12 = vpop.permute.xlu1 %704  ;;  %v716_v45 = vpop.permute.xlu0 %715  ;;  %v576_v42 = vmul.bf16 %v560_v29, %v368_v7 }
  0xcb   : > { %853 = vst.msk [vmem:[#allocation2 + $0x18] sm:$0xff] %vm849_vm0, %v5477_v59  ;;  %v793_v11 = vadd.bf16 %v777_v0, %v569_v37  ;;  %v794_v15 = vadd.bf16 %v778_v1, %v570_v61  ;;  %v713_v60 = vrot.slane %v705_v12, %v6045_v5  ;;  %v724_v16 = vrot.slane %v716_v45, %v6045_v5  ;;  %v6170_v37 = vld [vmem:[%s5943_s6 + $0x4] sm:$0xf] }
  0xcc   : > { %1680 = vperm.xlu1 %5699, %v5986_v40   ;;  %1779 = vperm.xlu0 %5698, %v6079_v22   ;;  %v367_v40 = vld [vmem:[%s6057_s9 + $0x38] sm:$0xf] }
  0xcd   : > { %v5478_v18 = vcombine.low %v793_v11, %v794_v15  ;;  %v779_v19 = vmul.bf16 %v713_v60, %v587_v13  ;;  %v780_v20 = vmul.bf16 %v724_v16, %v588_v14  ;;  %v575_v8 = vmul.bf16 %v548_v23, %v367_v40  ;;  %v6217_v13 = vld [vmem:[%s5943_s6 + $0x30] sm:$0xf]  ;;  %v6227_v11 = vld [vmem:[%s5943_s6 + $0x38] sm:$0xf]  ;;  %v1905_v16 = vld [vmem:[%s5943_s6 + $0x14] sm:$0xf] }
  0xce   : > { %v727_v24 = vpop.permute.xlu1 %726  ;;  %v738_v26 = vpop.permute.xlu0 %737  ;;  %v875_v40 = vld [vmem:[%s6057_s9 + $0x4] sm:$0xf] }
  0xcf   : > { %854 = vst.msk [vmem:[#allocation2 + $0x20] sm:$0xff] %vm849_vm0, %v5478_v18  ;;  %v795_v2 = vadd.bf16 %v779_v19, %v571_v9  ;;  %v796_v22 = vadd.bf16 %v780_v20, %v572_v50  ;;  %v735_v28 = vrot.slane %v727_v24, %v6045_v5  ;;  %v746_v62 = vrot.slane %v738_v26, %v6045_v5  ;;  %v6206_v9 = vld [vmem:[%s5943_s6 + $0x28] sm:$0xf]  ;;  %v1907_v18 = vld [vmem:[%s5943_s6 + $0x1c] sm:$0xf] }
  0xd0   : > { %1702 = vperm.xlu1 %5699, %v5993_v44   ;;  %1801 = vperm.xlu0 %5698, %v6096_v41  }
  0xd1   : > { %v5479_v30 = vcombine.low %v795_v2, %v796_v22  ;;  %v781_v31 = vmul.bf16 %v735_v28, %v589_v25  ;;  %v782_v54 = vmul.bf16 %v746_v62, %v590_v27  ;;  %v1911_v27 = vld [vmem:[%s5943_s6 + $0x2c] sm:$0xf]  ;;  %v1098_v2 = vld [vmem:[%s6069_s12] sm:$0xf] }
  0xd2   : > { %v749_v32 = vpop.permute.xlu1 %748  ;;  %v760_v34 = vpop.permute.xlu0 %759  ;;  %v874_v28 = vld [vmem:[%s6057_s9] sm:$0xf] }
  0xd3   : > { %855 = vst.msk [vmem:[#allocation2 + $0x28] sm:$0xff] %vm849_vm0, %v5479_v30  ;;  %v797_v44 = vadd.bf16 %v781_v31, %v573_v21  ;;  %v798_v38 = vadd.bf16 %v782_v54, %v574_v49  ;;  %v757_v41 = vrot.slane %v749_v32, %v6045_v5  ;;  %v768_v39 = vrot.slane %v760_v34, %v6045_v5  ;;  %v1909_v21 = vld [vmem:[%s5943_s6 + $0x24] sm:$0xf]  ;;  %v1101_v32 = vld [vmem:[%s6069_s12 + $0xc] sm:$0xf] }
  0xd4   : > { %1724 = vperm.xlu1 %5699, %v6004_v48   ;;  %5701 = vset.pattern.permute.xlu0 %v5862_v6  ;;  %v1099_v49 = vld [vmem:[%s6069_s12 + $0x4] sm:$0xf] }
  0xd5   : > { %v5480_v43 = vcombine.low %v797_v44, %v798_v38  ;;  %v783_v46 = vmul.bf16 %v757_v41, %v591_v33  ;;  %v784_v36 = vmul.bf16 %v768_v39, %v592_v35  ;;  %1946 = vperm.xlu0 %5701, %v6170_v37   ;;  %v876_v38 = vld [vmem:[%s6057_s9 + $0x8] sm:$0xf]  ;;  %v877_v39 = vld [vmem:[%s6057_s9 + $0xc] sm:$0xf] }
  0xd7   : > { %856 = vst.msk [vmem:[#allocation2 + $0x30] sm:$0xff] %vm849_vm0, %v5480_v43  ;;  %v799_v4 = vadd.bf16 %v783_v46, %v575_v8  ;;  %v800_v51 = vadd.bf16 %v784_v36, %v576_v42  ;;  %v6182_v48 = vpop.permute.xlu1 %892  ;;  %v905_v57 = vpop.permute.xlu0 %904  ;;  %v6258_v8 = vld [vmem:[%s5943_s6 + $0x34] sm:$0xf]  ;;  %v1100_v43 = vld [vmem:[%s6069_s12 + $0x8] sm:$0xf] }
  0xd8   : > { %1746 = vperm.xlu1 %5699, %v6014_v52   ;;  %v6196_v52 = vld [vmem:[%s5943_s6 + $0x20] sm:$0xf]  ;;  %v913_v25 = vrot.slane %v905_v57, %v6045_v5  ;;  %v901_v22 = vrot.slane %v6182_v48, %v6045_v5  ;;  %v878_v36 = vld [vmem:[%s6057_s9 + $0x10] sm:$0xf]  ;;  %v1103_v57 = vld [vmem:[%s6069_s12 + $0x14] sm:$0xf] }
  0xd9   : > { %v5481_v61 = vcombine.low %v799_v4, %v800_v51  ;;  %1982 = vperm.xlu0 %5701, %v6178_v53  }
  0xda   : > { %v1083_v29 = vmul.bf16 %v913_v25, %v875_v40  ;;  %v1082_v33 = vmul.bf16 %v901_v22, %v874_v28  ;;  %v1102_v40 = vld [vmem:[%s6069_s12 + $0x10] sm:$0xf] }
  0xdb   : > { %857 = vst.msk [vmem:[#allocation2 + $0x38] sm:$0xff] %vm849_vm0, %v5481_v61  ;;  %v6190_v59 = vpop.permute.xlu1 %916  ;;  %v6192_v0 = vpop.permute.xlu0 %940 }
  0xdc   : > { %1768 = vperm.xlu1 %5699, %v6023_v56   ;;  %v1900_v56 = vld [vmem:[%s5943_s6] sm:$0xf]  ;;  %v925_v34 = vrot.slane %v6190_v59, %v6045_v5  ;;  %v949_v41 = vrot.slane %v6192_v0, %v6045_v5  ;;  %v6276_v59 = vld [vmem:[%s5943_s6 + $0x3c] sm:$0xf] }
  0xdd   : > { %2006 = vperm.xlu0 %5701, %v6186_v58  }
  0xdf   : > { %v6199_v1 = vpop.permute.xlu1 %928  ;;  %v6201_v55 = vpop.permute.xlu0 %964 }
  0xe0   : > { %1790 = vperm.xlu1 %5699, %v6034_v63   ;;  %v6214_v63 = vld [vmem:[%s5943_s6 + $0x8] sm:$0xf]  ;;  %v937_v35 = vrot.slane %v6199_v1, %v6045_v5  ;;  %v1084_v1 = vmul.bf16 %v925_v34, %v876_v38  ;;  %v882_v38 = vld [vmem:[%s6057_s9 + $0x20] sm:$0xf] }
  0xe1   : > { %2030 = vperm.xlu0 %5701, %v6196_v52  }
  0xe3   : > { %v6208_v10 = vpop.permute.xlu1 %952  ;;  %v6210_v12 = vpop.permute.xlu0 %988 }
  0xe4   : > { %5700 = vset.pattern.permute.xlu1 %v5862_v6  ;;  %v961_v0 = vrot.slane %v6208_v10, %v6045_v5  ;;  %v880_v10 = vld [vmem:[%s6057_s9 + $0x18] sm:$0xf] }
  0xe5   : > { %1934 = vperm.xlu1 %5700, %v1900_v56   ;;  %2054 = vperm.xlu0 %5701, %v6206_v9  }
  0xe7   : > { %v6219_v45 = vpop.permute.xlu1 %976  ;;  %v6221_v14 = vpop.permute.xlu0 %1012 }
  0xe9   : > { %1958 = vperm.xlu1 %5700, %v6214_v63   ;;  %2078 = vperm.xlu0 %5701, %v6217_v13  }
  0xeb   : > { %v6229_v15 = vpop.permute.xlu1 %1000  ;;  %v6231_v60 = vpop.permute.xlu0 %1036 }
  0xed   : > { %1970 = vperm.xlu1 %5700, %v1903_v47   ;;  %2102 = vperm.xlu0 %5701, %v6227_v11  }
  0xef   : > { %v6235_v3 = vpop.permute.xlu1 %1024  ;;  %v6237_v50 = vpop.permute.xlu0 %1060 }
  0xf1   : > { %1994 = vperm.xlu1 %5700, %v1905_v16   ;;  %5702 = vset.pattern.permute.xlu0 %v5863_v17 }
  0xf2   : > { %2157 = vperm.xlu0 %5702, %v1900_v56   ;;  %v1085_v56 = vmul.bf16 %v937_v35, %v877_v39  ;;  %v1104_v35 = vld [vmem:[%s6069_s12 + $0x18] sm:$0xf] }
  0xf3   : > { %v6241_v19 = vpop.permute.xlu1 %1048 }
  0xf4   : > { %v1116_v20 = vpop.permute.xlu0 %1115 }
  0xf5   : > { %2018 = vperm.xlu1 %5700, %v1907_v18   ;;  %v1124_v26 = vrot.slane %v1116_v20, %v6045_v5  ;;  %v1086_v20 = vmul.bf16 %v949_v41, %v878_v36  ;;  %v1021_v36 = vrot.slane %v6221_v14, %v6045_v5  ;;  %v1033_v14 = vrot.slane %v6235_v3, %v6045_v5 }
  0xf6   : > { %2190 = vperm.xlu0 %5702, %v1903_v47   ;;  %v879_v47 = vld [vmem:[%s6057_s9 + $0x14] sm:$0xf] }
  0xf7   : > { %v6244_v23 = vpop.permute.xlu1 %1072  ;;  %v1290_v30 = vmul.bf16 %v1124_v26, %v1098_v2 }
  0xf8   : > { %v1149_v24 = vpop.permute.xlu0 %1148 }
  0xf9   : > { %2042 = vperm.xlu1 %5700, %v1909_v21   ;;  %v1157_v31 = vrot.slane %v1149_v24, %v6045_v5  ;;  %v1306_v4 = vadd.bf16 %v1290_v30, %v1082_v33  ;;  %v973_v24 = vrot.slane %v6201_v55, %v6045_v5  ;;  %v1105_v55 = vld [vmem:[%s6069_s12 + $0x1c] sm:$0xf] }
  0xfa   : > { %2212 = vperm.xlu0 %5702, %v1905_v16  }
  0xfb   : > { %v1293_v51 = vmul.bf16 %v1157_v31, %v1101_v32  ;;  %v1088_v31 = vmul.bf16 %v973_v24, %v880_v10  ;;  %v881_v32 = vld [vmem:[%s6057_s9 + $0x1c] sm:$0xf]  ;;  %v6324_v10 = vld [vmem:[%s5943_s6 + $0x4] sm:$0xf] }
  0xfc   : > { %v1127_v62 = vpop.permute.xlu1 %1126  ;;  %v1171_v7 = vpop.permute.xlu0 %1170 }
  0xfd   : > { %2066 = vperm.xlu1 %5700, %v1911_v27   ;;  %v1135_v54 = vrot.slane %v1127_v62, %v6045_v5  ;;  %v1179_v6 = vrot.slane %v1171_v7, %v6045_v5  ;;  %v1309_v22 = vadd.bf16 %v1293_v51, %v1085_v56  ;;  %v985_v7 = vrot.slane %v6219_v45, %v6045_v5 }
  0xfe   : > { %2234 = vperm.xlu0 %5702, %v1907_v18  }
  0xff   : > { %v1291_v44 = vmul.bf16 %v1135_v54, %v1099_v49  ;;  %v1295_v25 = vmul.bf16 %v1179_v6, %v1103_v57  ;;  %v1087_v49 = vmul.bf16 %v961_v0, %v879_v47  ;;  %v997_v54 = vrot.slane %v6210_v12, %v6045_v5  ;;  %v1107_v12 = vld [vmem:[%s6069_s12 + $0x24] sm:$0xf] }
 0x100   : > { %v1138_v42 = vpop.permute.xlu1 %1137  ;;  %v1193_v46 = vpop.permute.xlu0 %1192  ;;  %v1009_v6 = vrot.slane %v6229_v15, %v6045_v5 }
 0x101   : > { %2090 = vperm.xlu1 %5700, %v6258_v8   ;;  %v1307_v48 = vadd.bf16 %v1291_v44, %v1083_v29  ;;  %v1146_v61 = vrot.slane %v1138_v42, %v6045_v5  ;;  %v1201_v28 = vrot.slane %v1193_v46, %v6045_v5  ;;  %v1311_v33 = vadd.bf16 %v1295_v25, %v1087_v49 }
 0x102   : > { %2256 = vperm.xlu0 %5702, %v1909_v21   ;;  %v1090_v46 = vmul.bf16 %v997_v54, %v882_v38  ;;  %v1045_v25 = vrot.slane %v6231_v60, %v6045_v5  ;;  %v5864_v49 = vmov 4   ;;  %v887_v54 = vld [vmem:[%s6057_s9 + $0x34] sm:$0xf] }
 0x103   : > { %v5482_v16 = vcombine.low %v1306_v4, %v1307_v48  ;;  %v1292_v18 = vmul.bf16 %v1146_v61, %v1100_v43  ;;  %v883_v4 = vld [vmem:[%s6057_s9 + $0x24] sm:$0xf]  ;;  %v884_v61 = vld [vmem:[%s6057_s9 + $0x28] sm:$0xf] }
 0x104   : > { %v1160_v26 = vpop.permute.xlu1 %1159  ;;  %v1215_v2 = vpop.permute.xlu0 %1214  ;;  %v1091_v47 = vmul.bf16 %v1009_v6, %v883_v4  ;;  %v1092_v24 = vmul.bf16 %v1021_v36, %v884_v61  ;;  %v6357_v36 = vld [vmem:[%s5943_s6 + $0x18] sm:$0xf] }
 0x105   : > { %2114 = vperm.xlu1 %5700, %v6276_v59   ;;  %1371 = vst.msk [vmem:[#allocation2] sm:$0xff] %vm1370_vm1, %v5482_v16  ;;  %v1308_v21 = vadd.bf16 %v1292_v18, %v1084_v1  ;;  %v1168_v62 = vrot.slane %v1160_v26, %v6045_v5  ;;  %v1223_v41 = vrot.slane %v1215_v2, %v6045_v5  ;;  %v1109_v1 = vld [vmem:[%s6069_s12 + $0x2c] sm:$0xf]  ;;  %v1108_v2 = vld [vmem:[%s6069_s12 + $0x28] sm:$0xf] }
 0x106   : > { %2278 = vperm.xlu0 %5702, %v1911_v27   ;;  %v1297_v27 = vmul.bf16 %v1201_v28, %v1105_v55  ;;  %v885_v16 = vld [vmem:[%s6057_s9 + $0x2c] sm:$0xf]  ;;  %v1057_v55 = vrot.slane %v6241_v19, %v6045_v5 }
 0x107   : > { %v5483_v29 = vcombine.low %v1308_v21, %v1309_v22  ;;  %v1294_v30 = vmul.bf16 %v1168_v62, %v1102_v40  ;;  %v1299_v0 = vmul.bf16 %v1223_v41, %v1107_v12  ;;  %v1093_v60 = vmul.bf16 %v1033_v14, %v885_v16  ;;  %v1111_v62 = vld [vmem:[%s6069_s12 + $0x34] sm:$0xf]  ;;  %v6376_v14 = vld [vmem:[%s5943_s6 + $0x28] sm:$0xf] }
 0x108   : > { %v1182_v34 = vpop.permute.xlu1 %1181  ;;  %v1237_v44 = vpop.permute.xlu0 %1236  ;;  %v1095_v41 = vmul.bf16 %v1057_v55, %v887_v54 }
 0x109   : > { %5703 = vset.pattern.permute.xlu1 %v5863_v17  ;;  %1372 = vst.msk [vmem:[#allocation2 + $0x8] sm:$0xff] %vm1370_vm1, %v5483_v29  ;;  %v1310_v45 = vadd.bf16 %v1294_v30, %v1086_v20  ;;  %v1190_v39 = vrot.slane %v1182_v34, %v6045_v5  ;;  %v1089_v17 = vmul.bf16 %v985_v7, %v881_v32  ;;  %v6341_v34 = vld [vmem:[%s5943_s6 + $0x10] sm:$0xf] }
 0x10a   : > { %2168 = vperm.xlu1 %5703, %v6170_v37   ;;  %2300 = vperm.xlu0 %5702, %v6258_v8   ;;  %v1245_v51 = vrot.slane %v1237_v44, %v6045_v5  ;;  %v1106_v37 = vld [vmem:[%s6069_s12 + $0x20] sm:$0xf]  ;;  %v1315_v22 = vadd.bf16 %v1299_v0, %v1091_v47 }
 0x10b   : > { %v5484_v42 = vcombine.low %v1310_v45, %v1311_v33  ;;  %v1296_v43 = vmul.bf16 %v1190_v39, %v1104_v35  ;;  %v1313_v8 = vadd.bf16 %v1297_v27, %v1089_v17  ;;  %v1110_v33 = vld [vmem:[%s6069_s12 + $0x30] sm:$0xf]  ;;  %v888_v35 = vld [vmem:[%s6057_s9 + $0x38] sm:$0xf]  ;;  %v1113_v45 = vld [vmem:[%s6069_s12 + $0x3c] sm:$0xf]  ;;  %v1081_v39 = vrot.slane %v6244_v23, %v6045_v5 }
 0x10c   : > { %v1204_v48 = vpop.permute.xlu1 %1203  ;;  %v1259_v57 = vpop.permute.xlu0 %1258  ;;  %v1301_v26 = vmul.bf16 %v1245_v51, %v1109_v1 }
 0x10d   : > { %1373 = vst.msk [vmem:[#allocation2 + $0x10] sm:$0xff] %vm1370_vm1, %v5484_v42  ;;  %v1312_v15 = vadd.bf16 %v1296_v43, %v1088_v31  ;;  %v1212_v56 = vrot.slane %v1204_v48, %v6045_v5  ;;  %v1069_v31 = vrot.slane %v6237_v50, %v6045_v5  ;;  %v889_v42 = vld [vmem:[%s6057_s9 + $0x3c] sm:$0xf] }
 0x10e   : > { %2179 = vperm.xlu1 %5703, %v6214_v63   ;;  %2322 = vperm.xlu0 %5702, %v6276_v59   ;;  %v886_v63 = vld [vmem:[%s6057_s9 + $0x30] sm:$0xf]  ;;  %v1267_v59 = vrot.slane %v1259_v57, %v6045_v5 }
 0x10f   : > { %v5485_v18 = vcombine.low %v1312_v15, %v1313_v8  ;;  %v1298_v20 = vmul.bf16 %v1212_v56, %v1106_v37  ;;  %v1094_v30 = vmul.bf16 %v1045_v25, %v886_v63  ;;  %v1096_v6 = vmul.bf16 %v1069_v31, %v888_v35  ;;  %v6366_v8 = vld [vmem:[%s5943_s6 + $0x20] sm:$0xf] }
 0x110   : > { %v1226_v40 = vpop.permute.xlu1 %1225  ;;  %v1281_v28 = vpop.permute.xlu0 %1280  ;;  %v1303_v19 = vmul.bf16 %v1267_v59, %v1111_v62  ;;  %v1097_v37 = vmul.bf16 %v1081_v39, %v889_v42  ;;  %v5865_v63 = vmov 13   ;;  %v2428_v62 = vld [vmem:[%s5943_s6 + $0x1c] sm:$0xf] }
 0x111   : > { %1374 = vst.msk [vmem:[#allocation2 + $0x18] sm:$0xff] %vm1370_vm1, %v5485_v18  ;;  %v1314_v3 = vadd.bf16 %v1298_v20, %v1090_v46  ;;  %v1234_v21 = vrot.slane %v1226_v40, %v6045_v5  ;;  %v1289_v38 = vrot.slane %v1281_v28, %v6045_v5  ;;  %v1112_v46 = vld [vmem:[%s6069_s12 + $0x38] sm:$0xf] }
 0x112   : > { %2201 = vperm.xlu1 %5703, %v6178_v53   ;;  %5705 = vset.pattern.permute.xlu0 %v5864_v49  ;;  %v1317_v53 = vadd.bf16 %v1301_v26, %v1093_v60  ;;  %v1319_v4 = vadd.bf16 %v1303_v19, %v1095_v41  ;;  %v1395_v19 = vld [vmem:[%s6057_s9] sm:$0xf] }
 0x113   : > { %v5486_v7 = vcombine.low %v1314_v3, %v1315_v22  ;;  %v1300_v29 = vmul.bf16 %v1234_v21, %v1108_v2  ;;  %2467 = vperm.xlu0 %5705, %v6324_v10   ;;  %v2424_v22 = vld [vmem:[%s5943_s6 + $0xc] sm:$0xf]  ;;  %v2426_v21 = vld [vmem:[%s5943_s6 + $0x14] sm:$0xf] }
 0x114   : > { %v1248_v32 = vpop.permute.xlu1 %1247 }
 0x115   : > { %1375 = vst.msk [vmem:[#allocation2 + $0x20] sm:$0xff] %vm1370_vm1, %v5486_v7  ;;  %v1316_v44 = vadd.bf16 %v1300_v29, %v1092_v24  ;;  %v1256_v27 = vrot.slane %v1248_v32, %v6045_v5  ;;  %v6348_v50 = vpop.permute.xlu0 %1425  ;;  %v2421_v24 = vld [vmem:[%s5943_s6] sm:$0xf]  ;;  %v2430_v7 = vld [vmem:[%s5943_s6 + $0x24] sm:$0xf] }
 0x116   : > { %2223 = vperm.xlu1 %5703, %v6186_v58   ;;  %v1305_v58 = vmul.bf16 %v1289_v38, %v1113_v45  ;;  %v1434_v31 = vrot.slane %v6348_v50, %v6045_v5  ;;  %v1396_v32 = vld [vmem:[%s6057_s9 + $0x4] sm:$0xf] }
 0x117   : > { %v5487_v12 = vcombine.low %v1316_v44, %v1317_v53  ;;  %v1302_v17 = vmul.bf16 %v1256_v27, %v1110_v33  ;;  %2503 = vperm.xlu0 %5705, %v6341_v34   ;;  %v2432_v53 = vld [vmem:[%s5943_s6 + $0x2c] sm:$0xf]  ;;  %v1619_v33 = vld [vmem:[%s6069_s12] sm:$0xf]  ;;  %v1620_v38 = vld [vmem:[%s6069_s12 + $0x4] sm:$0xf] }
 0x118   : > { %v1270_v43 = vpop.permute.xlu1 %1269  ;;  %v1321_v0 = vadd.bf16 %v1305_v58, %v1097_v37  ;;  %v1604_v27 = vmul.bf16 %v1434_v31, %v1396_v32  ;;  %v1397_v58 = vld [vmem:[%s6057_s9 + $0x8] sm:$0xf]  ;;  %v1401_v32 = vld [vmem:[%s6057_s9 + $0x18] sm:$0xf] }
 0x119   : > { %1376 = vst.msk [vmem:[#allocation2 + $0x28] sm:$0xff] %vm1370_vm1, %v5487_v12  ;;  %v1318_v51 = vadd.bf16 %v1302_v17, %v1094_v30  ;;  %v1278_v48 = vrot.slane %v1270_v43, %v6045_v5  ;;  %v6362_v23 = vpop.permute.xlu0 %1461  ;;  %v2434_v12 = vld [vmem:[%s5943_s6 + $0x34] sm:$0xf]  ;;  %v1622_v17 = vld [vmem:[%s6069_s12 + $0xc] sm:$0xf] }
 0x11a   : > { %2245 = vperm.xlu1 %5703, %v6196_v52  }
 0x11b   : > { %v5488_v57 = vcombine.low %v1318_v51, %v1319_v4  ;;  %v1304_v61 = vmul.bf16 %v1278_v48, %v1112_v46  ;;  %2527 = vperm.xlu0 %5705, %v6357_v36   ;;  %v1470_v4 = vrot.slane %v6362_v23, %v6045_v5  ;;  %v1398_v51 = vld [vmem:[%s6057_s9 + $0xc] sm:$0xf]  ;;  %v2436_v23 = vld [vmem:[%s5943_s6 + $0x3c] sm:$0xf] }
 0x11d   : > { %1377 = vst.msk [vmem:[#allocation2 + $0x30] sm:$0xff] %vm1370_vm1, %v5488_v57  ;;  %v1320_v15 = vadd.bf16 %v1304_v61, %v1096_v6  ;;  %v6370_v1 = vpop.permute.xlu1 %1413  ;;  %v6372_v52 = vpop.permute.xlu0 %1485  ;;  %v1621_v57 = vld [vmem:[%s6069_s12 + $0x8] sm:$0xf]  ;;  %v1399_v61 = vld [vmem:[%s6057_s9 + $0x10] sm:$0xf] }
 0x11e   : > { %2267 = vperm.xlu1 %5703, %v6206_v9   ;;  %v6386_v9 = vld [vmem:[%s5943_s6 + $0x30] sm:$0xf]  ;;  %v1422_v35 = vrot.slane %v6370_v1, %v6045_v5  ;;  %v1624_v1 = vld [vmem:[%s6069_s12 + $0x14] sm:$0xf] }
 0x11f   : > { %v5489_v56 = vcombine.low %v1320_v15, %v1321_v0  ;;  %2551 = vperm.xlu0 %5705, %v6366_v8  }
 0x120   : > { %v1603_v6 = vmul.bf16 %v1422_v35, %v1395_v19 }
 0x121   : > { %1378 = vst.msk [vmem:[#allocation2 + $0x38] sm:$0xff] %vm1370_vm1, %v5489_v56  ;;  %v6380_v47 = vpop.permute.xlu1 %1437  ;;  %v6382_v16 = vpop.permute.xlu0 %1509 }
 0x122   : > { %2289 = vperm.xlu1 %5703, %v6217_v13   ;;  %v6396_v13 = vld [vmem:[%s5943_s6 + $0x38] sm:$0xf]  ;;  %v1446_v42 = vrot.slane %v6380_v47, %v6045_v5 }
 0x123   : > { %2575 = vperm.xlu0 %5705, %v6376_v14  }
 0x125   : > { %v6389_v18 = vpop.permute.xlu1 %1449  ;;  %v6391_v20 = vpop.permute.xlu0 %1533 }
 0x126   : > { %2311 = vperm.xlu1 %5703, %v6227_v11   ;;  %v6405_v11 = vld [vmem:[%s5943_s6 + $0x8] sm:$0xf]  ;;  %v1458_v43 = vrot.slane %v6389_v18, %v6045_v5 }
 0x127   : > { %2599 = vperm.xlu0 %5705, %v6386_v9  }
 0x129   : > { %v6399_v25 = vpop.permute.xlu1 %1473  ;;  %v6401_v26 = vpop.permute.xlu0 %1557 }
 0x12a   : > { %5704 = vset.pattern.permute.xlu1 %v5864_v49 }
 0x12b   : > { %2455 = vperm.xlu1 %5704, %v2421_v24   ;;  %2623 = vperm.xlu0 %5705, %v6396_v13  }
 0x12d   : > { %v6407_v40 = vpop.permute.xlu1 %1497  ;;  %v6409_v2 = vpop.permute.xlu0 %1581 }
 0x12f   : > { %2479 = vperm.xlu1 %5704, %v6405_v11   ;;  %5706 = vset.pattern.permute.xlu0 %v5865_v63 }
 0x130   : > { %2678 = vperm.xlu0 %5706, %v2421_v24   ;;  %v1482_v24 = vrot.slane %v6399_v25, %v6045_v5 }
 0x131   : > { %v6414_v3 = vpop.permute.xlu1 %1521 }
 0x132   : > { %v1637_v59 = vpop.permute.xlu0 %1636 }
 0x133   : > { %2491 = vperm.xlu1 %5704, %v2424_v22   ;;  %v1645_v54 = vrot.slane %v1637_v59, %v6045_v5  ;;  %v1606_v59 = vmul.bf16 %v1458_v43, %v1398_v51  ;;  %v6481_v43 = vld [vmem:[%s5943_s6 + $0x4] sm:$0xf] }
 0x134   : > { %2711 = vperm.xlu0 %5706, %v2424_v22   ;;  %v1605_v22 = vmul.bf16 %v1446_v42, %v1397_v58  ;;  %v1625_v42 = vld [vmem:[%s6069_s12 + $0x18] sm:$0xf] }
 0x135   : > { %v6417_v28 = vpop.permute.xlu1 %1545  ;;  %v1811_v45 = vmul.bf16 %v1645_v54, %v1619_v33 }
 0x136   : > { %v1670_v60 = vpop.permute.xlu0 %1669 }
 0x137   : > { %2515 = vperm.xlu1 %5704, %v2426_v21   ;;  %v1678_v50 = vrot.slane %v1670_v60, %v6045_v5  ;;  %v1827_v0 = vadd.bf16 %v1811_v45, %v1603_v6 }
 0x138   : > { %2733 = vperm.xlu0 %5706, %v2426_v21   ;;  %v1400_v21 = vld [vmem:[%s6057_s9 + $0x14] sm:$0xf] }
 0x139   : > { %v6420_v49 = vpop.permute.xlu1 %1569  ;;  %v1814_v15 = vmul.bf16 %v1678_v50, %v1622_v17 }
 0x13a   : > { %v1692_v55 = vpop.permute.xlu0 %1691 }
 0x13b   : > { %2539 = vperm.xlu1 %5704, %v2428_v62   ;;  %v1700_v48 = vrot.slane %v1692_v55, %v6045_v5  ;;  %v1607_v55 = vmul.bf16 %v1470_v4, %v1399_v61  ;;  %v1830_v33 = vadd.bf16 %v1814_v15, %v1606_v59  ;;  %v1404_v15 = vld [vmem:[%s6057_s9 + $0x24] sm:$0xf]  ;;  %v1630_v59 = vld [vmem:[%s6069_s12 + $0x2c] sm:$0xf] }
 0x13c   : > { %2755 = vperm.xlu0 %5706, %v2428_v62  }
 0x13d   : > { %v6423_v29 = vpop.permute.xlu1 %1593  ;;  %v1816_v31 = vmul.bf16 %v1700_v48, %v1624_v1  ;;  %v5866_v48 = vmov 5  }
 0x13f   : > { %2563 = vperm.xlu1 %5704, %v2430_v7   ;;  %v6425_v30 = vpop.permute.xlu0 %1713 }
 0x140   : > { %2777 = vperm.xlu0 %5706, %v2430_v7   ;;  %v1494_v7 = vrot.slane %v6372_v52, %v6045_v5  ;;  %v1722_v25 = vrot.slane %v6425_v30, %v6045_v5  ;;  %v1608_v52 = vmul.bf16 %v1482_v24, %v1400_v21  ;;  %v1405_v24 = vld [vmem:[%s6057_s9 + $0x28] sm:$0xf] }
 0x142   : > { %v1609_v30 = vmul.bf16 %v1494_v7, %v1401_v32  ;;  %v1832_v17 = vadd.bf16 %v1816_v31, %v1608_v52 }
 0x143   : > { %2587 = vperm.xlu1 %5704, %v2432_v53   ;;  %v1648_v44 = vpop.permute.xlu1 %1647  ;;  %v6439_v39 = vpop.permute.xlu0 %1735 }
 0x144   : > { %v1656_v41 = vrot.slane %v1648_v44, %v6045_v5  ;;  %2799 = vperm.xlu0 %5706, %v2432_v53   ;;  %v1623_v53 = vld [vmem:[%s6069_s12 + $0x10] sm:$0xf] }
 0x146   : > { %v1812_v46 = vmul.bf16 %v1656_v41, %v1620_v38  ;;  %v1626_v38 = vld [vmem:[%s6069_s12 + $0x1c] sm:$0xf]  ;;  %v1518_v41 = vrot.slane %v6382_v16, %v6045_v5  ;;  %v1628_v16 = vld [vmem:[%s6069_s12 + $0x24] sm:$0xf] }
 0x147   : > { %2611 = vperm.xlu1 %5704, %v2434_v12   ;;  %v1659_v37 = vpop.permute.xlu1 %1658  ;;  %v6456_v18 = vpop.permute.xlu0 %1757  ;;  %v1818_v4 = vmul.bf16 %v1722_v25, %v1626_v38  ;;  %v1629_v25 = vld [vmem:[%s6069_s12 + $0x28] sm:$0xf] }
 0x148   : > { %v1828_v56 = vadd.bf16 %v1812_v46, %v1604_v27  ;;  %v1667_v47 = vrot.slane %v1659_v37, %v6045_v5  ;;  %2821 = vperm.xlu0 %5706, %v2434_v12   ;;  %v1506_v27 = vrot.slane %v6407_v40, %v6045_v5  ;;  %v1402_v12 = vld [vmem:[%s6057_s9 + $0x1c] sm:$0xf]  ;;  %v1403_v46 = vld [vmem:[%s6057_s9 + $0x20] sm:$0xf]  ;;  %v1744_v40 = vrot.slane %v6439_v39, %v6045_v5 }
 0x149   : > { %v1530_v39 = vrot.slane %v6414_v3, %v6045_v5  ;;  %v1766_v1 = vrot.slane %v6456_v18, %v6045_v5  ;;  %v1554_v18 = vrot.slane %v6417_v28, %v6045_v5 }
 0x14a   : > { %v5490_v60 = vcombine.low %v1827_v0, %v1828_v56  ;;  %v1813_v62 = vmul.bf16 %v1667_v47, %v1621_v57  ;;  %v1610_v37 = vmul.bf16 %v1506_v27, %v1402_v12  ;;  %v1611_v0 = vmul.bf16 %v1518_v41, %v1403_v46  ;;  %v1627_v47 = vld [vmem:[%s6069_s12 + $0x20] sm:$0xf]  ;;  %v1632_v27 = vld [vmem:[%s6069_s12 + $0x34] sm:$0xf] }
 0x14b   : > { %2635 = vperm.xlu1 %5704, %v2436_v23   ;;  %v1681_v54 = vpop.permute.xlu1 %1680  ;;  %v6470_v44 = vpop.permute.xlu0 %1779  ;;  %v1820_v3 = vmul.bf16 %v1744_v40, %v1628_v16  ;;  %v1822_v32 = vmul.bf16 %v1766_v1, %v1630_v59  ;;  %v1590_v12 = vrot.slane %v6409_v2, %v6045_v5  ;;  %v6539_v46 = vld [vmem:[%s5943_s6 + $0x20] sm:$0xf]  ;;  %v1634_v2 = vld [vmem:[%s6069_s12 + $0x3c] sm:$0xf]  ;;  %v6556_v1 = vld [vmem:[%s5943_s6 + $0x28] sm:$0xf] }
 0x14c   : > { %1892 = vst.msk [vmem:[#allocation2] sm:$0xff] %vm1891_vm2, %v5490_v60  ;;  %v1829_v35 = vadd.bf16 %v1813_v62, %v1605_v22  ;;  %v1689_v19 = vrot.slane %v1681_v54, %v6045_v5  ;;  %2843 = vperm.xlu0 %5706, %v2436_v23   ;;  %v6503_v23 = vld [vmem:[%s5943_s6 + $0x10] sm:$0xf]  ;;  %v1834_v22 = vadd.bf16 %v1818_v4, %v1610_v37  ;;  %v1409_v4 = vld [vmem:[%s6057_s9 + $0x38] sm:$0xf] }
 0x14d   : > { %v1612_v62 = vmul.bf16 %v1530_v39, %v1404_v15  ;;  %v1602_v39 = vrot.slane %v6423_v29, %v6045_v5  ;;  %v1633_v15 = vld [vmem:[%s6069_s12 + $0x38] sm:$0xf] }
 0x14e   : > { %v5491_v45 = vcombine.low %v1829_v35, %v1830_v33  ;;  %v1815_v50 = vmul.bf16 %v1689_v19, %v1623_v53  ;;  %v1566_v53 = vrot.slane %v6401_v26, %v6045_v5  ;;  %v1407_v35 = vld [vmem:[%s6057_s9 + $0x30] sm:$0xf]  ;;  %v1788_v19 = vrot.slane %v6470_v44, %v6045_v5 }
 0x14f   : > { %5707 = vset.pattern.permute.xlu1 %v5865_v63  ;;  %v1703_v6 = vpop.permute.xlu1 %1702  ;;  %v6490_v63 = vpop.permute.xlu0 %1801  ;;  %v1836_v28 = vadd.bf16 %v1820_v3, %v1612_v62 }
 0x150   : > { %1893 = vst.msk [vmem:[#allocation2 + $0x8] sm:$0xff] %vm1891_vm2, %v5491_v45  ;;  %v1831_v58 = vadd.bf16 %v1815_v50, %v1607_v55  ;;  %v1711_v51 = vrot.slane %v1703_v6, %v6045_v5  ;;  %2689 = vperm.xlu1 %5707, %v6324_v10   ;;  %5709 = vset.pattern.permute.xlu0 %v5866_v48  ;;  %v1406_v55 = vld [vmem:[%s6057_s9 + $0x2c] sm:$0xf] }
 0x151   : > { %2988 = vperm.xlu0 %5709, %v6481_v43   ;;  %v1542_v10 = vrot.slane %v6391_v20, %v6045_v5  ;;  %v1614_v26 = vmul.bf16 %v1554_v18, %v1406_v55  ;;  %v1578_v50 = vrot.slane %v6420_v49, %v6045_v5  ;;  %v1615_v44 = vmul.bf16 %v1566_v53, %v1407_v35  ;;  %v2942_v53 = vld [vmem:[%s5943_s6] sm:$0xf] }
 0x152   : > { %v5492_v57 = vcombine.low %v1831_v58, %v1832_v17  ;;  %v1817_v61 = vmul.bf16 %v1711_v51, %v1625_v42  ;;  %v1408_v17 = vld [vmem:[%s6057_s9 + $0x34] sm:$0xf]  ;;  %v1824_v40 = vmul.bf16 %v1788_v19, %v1632_v27  ;;  %v1810_v49 = vrot.slane %v6490_v63, %v6045_v5 }
 0x153   : > { %v1725_v56 = vpop.permute.xlu1 %1724  ;;  %v1613_v54 = vmul.bf16 %v1542_v10, %v1405_v24  ;;  %v1838_v6 = vadd.bf16 %v1822_v32, %v1614_v26  ;;  %v1616_v37 = vmul.bf16 %v1578_v50, %v1408_v17  ;;  %v1617_v63 = vmul.bf16 %v1590_v12, %v1409_v4  ;;  %v2947_v19 = vld [vmem:[%s5943_s6 + $0x14] sm:$0xf]  ;;  %v2951_v50 = vld [vmem:[%s5943_s6 + $0x24] sm:$0xf] }
 0x154   : > { %1894 = vst.msk [vmem:[#allocation2 + $0x10] sm:$0xff] %vm1891_vm2, %v5492_v57  ;;  %v1833_v21 = vadd.bf16 %v1817_v61, %v1609_v30  ;;  %v1733_v20 = vrot.slane %v1725_v56, %v6045_v5  ;;  %2700 = vperm.xlu1 %5707, %v6405_v11   ;;  %v6512_v60 = vpop.permute.xlu0 %1946  ;;  %v6520_v11 = vld [vmem:[%s5943_s6 + $0x18] sm:$0xf] }
 0x155   : > { %3024 = vperm.xlu0 %5709, %v6503_v23   ;;  %v1840_v56 = vadd.bf16 %v1824_v40, %v1616_v37  ;;  %v1917_v40 = vld [vmem:[%s6057_s9 + $0x4] sm:$0xf] }
 0x156   : > { %v5493_v7 = vcombine.low %v1833_v21, %v1834_v22  ;;  %v1819_v31 = vmul.bf16 %v1733_v20, %v1627_v47  ;;  %v6565_v21 = vld [vmem:[%s5943_s6 + $0x30] sm:$0xf] }
 0x157   : > { %v1747_v33 = vpop.permute.xlu1 %1746 }
 0x158   : > { %1895 = vst.msk [vmem:[#allocation2 + $0x18] sm:$0xff] %vm1891_vm2, %v5493_v7  ;;  %v1835_v52 = vadd.bf16 %v1819_v31, %v1611_v0  ;;  %v1755_v38 = vrot.slane %v1747_v33, %v6045_v5  ;;  %2722 = vperm.xlu1 %5707, %v6341_v34   ;;  %v6529_v45 = vpop.permute.xlu0 %1982  ;;  %v1631_v34 = vld [vmem:[%s6069_s12 + $0x30] sm:$0xf]  ;;  %v1410_v0 = vld [vmem:[%s6057_s9 + $0x3c] sm:$0xf]  ;;  %v5867_v33 = vmov 14  }
 0x159   : > { %3048 = vperm.xlu0 %5709, %v6520_v11   ;;  %v1618_v22 = vmul.bf16 %v1602_v39, %v1410_v0  ;;  %v6575_v7 = vld [vmem:[%s5943_s6 + $0x38] sm:$0xf]  ;;  %v2141_v39 = vld [vmem:[%s6069_s12 + $0x4] sm:$0xf] }
 0x15a   : > { %v5494_v30 = vcombine.low %v1835_v52, %v1836_v28  ;;  %v1821_v41 = vmul.bf16 %v1755_v38, %v1629_v25  ;;  %v2945_v25 = vld [vmem:[%s5943_s6 + $0xc] sm:$0xf]  ;;  %v6596_v28 = vld [vmem:[%s5943_s6 + $0x8] sm:$0xf] }
 0x15b   : > { %v1769_v42 = vpop.permute.xlu1 %1768 }
 0x15c   : > { %1896 = vst.msk [vmem:[#allocation2 + $0x20] sm:$0xff] %vm1891_vm2, %v5494_v30  ;;  %v1837_v58 = vadd.bf16 %v1821_v41, %v1613_v54  ;;  %v1777_v51 = vrot.slane %v1769_v42, %v6045_v5  ;;  %2744 = vperm.xlu1 %5707, %v6357_v36   ;;  %v6548_v16 = vpop.permute.xlu0 %2006  ;;  %v1826_v36 = vmul.bf16 %v1810_v49, %v1634_v2  ;;  %v2140_v49 = vld [vmem:[%s6069_s12] sm:$0xf] }
 0x15d   : > { %3072 = vperm.xlu0 %5709, %v6539_v46   ;;  %v1955_v42 = vrot.slane %v6512_v60, %v6045_v5  ;;  %v1916_v2 = vld [vmem:[%s6057_s9] sm:$0xf] }
 0x15e   : > { %v5495_v57 = vcombine.low %v1837_v58, %v1838_v6  ;;  %v1823_v61 = vmul.bf16 %v1777_v51, %v1631_v34  ;;  %v1842_v20 = vadd.bf16 %v1826_v36, %v1618_v22  ;;  %v2955_v6 = vld [vmem:[%s5943_s6 + $0x34] sm:$0xf]  ;;  %v2957_v51 = vld [vmem:[%s5943_s6 + $0x3c] sm:$0xf]  ;;  %v1991_v22 = vrot.slane %v6529_v45, %v6045_v5 }
 0x15f   : > { %v1791_v10 = vpop.permute.xlu1 %1790 }
 0x160   : > { %1897 = vst.msk [vmem:[#allocation2 + $0x28] sm:$0xff] %vm1891_vm2, %v5495_v57  ;;  %v1839_v47 = vadd.bf16 %v1823_v61, %v1615_v44  ;;  %v1799_v24 = vrot.slane %v1791_v10, %v6045_v5  ;;  %2766 = vperm.xlu1 %5707, %v6366_v8   ;;  %v6561_v29 = vpop.permute.xlu0 %2030  ;;  %v2953_v44 = vld [vmem:[%s5943_s6 + $0x2c] sm:$0xf]  ;;  %v2125_v57 = vmul.bf16 %v1955_v42, %v1917_v40 }
 0x161   : > { %3096 = vperm.xlu0 %5709, %v6556_v1   ;;  %v2143_v10 = vld [vmem:[%s6069_s12 + $0xc] sm:$0xf] }
 0x162   : > { %v5496_v3 = vcombine.low %v1839_v47, %v1840_v56  ;;  %v1825_v59 = vmul.bf16 %v1799_v24, %v1633_v15  ;;  %v1918_v56 = vld [vmem:[%s6057_s9 + $0x8] sm:$0xf] }
 0x164   : > { %1898 = vst.msk [vmem:[#allocation2 + $0x30] sm:$0xff] %vm1891_vm2, %v5496_v3  ;;  %v1841_v18 = vadd.bf16 %v1825_v59, %v1617_v63  ;;  %2788 = vperm.xlu1 %5707, %v6376_v14   ;;  %v6569_v62 = vpop.permute.xlu1 %1934  ;;  %v6571_v55 = vpop.permute.xlu0 %2054  ;;  %v1919_v3 = vld [vmem:[%s6057_s9 + $0xc] sm:$0xf] }
 0x165   : > { %3120 = vperm.xlu0 %5709, %v6565_v21   ;;  %v1943_v58 = vrot.slane %v6569_v62, %v6045_v5  ;;  %v6649_v62 = vld [vmem:[%s5943_s6 + $0x4] sm:$0xf] }
 0x166   : > { %v5497_v8 = vcombine.low %v1841_v18, %v1842_v20  ;;  %v2142_v18 = vld [vmem:[%s6069_s12 + $0x8] sm:$0xf] }
 0x167   : > { %v2124_v15 = vmul.bf16 %v1943_v58, %v1916_v2  ;;  %v3467_v58 = vld [vmem:[%s5943_s6 + $0x10] sm:$0xf]  ;;  %v1922_v2 = vld [vmem:[%s6057_s9 + $0x18] sm:$0xf] }
 0x168   : > { %1899 = vst.msk [vmem:[#allocation2 + $0x38] sm:$0xff] %vm1891_vm2, %v5497_v8  ;;  %2810 = vperm.xlu1 %5707, %v6386_v9   ;;  %v6579_v31 = vpop.permute.xlu1 %1958  ;;  %v6581_v54 = vpop.permute.xlu0 %2078  ;;  %v1920_v8 = vld [vmem:[%s6057_s9 + $0x10] sm:$0xf] }
 0x169   : > { %3144 = vperm.xlu0 %5709, %v6575_v7   ;;  %v1967_v36 = vrot.slane %v6579_v31, %v6045_v5  ;;  %v2128_v42 = vmul.bf16 %v1991_v22, %v1920_v8  ;;  %v2146_v22 = vld [vmem:[%s6069_s12 + $0x18] sm:$0xf] }
 0x16c   : > { %2832 = vperm.xlu1 %5707, %v6396_v13   ;;  %v6585_v14 = vpop.permute.xlu1 %1970  ;;  %v6588_v32 = vpop.permute.xlu0 %2102 }
 0x16d   : > { %5710 = vset.pattern.permute.xlu0 %v5867_v33  ;;  %v1979_v47 = vrot.slane %v6585_v14, %v6045_v5 }
 0x16e   : > { %3199 = vperm.xlu0 %5710, %v2942_v53  }
 0x170   : > { %5708 = vset.pattern.permute.xlu1 %v5866_v48  ;;  %v6592_v9 = vpop.permute.xlu1 %1994  ;;  %v2949_v48 = vld [vmem:[%s5943_s6 + $0x1c] sm:$0xf] }
 0x171   : > { %2976 = vperm.xlu1 %5708, %v2942_v53   ;;  %v2158_v35 = vpop.permute.xlu0 %2157  ;;  %v2003_v45 = vrot.slane %v6592_v9, %v6045_v5  ;;  %v2015_v9 = vrot.slane %v6548_v16, %v6045_v5 }
 0x172   : > { %3232 = vperm.xlu0 %5710, %v2945_v25   ;;  %v2166_v34 = vrot.slane %v2158_v35, %v6045_v5 }
 0x174   : > { %v6598_v13 = vpop.permute.xlu1 %2018  ;;  %v2332_v60 = vmul.bf16 %v2166_v34, %v2140_v49  ;;  %v2144_v49 = vld [vmem:[%s6069_s12 + $0x10] sm:$0xf] }
 0x175   : > { %3000 = vperm.xlu1 %5708, %v6596_v28   ;;  %v2191_v52 = vpop.permute.xlu0 %2190 }
 0x176   : > { %3254 = vperm.xlu0 %5710, %v2947_v19   ;;  %v2199_v61 = vrot.slane %v2191_v52, %v6045_v5  ;;  %v2348_v53 = vadd.bf16 %v2332_v60, %v2124_v15  ;;  %v5868_v52 = vmov 6  }
 0x178   : > { %v6602_v38 = vpop.permute.xlu1 %2042  ;;  %v2335_v31 = vmul.bf16 %v2199_v61, %v2143_v10  ;;  %v2147_v61 = vld [vmem:[%s6069_s12 + $0x1c] sm:$0xf] }
 0x179   : > { %3012 = vperm.xlu1 %5708, %v2945_v25   ;;  %v6605_v26 = vpop.permute.xlu0 %2212  ;;  %v2145_v25 = vld [vmem:[%s6069_s12 + $0x14] sm:$0xf] }
 0x17a   : > { %3276 = vperm.xlu0 %5710, %v2949_v48   ;;  %v2221_v59 = vrot.slane %v6605_v26, %v6045_v5  ;;  %v2127_v26 = vmul.bf16 %v1979_v47, %v1919_v3  ;;  %v3469_v3 = vld [vmem:[%s5943_s6 + $0x18] sm:$0xf] }
 0x17c   : > { %v6607_v27 = vpop.permute.xlu1 %2066  ;;  %v2337_v34 = vmul.bf16 %v2221_v59, %v2145_v25  ;;  %v1924_v59 = vld [vmem:[%s6057_s9 + $0x20] sm:$0xf] }
 0x17d   : > { %3036 = vperm.xlu1 %5708, %v2947_v19   ;;  %v6610_v30 = vpop.permute.xlu0 %2234 }
 0x17e   : > { %3298 = vperm.xlu0 %5710, %v2951_v50  }
 0x180   : > { %v6612_v41 = vpop.permute.xlu1 %2090 }
 0x181   : > { %3060 = vperm.xlu1 %5708, %v2949_v48   ;;  %v6615_v12 = vpop.permute.xlu0 %2256  ;;  %v2126_v48 = vmul.bf16 %v1967_v36, %v1918_v56  ;;  %v2039_v56 = vrot.slane %v6561_v29, %v6045_v5  ;;  %v1923_v36 = vld [vmem:[%s6057_s9 + $0x1c] sm:$0xf] }
 0x182   : > { %3320 = vperm.xlu0 %5710, %v2953_v44  }
 0x184   : > { %v6617_v17 = vpop.permute.xlu1 %2114 }
 0x185   : > { %3084 = vperm.xlu1 %5708, %v2951_v50   ;;  %v6623_v4 = vpop.permute.xlu0 %2278  ;;  %v1921_v50 = vld [vmem:[%s6057_s9 + $0x14] sm:$0xf] }
 0x186   : > { %3342 = vperm.xlu0 %5710, %v2955_v6   ;;  %v2129_v16 = vmul.bf16 %v2003_v45, %v1921_v50  ;;  %v1925_v45 = vld [vmem:[%s6057_s9 + $0x24] sm:$0xf]  ;;  %v6699_v50 = vld [vmem:[%s5943_s6 + $0x20] sm:$0xf] }
 0x188   : > { %v2353_v47 = vadd.bf16 %v2337_v34, %v2129_v16  ;;  %v2150_v16 = vld [vmem:[%s6069_s12 + $0x28] sm:$0xf] }
 0x189   : > { %3108 = vperm.xlu1 %5708, %v2953_v44   ;;  %v2169_v37 = vpop.permute.xlu1 %2168  ;;  %v6634_v0 = vpop.permute.xlu0 %2300 }
 0x18a   : > { %v2177_v63 = vrot.slane %v2169_v37, %v6045_v5  ;;  %3364 = vperm.xlu0 %5710, %v2957_v51   ;;  %v2351_v37 = vadd.bf16 %v2335_v31, %v2127_v26  ;;  %v2051_v31 = vrot.slane %v6602_v38, %v6045_v5  ;;  %v2148_v26 = vld [vmem:[%s6069_s12 + $0x20] sm:$0xf]  ;;  %v2151_v38 = vld [vmem:[%s6069_s12 + $0x2c] sm:$0xf] }
 0x18c   : > { %v2333_v24 = vmul.bf16 %v2177_v63, %v2141_v39  ;;  %v2243_v39 = vrot.slane %v6610_v30, %v6045_v5  ;;  %v2027_v63 = vrot.slane %v6598_v13, %v6045_v5  ;;  %v2130_v30 = vmul.bf16 %v2015_v9, %v1922_v2 }
 0x18d   : > { %3132 = vperm.xlu1 %5708, %v2955_v6   ;;  %v2180_v20 = vpop.permute.xlu1 %2179  ;;  %v6656_v19 = vpop.permute.xlu0 %2322  ;;  %v2265_v13 = vrot.slane %v6615_v12, %v6045_v5 }
 0x18e   : > { %v2349_v35 = vadd.bf16 %v2333_v24, %v2125_v57  ;;  %v2188_v14 = vrot.slane %v2180_v20, %v6045_v5  ;;  %5713 = vset.pattern.permute.xlu0 %v5868_v52  ;;  %v2339_v20 = vmul.bf16 %v2243_v39, %v2147_v61  ;;  %v2087_v39 = vrot.slane %v6581_v54, %v6045_v5  ;;  %v1928_v61 = vld [vmem:[%s6057_s9 + $0x30] sm:$0xf] }
 0x18f   : > { %3509 = vperm.xlu0 %5713, %v6649_v62  }
 0x190   : > { %v5498_v44 = vcombine.low %v2348_v53, %v2349_v35  ;;  %v2334_v6 = vmul.bf16 %v2188_v14, %v2142_v18  ;;  %v2131_v53 = vmul.bf16 %v2027_v63, %v1923_v36  ;;  %v2132_v35 = vmul.bf16 %v2039_v56, %v1924_v59 }
 0x191   : > { %3156 = vperm.xlu1 %5708, %v2957_v51   ;;  %v2202_v40 = vpop.permute.xlu1 %2201  ;;  %v2063_v14 = vrot.slane %v6571_v55, %v6045_v5  ;;  %v2309_v63 = vrot.slane %v6634_v0, %v6045_v5  ;;  %v2099_v36 = vrot.slane %v6612_v41, %v6045_v5  ;;  %v2136_v0 = vmul.bf16 %v2087_v39, %v1928_v61 }
 0x192   : > { %2413 = vst.msk [vmem:[#allocation2] sm:$0xff] %vm2412_vm3, %v5498_v44  ;;  %v2350_v57 = vadd.bf16 %v2334_v6, %v2126_v48  ;;  %v2210_v60 = vrot.slane %v2202_v40, %v6045_v5  ;;  %v6671_v51 = vpop.permute.xlu0 %2467  ;;  %v1926_v44 = vld [vmem:[%s6057_s9 + $0x28] sm:$0xf]  ;;  %v2355_v6 = vadd.bf16 %v2339_v20, %v2131_v53  ;;  %v2133_v40 = vmul.bf16 %v2051_v31, %v1925_v45 }
 0x193   : > { %3545 = vperm.xlu0 %5713, %v3467_v58   ;;  %v2331_v41 = vrot.slane %v6656_v19, %v6045_v5  ;;  %v1931_v19 = vld [vmem:[%s6057_s9 + $0x3c] sm:$0xf] }
 0x194   : > { %v5499_v10 = vcombine.low %v2350_v57, %v2351_v37  ;;  %v2336_v15 = vmul.bf16 %v2210_v60, %v2144_v49  ;;  %v1927_v49 = vld [vmem:[%s6057_s9 + $0x2c] sm:$0xf]  ;;  %v2134_v37 = vmul.bf16 %v2063_v14, %v1926_v44 }
 0x195   : > { %5711 = vset.pattern.permute.xlu1 %v5867_v33  ;;  %v2224_v24 = vpop.permute.xlu1 %2223  ;;  %v2149_v33 = vld [vmem:[%s6069_s12 + $0x24] sm:$0xf] }
 0x196   : > { %2414 = vst.msk [vmem:[#allocation2 + $0x8] sm:$0xff] %vm2412_vm3, %v5499_v10  ;;  %v2352_v18 = vadd.bf16 %v2336_v15, %v2128_v42  ;;  %v2232_v29 = vrot.slane %v2224_v24, %v6045_v5  ;;  %3210 = vperm.xlu1 %5711, %v6481_v43   ;;  %v6688_v8 = vpop.permute.xlu0 %2503  ;;  %v2287_v43 = vrot.slane %v6623_v4, %v6045_v5 }
 0x197   : > { %3569 = vperm.xlu0 %5713, %v3469_v3   ;;  %v2341_v42 = vmul.bf16 %v2265_v13, %v2149_v33  ;;  %v2075_v4 = vrot.slane %v6607_v27, %v6045_v5  ;;  %v1929_v3 = vld [vmem:[%s6057_s9 + $0x34] sm:$0xf] }
 0x198   : > { %v5500_v25 = vcombine.low %v2352_v18, %v2353_v47  ;;  %v2338_v12 = vmul.bf16 %v2232_v29, %v2146_v22  ;;  %v2343_v57 = vmul.bf16 %v2287_v43, %v2151_v38  ;;  %v2111_v22 = vrot.slane %v6588_v32, %v6045_v5  ;;  %v3476_v13 = vld [vmem:[%s5943_s6 + $0x34] sm:$0xf]  ;;  %v1930_v18 = vld [vmem:[%s6057_s9 + $0x38] sm:$0xf]  ;;  %v2155_v32 = vld [vmem:[%s6069_s12 + $0x3c] sm:$0xf] }
 0x199   : > { %v2246_v48 = vpop.permute.xlu1 %2245  ;;  %v2357_v27 = vadd.bf16 %v2341_v42, %v2133_v40  ;;  %v2135_v54 = vmul.bf16 %v2075_v4, %v1927_v49 }
 0x19a   : > { %2415 = vst.msk [vmem:[#allocation2 + $0x10] sm:$0xff] %vm2412_vm3, %v5500_v25  ;;  %v2354_v9 = vadd.bf16 %v2338_v12, %v2130_v30  ;;  %v2254_v55 = vrot.slane %v2246_v48, %v6045_v5  ;;  %3221 = vperm.xlu1 %5711, %v6596_v28   ;;  %v6708_v34 = vpop.permute.xlu0 %2527  ;;  %v6716_v28 = vld [vmem:[%s5943_s6 + $0x28] sm:$0xf]  ;;  %v2153_v30 = vld [vmem:[%s6069_s12 + $0x34] sm:$0xf]  ;;  %v2137_v25 = vmul.bf16 %v2099_v36, %v1929_v3 }
 0x19b   : > { %3593 = vperm.xlu0 %5713, %v6699_v50   ;;  %v2359_v59 = vadd.bf16 %v2343_v57, %v2135_v54  ;;  %v2345_v29 = vmul.bf16 %v2309_v63, %v2153_v30  ;;  %v2123_v12 = vrot.slane %v6617_v17, %v6045_v5  ;;  %v2138_v45 = vmul.bf16 %v2111_v22, %v1930_v18  ;;  %v2154_v48 = vld [vmem:[%s6069_s12 + $0x38] sm:$0xf]  ;;  %v6806_v22 = vld [vmem:[%s5943_s6 + $0x4] sm:$0xf] }
 0x19c   : > { %v5501_v58 = vcombine.low %v2354_v9, %v2355_v6  ;;  %v2340_v2 = vmul.bf16 %v2254_v55, %v2148_v26  ;;  %v3478_v26 = vld [vmem:[%s5943_s6 + $0x3c] sm:$0xf]  ;;  %v2347_v6 = vmul.bf16 %v2331_v41, %v2155_v32  ;;  %v6794_v36 = vld [vmem:[%s5943_s6 + $0x38] sm:$0xf]  ;;  %v2661_v32 = vld [vmem:[%s6069_s12] sm:$0xf] }
 0x19d   : > { %v2268_v60 = vpop.permute.xlu1 %2267  ;;  %v2361_v44 = vadd.bf16 %v2345_v29, %v2137_v25  ;;  %v2139_v17 = vmul.bf16 %v2123_v12, %v1931_v19  ;;  %v2438_v25 = vld [vmem:[%s6057_s9 + $0x4] sm:$0xf] }
 0x19e   : > { %2416 = vst.msk [vmem:[#allocation2 + $0x18] sm:$0xff] %vm2412_vm3, %v5501_v58  ;;  %v2356_v10 = vadd.bf16 %v2340_v2, %v2132_v35  ;;  %v2276_v15 = vrot.slane %v2268_v60, %v6045_v5  ;;  %3243 = vperm.xlu1 %5711, %v6503_v23   ;;  %v6725_v56 = vpop.permute.xlu0 %2551  ;;  %v2152_v23 = vld [vmem:[%s6069_s12 + $0x30] sm:$0xf]  ;;  %v3463_v58 = vld [vmem:[%s5943_s6] sm:$0xf] }
 0x19f   : > { %3617 = vperm.xlu0 %5713, %v6716_v28   ;;  %v2363_v4 = vadd.bf16 %v2347_v6, %v2139_v17  ;;  %v2664_v17 = vld [vmem:[%s6069_s12 + $0xc] sm:$0xf] }
 0x1a0   : > { %v5502_v47 = vcombine.low %v2356_v10, %v2357_v27  ;;  %v2342_v24 = vmul.bf16 %v2276_v15, %v2150_v16  ;;  %v3466_v16 = vld [vmem:[%s5943_s6 + $0xc] sm:$0xf]  ;;  %v6780_v10 = vld [vmem:[%s5943_s6 + $0x8] sm:$0xf]  ;;  %v6785_v15 = vld [vmem:[%s5943_s6 + $0x30] sm:$0xf] }
 0x1a1   : > { %v2290_v20 = vpop.permute.xlu1 %2289 }
 0x1a2   : > { %2417 = vst.msk [vmem:[#allocation2 + $0x20] sm:$0xff] %vm2412_vm3, %v5502_v47  ;;  %v2358_v33 = vadd.bf16 %v2342_v24, %v2134_v37  ;;  %v2298_v53 = vrot.slane %v2290_v20, %v6045_v5  ;;  %3265 = vperm.xlu1 %5711, %v6520_v11   ;;  %v6742_v31 = vpop.permute.xlu0 %2575  ;;  %v7639_v37 = vmov 15   ;;  %v6799_v24 = vld [vmem:[%s5943_s6 + $0x14] sm:$0xf]  ;;  %v7637_v20 = vmov 7  }
 0x1a3   : > { %3653 = vperm.xlu0 %5713, %v3476_v13   ;;  %v6819_v13 = vld [vmem:[%s5943_s6 + $0xc] sm:$0xf] }
 0x1a4   : > { %v5503_v35 = vcombine.low %v2358_v33, %v2359_v59  ;;  %v2344_v14 = vmul.bf16 %v2298_v53, %v2152_v23  ;;  %v6811_v59 = vld [vmem:[%s5943_s6 + $0x1c] sm:$0xf]  ;;  %v3989_v33 = vld [vmem:[%s5943_s6 + $0x14] sm:$0xf]  ;;  %v2476_v53 = vrot.slane %v6671_v51, %v6045_v5 }
 0x1a5   : > { %v2312_v43 = vpop.permute.xlu1 %2311 }
 0x1a6   : > { %2418 = vst.msk [vmem:[#allocation2 + $0x28] sm:$0xff] %vm2412_vm3, %v5503_v35  ;;  %v2360_v11 = vadd.bf16 %v2344_v14, %v2136_v0  ;;  %v2320_v42 = vrot.slane %v2312_v43, %v6045_v5  ;;  %3287 = vperm.xlu1 %5711, %v6539_v46   ;;  %v6752_v38 = vpop.permute.xlu0 %2599  ;;  %v2437_v14 = vld [vmem:[%s6057_s9] sm:$0xf]  ;;  %v2662_v43 = vld [vmem:[%s6069_s12 + $0x4] sm:$0xf] }
 0x1a7   : > { %3677 = vperm.xlu0 %5713, %v3478_v26   ;;  %v2646_v26 = vmul.bf16 %v2476_v53, %v2438_v25  ;;  %v2536_v53 = vrot.slane %v6708_v34, %v6045_v5  ;;  %v2665_v34 = vld [vmem:[%s6069_s12 + $0x10] sm:$0xf] }
 0x1a8   : > { %v5504_v9 = vcombine.low %v2360_v11, %v2361_v44  ;;  %v2346_v55 = vmul.bf16 %v2320_v42, %v2154_v48  ;;  %v3991_v48 = vld [vmem:[%s5943_s6 + $0x1c] sm:$0xf]  ;;  %v2440_v42 = vld [vmem:[%s6057_s9 + $0xc] sm:$0xf] }
 0x1aa   : > { %2419 = vst.msk [vmem:[#allocation2 + $0x30] sm:$0xff] %vm2412_vm3, %v5504_v9  ;;  %v2362_v40 = vadd.bf16 %v2346_v55, %v2138_v45  ;;  %3309 = vperm.xlu1 %5711, %v6556_v1   ;;  %v6756_v49 = vpop.permute.xlu1 %2455  ;;  %v6759_v2 = vpop.permute.xlu0 %2623  ;;  %v3472_v1 = vld [vmem:[%s5943_s6 + $0x24] sm:$0xf] }
 0x1ab   : > { %5726 = vset.pattern.permute.xlu0 %v7639_v37  ;;  %v2464_v12 = vrot.slane %v6756_v49, %v6045_v5  ;;  %v2439_v49 = vld [vmem:[%s6057_s9 + $0x8] sm:$0xf] }
 0x1ac   : > { %v5505_v46 = vcombine.low %v2362_v40, %v2363_v4  ;;  %3720 = vperm.xlu0 %5726, %v3463_v58   ;;  %v2512_v40 = vrot.slane %v6688_v8, %v6045_v5 }
 0x1ad   : > { %v2645_v11 = vmul.bf16 %v2464_v12, %v2437_v14  ;;  %v7635_v14 = vmov 16  }
 0x1ae   : > { %2420 = vst.msk [vmem:[#allocation2 + $0x38] sm:$0xff] %vm2412_vm3, %v5505_v46  ;;  %3331 = vperm.xlu1 %5711, %v6565_v21   ;;  %v6764_v39 = vpop.permute.xlu1 %2479  ;;  %v3474_v21 = vld [vmem:[%s5943_s6 + $0x2c] sm:$0xf] }
 0x1af   : > { %v2679_v57 = vpop.permute.xlu0 %2678  ;;  %v2488_v55 = vrot.slane %v6764_v39, %v6045_v5 }
 0x1b0   : > { %3819 = vperm.xlu0 %5726, %v3472_v1   ;;  %v2687_v41 = vrot.slane %v2679_v57, %v6045_v5 }
 0x1b2   : > { %3353 = vperm.xlu1 %5711, %v6575_v7   ;;  %v6768_v60 = vpop.permute.xlu1 %2491  ;;  %v2853_v45 = vmul.bf16 %v2687_v41, %v2661_v32  ;;  %v2647_v32 = vmul.bf16 %v2488_v55, %v2439_v49  ;;  %v2560_v55 = vrot.slane %v6725_v56, %v6045_v5 }
 0x1b3   : > { %v6771_v61 = vpop.permute.xlu0 %2711  ;;  %v2500_v51 = vrot.slane %v6768_v60, %v6045_v5  ;;  %v2663_v60 = vld [vmem:[%s6069_s12 + $0x8] sm:$0xf] }
 0x1b4   : > { %3753 = vperm.xlu0 %5726, %v3466_v16   ;;  %v2720_v44 = vrot.slane %v6771_v61, %v6045_v5  ;;  %v2442_v61 = vld [vmem:[%s6057_s9 + $0x14] sm:$0xf] }
 0x1b5   : > { %v2648_v39 = vmul.bf16 %v2500_v51, %v2440_v42 }
 0x1b6   : > { %5712 = vset.pattern.permute.xlu1 %v5868_v52  ;;  %v6774_v27 = vpop.permute.xlu1 %2515 }
 0x1b7   : > { %3497 = vperm.xlu1 %5712, %v3463_v58   ;;  %v6777_v63 = vpop.permute.xlu0 %2733  ;;  %v2869_v58 = vadd.bf16 %v2853_v45, %v2645_v11  ;;  %v2524_v46 = vrot.slane %v6774_v27, %v6045_v5  ;;  %v2441_v27 = vld [vmem:[%s6057_s9 + $0x10] sm:$0xf]  ;;  %v2443_v45 = vld [vmem:[%s6057_s9 + $0x18] sm:$0xf]  ;;  %v2668_v11 = vld [vmem:[%s6069_s12 + $0x1c] sm:$0xf] }
 0x1b8   : > { %3841 = vperm.xlu0 %5726, %v3474_v21   ;;  %v2649_v51 = vmul.bf16 %v2512_v40, %v2441_v27  ;;  %v2651_v49 = vmul.bf16 %v2536_v53, %v2443_v45 }
 0x1ba   : > { %v6782_v7 = vpop.permute.xlu1 %2539 }
 0x1bb   : > { %3521 = vperm.xlu1 %5712, %v6780_v10   ;;  %v6788_v54 = vpop.permute.xlu0 %2755 }
 0x1bc   : > { %3852 = vperm.xlu0 %5726, %v6785_v15  }
 0x1be   : > { %v6791_v30 = vpop.permute.xlu1 %2563 }
 0x1bf   : > { %3533 = vperm.xlu1 %5712, %v3466_v16   ;;  %v6796_v47 = vpop.permute.xlu0 %2777  ;;  %v2856_v16 = vmul.bf16 %v2720_v44, %v2664_v17 }
 0x1c0   : > { %3874 = vperm.xlu0 %5726, %v6794_v36   ;;  %v2786_v56 = vrot.slane %v6796_v47, %v6045_v5  ;;  %v2584_v47 = vrot.slane %v6742_v31, %v6045_v5 }
 0x1c1   : > { %v2872_v44 = vadd.bf16 %v2856_v16, %v2648_v39  ;;  %v2667_v39 = vld [vmem:[%s6069_s12 + $0x18] sm:$0xf] }
 0x1c2   : > { %v6802_v0 = vpop.permute.xlu1 %2587 }
 0x1c3   : > { %3557 = vperm.xlu1 %5712, %v6799_v24   ;;  %v6808_v3 = vpop.permute.xlu0 %2799 }
 0x1c4   : > { %5728 = vset.pattern.permute.xlu0 %v7637_v20 }
 0x1c5   : > { %4030 = vperm.xlu0 %5728, %v6806_v22  }
 0x1c6   : > { %v6814_v23 = vpop.permute.xlu1 %2611 }
 0x1c7   : > { %3581 = vperm.xlu1 %5712, %v6811_v59   ;;  %v6821_v18 = vpop.permute.xlu0 %2821 }
 0x1c9   : > { %4054 = vperm.xlu0 %5728, %v6819_v13  }
 0x1ca   : > { %v6823_v29 = vpop.permute.xlu1 %2635 }
 0x1cb   : > { %3605 = vperm.xlu1 %5712, %v3472_v1   ;;  %v6834_v35 = vpop.permute.xlu0 %2843  ;;  %v2742_v1 = vrot.slane %v6777_v63, %v6045_v5 }
 0x1cd   : > { %4078 = vperm.xlu0 %5728, %v3989_v33   ;;  %v6864_v33 = vld [vmem:[%s5943_s6] sm:$0xf] }
 0x1cf   : > { %3629 = vperm.xlu1 %5712, %v3474_v21   ;;  %v2690_v19 = vpop.permute.xlu1 %2689  ;;  %v2666_v21 = vld [vmem:[%s6069_s12 + $0x14] sm:$0xf] }
 0x1d0   : > { %v2698_v6 = vrot.slane %v2690_v19, %v6045_v5  ;;  %v6846_v9 = vpop.permute.xlu0 %2988  ;;  %v2858_v19 = vmul.bf16 %v2742_v1, %v2666_v21  ;;  %v6902_v21 = vld [vmem:[%s5943_s6 + $0x8] sm:$0xf] }
 0x1d1   : > { %4102 = vperm.xlu0 %5728, %v3991_v48   ;;  %v2764_v48 = vrot.slane %v6788_v54, %v6045_v5 }
 0x1d2   : > { %v2854_v4 = vmul.bf16 %v2698_v6, %v2662_v43  ;;  %v2548_v43 = vrot.slane %v6782_v7, %v6045_v5  ;;  %v2444_v6 = vld [vmem:[%s6057_s9 + $0x1c] sm:$0xf]  ;;  %v6885_v7 = vld [vmem:[%s5943_s6 + $0x24] sm:$0xf] }
 0x1d3   : > { %5714 = vset.pattern.permute.xlu1 %v7639_v37  ;;  %v2701_v57 = vpop.permute.xlu1 %2700  ;;  %v3187_v37 = vld [vmem:[%s6069_s12 + $0x14] sm:$0xf] }
 0x1d4   : > { %v2870_v41 = vadd.bf16 %v2854_v4, %v2646_v26  ;;  %v2709_v8 = vrot.slane %v2701_v57, %v6045_v5  ;;  %3731 = vperm.xlu1 %5714, %v6649_v62   ;;  %v6867_v63 = vpop.permute.xlu0 %3024  ;;  %v2650_v62 = vmul.bf16 %v2524_v46, %v2442_v61  ;;  %v2652_v1 = vmul.bf16 %v2548_v43, %v2444_v6 }
 0x1d5   : > { %5732 = vset.pattern.permute.xlu0 %v7635_v14  ;;  %v2860_v57 = vmul.bf16 %v2764_v48, %v2668_v11  ;;  %v2448_v48 = vld [vmem:[%s6057_s9 + $0x2c] sm:$0xf] }
 0x1d6   : > { %v5506_v25 = vcombine.low %v2869_v58, %v2870_v41  ;;  %v2855_v12 = vmul.bf16 %v2709_v8, %v2663_v60  ;;  %4241 = vperm.xlu0 %5732, %v6864_v33   ;;  %v2445_v58 = vld [vmem:[%s6057_s9 + $0x20] sm:$0xf]  ;;  %v2874_v46 = vadd.bf16 %v2858_v19, %v2650_v62  ;;  %v2446_v41 = vld [vmem:[%s6057_s9 + $0x24] sm:$0xf] }
 0x1d7   : > { %v2723_v26 = vpop.permute.xlu1 %2722  ;;  %v2670_v8 = vld [vmem:[%s6069_s12 + $0x24] sm:$0xf]  ;;  %v2669_v62 = vld [vmem:[%s6069_s12 + $0x20] sm:$0xf] }
 0x1d8   : > { %2934 = vst.msk [vmem:[#allocation2] sm:$0xff] %vm2933_vm4, %v5506_v25  ;;  %v2871_v42 = vadd.bf16 %v2855_v12, %v2647_v32  ;;  %v2731_v17 = vrot.slane %v2723_v26, %v6045_v5  ;;  %3808 = vperm.xlu1 %5714, %v6699_v50   ;;  %v6887_v54 = vpop.permute.xlu0 %3048  ;;  %v2572_v50 = vrot.slane %v6791_v30, %v6045_v5  ;;  %v2672_v26 = vld [vmem:[%s6069_s12 + $0x2c] sm:$0xf] }
 0x1d9   : > { %v2653_v30 = vmul.bf16 %v2560_v55, %v2445_v58  ;;  %v2876_v25 = vadd.bf16 %v2860_v57, %v2652_v1  ;;  %v2808_v12 = vrot.slane %v6808_v3, %v6045_v5  ;;  %v2862_v43 = vmul.bf16 %v2786_v56, %v2670_v8  ;;  %v2447_v3 = vld [vmem:[%s6057_s9 + $0x28] sm:$0xf]  ;;  %v2674_v1 = vld [vmem:[%s6069_s12 + $0x34] sm:$0xf] }
 0x1da   : > { %v5507_v4 = vcombine.low %v2871_v42, %v2872_v44  ;;  %v2857_v40 = vmul.bf16 %v2731_v17, %v2665_v34  ;;  %4340 = vperm.xlu0 %5732, %v6885_v7   ;;  %v2654_v19 = vmul.bf16 %v2572_v50, %v2446_v41  ;;  %v2608_v44 = vrot.slane %v6752_v38, %v6045_v5  ;;  %v2449_v42 = vld [vmem:[%s6057_s9 + $0x30] sm:$0xf]  ;;  %v2450_v38 = vld [vmem:[%s6057_s9 + $0x34] sm:$0xf] }
 0x1db   : > { %v2745_v60 = vpop.permute.xlu1 %2744  ;;  %v2864_v55 = vmul.bf16 %v2808_v12, %v2672_v26  ;;  %v2655_v58 = vmul.bf16 %v2584_v47, %v2447_v3  ;;  %v2644_v47 = vrot.slane %v6823_v29, %v6045_v5  ;;  %v6960_v12 = vld [vmem:[%s5943_s6 + $0x34] sm:$0xf] }
 0x1dc   : > { %2935 = vst.msk [vmem:[#allocation2 + $0x8] sm:$0xff] %vm2933_vm4, %v5507_v4  ;;  %v2873_v16 = vadd.bf16 %v2857_v40, %v2649_v51  ;;  %v2753_v61 = vrot.slane %v2745_v60, %v6045_v5  ;;  %3742 = vperm.xlu1 %5714, %v6780_v10   ;;  %v6906_v27 = vpop.permute.xlu0 %3072  ;;  %v2596_v10 = vrot.slane %v6802_v0, %v6045_v5  ;;  %v6922_v0 = vld [vmem:[%s5943_s6 + $0x2c] sm:$0xf] }
 0x1dd   : > { %v2620_v4 = vrot.slane %v6814_v23, %v6045_v5  ;;  %v6942_v23 = vld [vmem:[%s5943_s6 + $0x10] sm:$0xf] }
 0x1de   : > { %v5508_v53 = vcombine.low %v2873_v16, %v2874_v46  ;;  %v2859_v32 = vmul.bf16 %v2753_v61, %v2667_v39  ;;  %4263 = vperm.xlu0 %5732, %v6902_v21   ;;  %v2656_v17 = vmul.bf16 %v2596_v10, %v2448_v48  ;;  %v2878_v46 = vadd.bf16 %v2862_v43, %v2654_v19  ;;  %v3992_v16 = vld [vmem:[%s5943_s6 + $0x20] sm:$0xf] }
 0x1df   : > { %v2767_v45 = vpop.permute.xlu1 %2766  ;;  %v2657_v39 = vmul.bf16 %v2608_v44, %v2449_v42  ;;  %v2632_v61 = vrot.slane %v6759_v2, %v6045_v5  ;;  %v2658_v8 = vmul.bf16 %v2620_v4, %v2450_v38  ;;  %v6990_v38 = vld [vmem:[%s5943_s6 + $0x4] sm:$0xf] }
 0x1e0   : > { %2936 = vst.msk [vmem:[#allocation2 + $0x10] sm:$0xff] %vm2933_vm4, %v5508_v53  ;;  %v2875_v31 = vadd.bf16 %v2859_v32, %v2651_v49  ;;  %v2775_v34 = vrot.slane %v2767_v45, %v6045_v5  ;;  %3830 = vperm.xlu1 %5714, %v6716_v28   ;;  %v6925_v51 = vpop.permute.xlu0 %3096  ;;  %v2830_v28 = vrot.slane %v6821_v18, %v6045_v5  ;;  %v2671_v49 = vld [vmem:[%s6069_s12 + $0x28] sm:$0xf]  ;;  %v2673_v32 = vld [vmem:[%s6069_s12 + $0x30] sm:$0xf] }
 0x1e1   : > { %v2880_v41 = vadd.bf16 %v2864_v55, %v2656_v17  ;;  %v2452_v45 = vld [vmem:[%s6057_s9 + $0x3c] sm:$0xf] }
 0x1e2   : > { %v5509_v6 = vcombine.low %v2875_v31, %v2876_v25  ;;  %v2861_v11 = vmul.bf16 %v2775_v34, %v2669_v62  ;;  %4362 = vperm.xlu0 %5732, %v6922_v0   ;;  %v2852_v25 = vrot.slane %v6834_v35, %v6045_v5  ;;  %v2676_v62 = vld [vmem:[%s6069_s12 + $0x3c] sm:$0xf]  ;;  %v2675_v34 = vld [vmem:[%s6069_s12 + $0x38] sm:$0xf]  ;;  %v2660_v35 = vmul.bf16 %v2644_v47, %v2452_v45 }
 0x1e3   : > { %v2789_v40 = vpop.permute.xlu1 %2788  ;;  %v5873_v47 = vmov 17  }
 0x1e4   : > { %2937 = vst.msk [vmem:[#allocation2 + $0x18] sm:$0xff] %vm2933_vm4, %v5509_v6  ;;  %v2877_v57 = vadd.bf16 %v2861_v11, %v2653_v30  ;;  %v2797_v60 = vrot.slane %v2789_v40, %v6045_v5  ;;  %5715 = vset.pattern.permute.xlu1 %v7637_v20  ;;  %v6945_v18 = vpop.permute.xlu0 %3120  ;;  %v2866_v30 = vmul.bf16 %v2830_v28, %v2674_v1  ;;  %v6971_v11 = vld [vmem:[%s5943_s6 + $0x18] sm:$0xf] }
 0x1e5   : > { %4018 = vperm.xlu1 %5715, %v6864_v33   ;;  %v2451_v33 = vld [vmem:[%s6057_s9 + $0x38] sm:$0xf]  ;;  %v2868_v3 = vmul.bf16 %v2852_v25, %v2676_v62  ;;  %v2958_v62 = vld [vmem:[%s6057_s9] sm:$0xf] }
 0x1e6   : > { %v5510_v50 = vcombine.low %v2877_v57, %v2878_v46  ;;  %v2863_v56 = vmul.bf16 %v2797_v60, %v2671_v49  ;;  %4285 = vperm.xlu0 %5732, %v6942_v23   ;;  %v2659_v26 = vmul.bf16 %v2632_v61, %v2451_v33  ;;  %v2882_v29 = vadd.bf16 %v2866_v30, %v2658_v8  ;;  %v6979_v49 = vld [vmem:[%s5943_s6 + $0x3c] sm:$0xf]  ;;  %v6999_v60 = vld [vmem:[%s5943_s6 + $0xc] sm:$0xf] }
 0x1e7   : > { %v2811_v53 = vpop.permute.xlu1 %2810  ;;  %v2884_v4 = vadd.bf16 %v2868_v3, %v2660_v35  ;;  %v5872_v57 = vmov 8   ;;  %v7018_v8 = vld [vmem:[%s5943_s6 + $0x1c] sm:$0xf]  ;;  %v2959_v35 = vld [vmem:[%s6057_s9 + $0x4] sm:$0xf] }
 0x1e8   : > { %2938 = vst.msk [vmem:[#allocation2 + $0x20] sm:$0xff] %vm2933_vm4, %v5510_v50  ;;  %v2879_v10 = vadd.bf16 %v2863_v56, %v2655_v58  ;;  %v2819_v2 = vrot.slane %v2811_v53, %v6045_v5  ;;  %v6964_v19 = vpop.permute.xlu0 %3144  ;;  %v3994_v56 = vld [vmem:[%s5943_s6 + $0x28] sm:$0xf] }
 0x1e9   : > { %4114 = vperm.xlu1 %5715, %v3992_v16  }
 0x1ea   : > { %v5511_v43 = vcombine.low %v2879_v10, %v2880_v41  ;;  %v2865_v48 = vmul.bf16 %v2819_v2, %v2673_v32  ;;  %4384 = vperm.xlu0 %5732, %v6960_v12   ;;  %v4505_v32 = vld [vmem:[%s5943_s6] sm:$0xf]  ;;  %v7040_v2 = vld [vmem:[%s5943_s6 + $0x8] sm:$0xf] }
 0x1eb   : > { %v2833_v31 = vpop.permute.xlu1 %2832 }
 0x1ec   : > { %2939 = vst.msk [vmem:[#allocation2 + $0x28] sm:$0xff] %vm2933_vm4, %v5511_v43  ;;  %v2881_v44 = vadd.bf16 %v2865_v48, %v2657_v39  ;;  %v2841_v6 = vrot.slane %v2833_v31, %v6045_v5  ;;  %v7056_v31 = vld [vmem:[%s5943_s6 + $0x20] sm:$0xf] }
 0x1ed   : > { %4126 = vperm.xlu1 %5715, %v6885_v7   ;;  %v6974_v55 = vpop.permute.xlu0 %3199 }
 0x1ee   : > { %v5512_v42 = vcombine.low %v2881_v44, %v2882_v29  ;;  %v2867_v17 = vmul.bf16 %v2841_v6, %v2675_v34  ;;  %4307 = vperm.xlu0 %5732, %v6971_v11   ;;  %v3208_v48 = vrot.slane %v6974_v55, %v6045_v5  ;;  %v3182_v29 = vld [vmem:[%s6069_s12] sm:$0xf]  ;;  %v7059_v34 = vld [vmem:[%s5943_s6 + $0x2c] sm:$0xf] }
 0x1f0   : > { %2940 = vst.msk [vmem:[#allocation2 + $0x30] sm:$0xff] %vm2933_vm4, %v5512_v42  ;;  %v2883_v28 = vadd.bf16 %v2867_v17, %v2659_v26  ;;  %v2977_v40 = vpop.permute.xlu1 %2976  ;;  %v2997_v26 = vrot.slane %v6846_v9, %v6045_v5  ;;  %v3374_v6 = vmul.bf16 %v3208_v48, %v3182_v29  ;;  %v3183_v17 = vld [vmem:[%s6069_s12 + $0x4] sm:$0xf] }
 0x1f1   : > { %5716 = vset.pattern.permute.xlu1 %v7635_v14  ;;  %v6983_v7 = vpop.permute.xlu0 %3232  ;;  %v2985_v43 = vrot.slane %v2977_v40, %v6045_v5 }
 0x1f2   : > { %v5513_v58 = vcombine.low %v2883_v28, %v2884_v4  ;;  %4252 = vperm.xlu1 %5716, %v6806_v22   ;;  %4406 = vperm.xlu0 %5732, %v6979_v49   ;;  %v3241_v42 = vrot.slane %v6983_v7, %v6045_v5  ;;  %v3167_v55 = vmul.bf16 %v2997_v26, %v2959_v35  ;;  %v3185_v28 = vld [vmem:[%s6069_s12 + $0xc] sm:$0xf]  ;;  %v2960_v26 = vld [vmem:[%s6057_s9 + $0x8] sm:$0xf] }
 0x1f3   : > { %v3166_v44 = vmul.bf16 %v2985_v43, %v2958_v62  ;;  %v3033_v7 = vrot.slane %v6867_v63, %v6045_v5  ;;  %v2962_v62 = vld [vmem:[%s6057_s9 + $0x10] sm:$0xf]  ;;  %v3184_v63 = vld [vmem:[%s6069_s12 + $0x8] sm:$0xf] }
 0x1f4   : > { %2941 = vst.msk [vmem:[#allocation2 + $0x38] sm:$0xff] %vm2933_vm4, %v5513_v58  ;;  %v6987_v46 = vpop.permute.xlu1 %3000  ;;  %v7074_v58 = vld [vmem:[%s5943_s6 + $0x10] sm:$0xf]  ;;  %v3377_v29 = vmul.bf16 %v3241_v42, %v3185_v28  ;;  %v2963_v42 = vld [vmem:[%s6057_s9 + $0x14] sm:$0xf] }
 0x1f5   : > { %v6992_v1 = vpop.permute.xlu0 %3254  ;;  %v3009_v43 = vrot.slane %v6987_v46, %v6045_v5 }
 0x1f6   : > { %4329 = vperm.xlu1 %5716, %v3992_v16   ;;  %5734 = vset.pattern.permute.xlu0 %v5872_v57  ;;  %v7010_v16 = vld [vmem:[%s5943_s6 + $0x14] sm:$0xf]  ;;  %v3263_v35 = vrot.slane %v6992_v1, %v6045_v5 }
 0x1f7   : > { %4551 = vperm.xlu0 %5734, %v6990_v38  }
 0x1f8   : > { %v6995_v22 = vpop.permute.xlu1 %3012 }
 0x1f9   : > { %v7002_v39 = vpop.permute.xlu0 %3276  ;;  %v3021_v4 = vrot.slane %v6995_v22, %v6045_v5  ;;  %v3390_v22 = vadd.bf16 %v3374_v6, %v3166_v44  ;;  %v7094_v44 = vld [vmem:[%s5943_s6 + $0x34] sm:$0xf]  ;;  %v3170_v6 = vmul.bf16 %v3033_v7, %v2962_v62 }
 0x1fa   : > { %5717 = vset.pattern.permute.xlu1 %v7637_v20  ;;  %v3285_v7 = vrot.slane %v7002_v39, %v6045_v5  ;;  %v7115_v39 = vld [vmem:[%s5943_s6 + $0x18] sm:$0xf] }
 0x1fb   : > { %4042 = vperm.xlu1 %5717, %v6902_v21   ;;  %4575 = vperm.xlu0 %5734, %v6999_v60  }
 0x1fc   : > { %v7005_v50 = vpop.permute.xlu1 %3036 }
 0x1fd   : > { %v7012_v61 = vpop.permute.xlu0 %3298  ;;  %v3045_v20 = vrot.slane %v7005_v50, %v6045_v5 }
 0x1ff   : > { %4138 = vperm.xlu1 %5717, %v3994_v56   ;;  %4599 = vperm.xlu0 %5734, %v7010_v16  }
 0x200   : > { %v7014_v41 = vpop.permute.xlu1 %3060 }
 0x201   : > { %v7020_v30 = vpop.permute.xlu0 %3320 }
 0x203   : > { %4150 = vperm.xlu1 %5717, %v6922_v0   ;;  %4623 = vperm.xlu0 %5734, %v7018_v8   ;;  %v4514_v0 = vld [vmem:[%s5943_s6 + $0x24] sm:$0xf] }
 0x204   : > { %v7023_v21 = vpop.permute.xlu1 %3084 }
 0x205   : > { %v7026_v53 = vpop.permute.xlu0 %3342 }
 0x207   : > { %5718 = vset.pattern.permute.xlu1 %v7635_v14  ;;  %5738 = vset.pattern.permute.xlu0 %v5873_v47 }
 0x208   : > { %4274 = vperm.xlu1 %5718, %v6819_v13   ;;  %v7031_v33 = vpop.permute.xlu1 %3108  ;;  %4762 = vperm.xlu0 %5738, %v4505_v32  }
 0x209   : > { %v7035_v25 = vpop.permute.xlu0 %3364 }
 0x20c   : > { %4351 = vperm.xlu1 %5718, %v3994_v56   ;;  %v7037_v10 = vpop.permute.xlu1 %3132  ;;  %4861 = vperm.xlu0 %5738, %v4514_v0   ;;  %v2961_v56 = vld [vmem:[%s6057_s9 + $0xc] sm:$0xf] }
 0x20d   : > { %v3169_v14 = vmul.bf16 %v3021_v4, %v2961_v56  ;;  %v3168_v4 = vmul.bf16 %v3009_v43, %v2960_v26  ;;  %v3069_v56 = vrot.slane %v7014_v41, %v6045_v5  ;;  %v3171_v43 = vmul.bf16 %v3045_v20, %v2963_v42  ;;  %v3189_v26 = vld [vmem:[%s6069_s12 + $0x1c] sm:$0xf] }
 0x20e   : > { %v7042_v13 = vpop.permute.xlu0 %3509  ;;  %v3307_v42 = vrot.slane %v7012_v61, %v6045_v5  ;;  %v2967_v61 = vld [vmem:[%s6057_s9 + $0x24] sm:$0xf] }
 0x210   : > { %5719 = vset.pattern.permute.xlu1 %v5872_v57  ;;  %v7045_v45 = vpop.permute.xlu1 %3156  ;;  %4784 = vperm.xlu0 %5738, %v7040_v2  }
 0x211   : > { %4539 = vperm.xlu1 %5719, %v4505_v32  }
 0x212   : > { %v7062_v3 = vpop.permute.xlu0 %3545 }
 0x214   : > { %4883 = vperm.xlu0 %5738, %v7059_v34  }
 0x215   : > { %4635 = vperm.xlu1 %5719, %v7056_v31   ;;  %v3211_v9 = vpop.permute.xlu1 %3210 }
 0x216   : > { %v3219_v40 = vrot.slane %v3211_v9, %v6045_v5  ;;  %v7079_v32 = vpop.permute.xlu0 %3569 }
 0x218   : > { %v3375_v48 = vmul.bf16 %v3219_v40, %v3183_v17  ;;  %4806 = vperm.xlu0 %5738, %v7074_v58   ;;  %v2964_v40 = vld [vmem:[%s6057_s9 + $0x18] sm:$0xf] }
 0x219   : > { %4647 = vperm.xlu1 %5719, %v4514_v0   ;;  %v3222_v9 = vpop.permute.xlu1 %3221  ;;  %v3057_v0 = vrot.slane %v6887_v54, %v6045_v5  ;;  %v3393_v54 = vadd.bf16 %v3377_v29, %v3169_v14 }
 0x21a   : > { %v3391_v46 = vadd.bf16 %v3375_v48, %v3167_v55  ;;  %v3230_v17 = vrot.slane %v3222_v9, %v6045_v5  ;;  %v7097_v1 = vpop.permute.xlu0 %3593  ;;  %v3379_v55 = vmul.bf16 %v3263_v35, %v3187_v37  ;;  %v3186_v48 = vld [vmem:[%s6069_s12 + $0x10] sm:$0xf]  ;;  %v3081_v9 = vrot.slane %v6906_v27, %v6045_v5  ;;  %v3191_v27 = vld [vmem:[%s6069_s12 + $0x24] sm:$0xf] }
 0x21b   : > { %v3172_v29 = vmul.bf16 %v3057_v0, %v2964_v40 }
 0x21c   : > { %v5514_v28 = vcombine.low %v3390_v22, %v3391_v46  ;;  %v3376_v50 = vmul.bf16 %v3230_v17, %v3184_v63  ;;  %4905 = vperm.xlu0 %5738, %v7094_v44   ;;  %v2965_v22 = vld [vmem:[%s6057_s9 + $0x1c] sm:$0xf]  ;;  %v2966_v63 = vld [vmem:[%s6057_s9 + $0x20] sm:$0xf]  ;;  %v3381_v17 = vmul.bf16 %v3285_v7, %v3189_v26  ;;  %v2968_v26 = vld [vmem:[%s6057_s9 + $0x28] sm:$0xf] }
 0x21d   : > { %5720 = vset.pattern.permute.xlu1 %v5873_v47  ;;  %v3244_v62 = vpop.permute.xlu1 %3243  ;;  %v3173_v46 = vmul.bf16 %v3069_v56, %v2965_v22  ;;  %v7133_v56 = vld [vmem:[%s5943_s6 + $0x3c] sm:$0xf] }
 0x21e   : > { %3455 = vst.msk [vmem:[#allocation2] sm:$0xff] %vm3454_vm5, %v5514_v28  ;;  %v3392_v37 = vadd.bf16 %v3376_v50, %v3168_v4  ;;  %v3252_v41 = vrot.slane %v3244_v62, %v6045_v5  ;;  %4773 = vperm.xlu1 %5720, %v6990_v38   ;;  %v7117_v35 = vpop.permute.xlu0 %3617  ;;  %v3188_v4 = vld [vmem:[%s6069_s12 + $0x18] sm:$0xf]  ;;  %v3395_v28 = vadd.bf16 %v3379_v55, %v3171_v43 }
 0x21f   : > { %v3093_v50 = vrot.slane %v7023_v21, %v6045_v5  ;;  %v3174_v55 = vmul.bf16 %v3081_v9, %v2966_v63  ;;  %v3105_v21 = vrot.slane %v6925_v51, %v6045_v5  ;;  %v3329_v43 = vrot.slane %v7020_v30, %v6045_v5  ;;  %v3193_v9 = vld [vmem:[%s6069_s12 + $0x2c] sm:$0xf] }
 0x220   : > { %v5515_v14 = vcombine.low %v3392_v37, %v3393_v54  ;;  %v3378_v20 = vmul.bf16 %v3252_v41, %v3186_v48  ;;  %4828 = vperm.xlu0 %5738, %v7115_v39   ;;  %v3397_v54 = vadd.bf16 %v3381_v17, %v3173_v46  ;;  %v3117_v41 = vrot.slane %v7031_v33, %v6045_v5  ;;  %v2969_v30 = vld [vmem:[%s6057_s9 + $0x2c] sm:$0xf]  ;;  %v7158_v17 = vld [vmem:[%s5943_s6 + $0x28] sm:$0xf] }
 0x221   : > { %v3266_v38 = vpop.permute.xlu1 %3265  ;;  %v3175_v37 = vmul.bf16 %v3093_v50, %v2967_v61  ;;  %v3129_v63 = vrot.slane %v6945_v18, %v6045_v5  ;;  %v3192_v50 = vld [vmem:[%s6069_s12 + $0x28] sm:$0xf]  ;;  %v3195_v18 = vld [vmem:[%s6069_s12 + $0x34] sm:$0xf] }
 0x222   : > { %3456 = vst.msk [vmem:[#allocation2 + $0x8] sm:$0xff] %vm3454_vm5, %v5515_v14  ;;  %v3394_v0 = vadd.bf16 %v3378_v20, %v3170_v6  ;;  %v3274_v40 = vrot.slane %v3266_v38, %v6045_v5  ;;  %4850 = vperm.xlu1 %5720, %v7056_v31   ;;  %v7136_v7 = vpop.permute.xlu0 %3653  ;;  %v3383_v6 = vmul.bf16 %v3307_v42, %v3191_v27  ;;  %v3190_v31 = vld [vmem:[%s6069_s12 + $0x20] sm:$0xf]  ;;  %v2970_v42 = vld [vmem:[%s6057_s9 + $0x30] sm:$0xf] }
 0x223   : > { %v3385_v38 = vmul.bf16 %v3329_v43, %v3193_v9  ;;  %v3197_v9 = vld [vmem:[%s6069_s12 + $0x3c] sm:$0xf] }
 0x224   : > { %v5516_v62 = vcombine.low %v3394_v0, %v3395_v28  ;;  %v3380_v48 = vmul.bf16 %v3274_v40, %v3188_v4  ;;  %4927 = vperm.xlu0 %5738, %v7133_v56   ;;  %v3141_v4 = vrot.slane %v7037_v10, %v6045_v5  ;;  %v3351_v28 = vrot.slane %v7026_v53, %v6045_v5  ;;  %v2971_v40 = vld [vmem:[%s6057_s9 + $0x34] sm:$0xf] }
 0x225   : > { %v3288_v22 = vpop.permute.xlu1 %3287  ;;  %v3399_v27 = vadd.bf16 %v3383_v6, %v3175_v37  ;;  %v3177_v0 = vmul.bf16 %v3117_v41, %v2969_v30  ;;  %v3178_v10 = vmul.bf16 %v3129_v63, %v2970_v42  ;;  %v3165_v41 = vrot.slane %v7045_v45, %v6045_v5 }
 0x226   : > { %3457 = vst.msk [vmem:[#allocation2 + $0x10] sm:$0xff] %vm3454_vm5, %v5516_v62  ;;  %v3396_v51 = vadd.bf16 %v3380_v48, %v3172_v29  ;;  %v3296_v14 = vrot.slane %v3288_v22, %v6045_v5  ;;  %5721 = vset.pattern.permute.xlu1 %v5872_v57  ;;  %v7153_v20 = vpop.permute.xlu0 %3677  ;;  %v3176_v29 = vmul.bf16 %v3105_v21, %v2968_v26  ;;  %v2972_v26 = vld [vmem:[%s6057_s9 + $0x38] sm:$0xf] }
 0x227   : > { %4563 = vperm.xlu1 %5721, %v7040_v2   ;;  %v3179_v6 = vmul.bf16 %v3141_v4, %v2971_v40  ;;  %v3387_v43 = vmul.bf16 %v3351_v28, %v3195_v18  ;;  %v3373_v22 = vrot.slane %v7035_v25, %v6045_v5  ;;  %v3401_v37 = vadd.bf16 %v3385_v38, %v3177_v0  ;;  %v5740_v25 = vld [vmem:[%s7632_s3] sm:$0xff]   ;;  %v3196_v4 = vld [vmem:[%s6069_s12 + $0x38] sm:$0xf] }
 0x228   : > { %v5517_v33 = vcombine.low %v3396_v51, %v3397_v54  ;;  %v3382_v46 = vmul.bf16 %v3296_v14, %v3190_v31  ;;  %v3153_v54 = vrot.slane %v6964_v19, %v6045_v5  ;;  %v3194_v31 = vld [vmem:[%s6069_s12 + $0x30] sm:$0xf]  ;;  %v2973_v19 = vld [vmem:[%s6057_s9 + $0x3c] sm:$0xf]  ;;  %5591 = vmatprep.subr.bf16.mxu0 %v5740_v25  ;;  %5617 = vmatprep.subr.bf16.mxu1 %v5740_v25 }
 0x229   : > { %v3310_v2 = vpop.permute.xlu1 %3309  ;;  %v3403_v42 = vadd.bf16 %v3387_v43, %v3179_v6  ;;  %v3389_v45 = vmul.bf16 %v3373_v22, %v3197_v9  ;;  %5592 = vmatpush3.bf16.msra.mxu0 %v5740_v25  ;;  %5622 = vmatpush3.bf16.msra.mxu1 %v5740_v25  ;;  %v5744_v6 = vld [vmem:[%s7632_s3 + $0x20] ss:$0 sps:$4 sm:$0xff]   ;;  %v7641_v22 = vmov 15   ;;  %v5810_v9 = vld [vmem:[%s5943_s6 + $0x34] sm:$0xf]  ;;  %v3518_v25 = vrot.slane %v7042_v13, %v6045_v5 }
 0x22a   : > { %3458 = vst.msk [vmem:[#allocation2 + $0x18] sm:$0xff] %vm3454_vm5, %v5517_v33  ;;  %v3398_v61 = vadd.bf16 %v3382_v46, %v3174_v55  ;;  %v3318_v62 = vrot.slane %v3310_v2, %v6045_v5  ;;  %v3180_v46 = vmul.bf16 %v3153_v54, %v2972_v26  ;;  %v5741_v2 = vld [vmem:[%s7632_s3 + $0x8] sm:$0xff]  }
 0x22b   : > { %4659 = vperm.xlu1 %5721, %v7158_v17   ;;  %v7171_v21 = vpop.permute.xlu0 %3720  ;;  %5593 = vmatprep.subr.bf16.mxu0 %v5741_v2 }
 0x22c   : > { %v5518_v48 = vcombine.low %v3398_v61, %v3399_v27  ;;  %v3384_v53 = vmul.bf16 %v3318_v62, %v3192_v50  ;;  %5618 = vmatprep.subr.bf16.mxu1 %v5741_v2  ;;  %v5742_v62 = vld [vmem:[%s7632_s3 + $0x10] sm:$0xff]  }
 0x22d   : > { %v3332_v55 = vpop.permute.xlu1 %3331  ;;  %5594 = vmatpush3.bf16.msra.mxu0 %v5741_v2  ;;  %5623 = vmatpush3.bf16.msra.mxu1 %v5741_v2 }
 0x22e   : > { %3459 = vst.msk [vmem:[#allocation2 + $0x20] sm:$0xff] %vm3454_vm5, %v5518_v48  ;;  %v3400_v51 = vadd.bf16 %v3384_v53, %v3176_v29  ;;  %v3340_v14 = vrot.slane %v3332_v55, %v6045_v5  ;;  %v3181_v29 = vmul.bf16 %v3165_v41, %v2973_v19  ;;  %5595 = vmatprep.subr.bf16.mxu0 %v5742_v62  ;;  %v5743_v53 = vld [vmem:[%s7632_s3 + $0x18] sm:$0xff]   ;;  %v5104_v55 = vsel %vm5102_vm6, %v5744_v6, 0 }
 0x22f   : > { %4671 = vperm.xlu1 %5721, %v7059_v34   ;;  %v7189_v33 = vpop.permute.xlu0 %3819  ;;  %5619 = vmatprep.subr.bf16.mxu1 %v5742_v62 }
 0x230   : > { %v5519_v30 = vcombine.low %v3400_v51, %v3401_v37  ;;  %v3386_v63 = vmul.bf16 %v3340_v14, %v3194_v31  ;;  %v3405_v40 = vadd.bf16 %v3389_v45, %v3181_v29  ;;  %v5809_v31 = vld [vmem:[%s5943_s6 + $0x10] sm:$0xf]  ;;  %v3487_v29 = vld [vmem:[%s6057_s9 + $0x20] sm:$0xf] }
 0x231   : > { %v3354_v38 = vpop.permute.xlu1 %3353  ;;  %5596 = vmatpush3.bf16.msra.mxu0 %v5742_v62  ;;  %5624 = vmatpush3.bf16.msra.mxu1 %v5742_v62 }
 0x232   : > { %3460 = vst.msk [vmem:[#allocation2 + $0x28] sm:$0xff] %vm3454_vm5, %v5519_v30  ;;  %v3402_v28 = vadd.bf16 %v3386_v63, %v3178_v10  ;;  %v3362_v34 = vrot.slane %v3354_v38, %v6045_v5  ;;  %5597 = vmatprep.subr.bf16.mxu0 %v5743_v53  ;;  %5620 = vmatprep.subr.bf16.mxu1 %v5743_v53 }
 0x233   : > { %5722 = vset.pattern.permute.xlu1 %v5873_v47  ;;  %v7199_v0 = vpop.permute.xlu0 %3753  ;;  %v3729_v63 = vrot.slane %v7171_v21, %v6045_v5  ;;  %v3602_v38 = vrot.slane %v7097_v1, %v6045_v5  ;;  %v3488_v1 = vld [vmem:[%s6057_s9 + $0x24] sm:$0xf] }
 0x234   : > { %v5520_v50 = vcombine.low %v3402_v28, %v3403_v42  ;;  %v3388_v27 = vmul.bf16 %v3362_v34, %v3196_v4  ;;  %4795 = vperm.xlu1 %5722, %v6999_v60   ;;  %v3703_v42 = vld [vmem:[%s6069_s12] sm:$0xf]  ;;  %v3704_v4 = vld [vmem:[%s6069_s12 + $0x4] sm:$0xf] }
 0x235   : > { %5598 = vmatpush3.bf16.msra.mxu0 %v5743_v53  ;;  %5625 = vmatpush3.bf16.msra.mxu1 %v5743_v53  ;;  %v3895_v28 = vmul.bf16 %v3729_v63, %v3703_v42  ;;  %v3712_v34 = vld [vmem:[%s6069_s12 + $0x24] sm:$0xf]  ;;  %v3626_v63 = vrot.slane %v7117_v35, %v6045_v5 }
 0x236   : > { %3461 = vst.msk [vmem:[#allocation2 + $0x30] sm:$0xff] %vm3454_vm5, %v5520_v50  ;;  %v3404_v18 = vadd.bf16 %v3388_v27, %v3180_v46  ;;  %v3498_v61 = vpop.permute.xlu1 %3497  ;;  %5627 = vmatprep.subr.msk.bf16.mxu0 %vm5102_vm6, %v5744_v6  ;;  %5628 = vmatprep.subr.msk.bf16.mxu1 %vm5102_vm6, %v5744_v6  ;;  %v3479_v46 = vld [vmem:[%s6057_s9] sm:$0xf]  ;;  %v5811_v27 = vld [vmem:[%s5943_s6 + $0x18] sm:$0xf] }
 0x237   : > { %v7206_v48 = vpop.permute.xlu0 %3841  ;;  %v3506_v30 = vrot.slane %v3498_v61, %v6045_v5  ;;  %v3711_v6 = vld [vmem:[%s6069_s12 + $0x20] sm:$0xf] }
 0x238   : > { %v5521_v10 = vcombine.low %v3404_v18, %v3405_v40  ;;  %4872 = vperm.xlu1 %5722, %v7158_v17   ;;  %v3695_v18 = vmul.bf16 %v3602_v38, %v3487_v29  ;;  %v3850_v38 = vrot.slane %v7206_v48, %v6045_v5 }
 0x239   : > { %5600 = vmatpush3.bf16.msra.mxu0 %v5104_v55  ;;  %5626 = vmatpush3.bf16.msra.mxu1 %v5104_v55  ;;  %v3687_v21 = vmul.bf16 %v3506_v30, %v3479_v46  ;;  %v3482_v55 = vld [vmem:[%s6057_s9 + $0xc] sm:$0xf]  ;;  %v3481_v46 = vld [vmem:[%s6057_s9 + $0x8] sm:$0xf] }
 0x23a   : > { %3462 = vst.msk [vmem:[#allocation2 + $0x38] sm:$0xff] %vm3454_vm5, %v5521_v10  ;;  %v7209_v60 = vpop.permute.xlu1 %3521  ;;  %v3762_v10 = vrot.slane %v7199_v0, %v6045_v5 }
 0x23b   : > { %v7215_v54 = vpop.permute.xlu0 %3852 }
 0x23c   : > { %5723 = vset.pattern.permute.xlu1 %v5868_v52 }
 0x23d   : > { %3641 = vperm.xlu1 %5723, %v6785_v15  }
 0x23e   : > { %v7218_v17 = vpop.permute.xlu1 %3533 }
 0x23f   : > { %v7223_v43 = vpop.permute.xlu0 %3874  ;;  %v3542_v62 = vrot.slane %v7218_v17, %v6045_v5  ;;  %v3530_v17 = vrot.slane %v7209_v60, %v6045_v5 }
 0x241   : > { %5724 = vset.pattern.permute.xlu1 %v7641_v22  ;;  %v3690_v42 = vmul.bf16 %v3542_v62, %v3482_v55  ;;  %v3713_v62 = vld [vmem:[%s6069_s12 + $0x28] sm:$0xf] }
 0x242   : > { %3764 = vperm.xlu1 %5724, %v5809_v31   ;;  %v7227_v15 = vpop.permute.xlu1 %3557  ;;  %v3706_v31 = vld [vmem:[%s6069_s12 + $0xc] sm:$0xf] }
 0x244   : > { %v7229_v26 = vpop.permute.xlu0 %4030 }
 0x246   : > { %3775 = vperm.xlu1 %5724, %v6799_v24   ;;  %v7232_v37 = vpop.permute.xlu1 %3581  ;;  %v3480_v24 = vld [vmem:[%s6057_s9 + $0x4] sm:$0xf] }
 0x247   : > { %v3688_v45 = vmul.bf16 %v3518_v25, %v3480_v24 }
 0x248   : > { %v7234_v41 = vpop.permute.xlu0 %4054 }
 0x24a   : > { %3863 = vperm.xlu1 %5724, %v5810_v9   ;;  %v3606_v51 = vpop.permute.xlu1 %3605 }
 0x24b   : > { %v3614_v2 = vrot.slane %v3606_v51, %v6045_v5 }
 0x24c   : > { %v7237_v14 = vpop.permute.xlu0 %4078 }
 0x24d   : > { %v3696_v9 = vmul.bf16 %v3614_v2, %v3488_v1  ;;  %v3689_v2 = vmul.bf16 %v3530_v17, %v3481_v46 }
 0x24e   : > { %5725 = vset.pattern.permute.xlu1 %v5868_v52  ;;  %v7240_v19 = vpop.permute.xlu1 %3629 }
 0x24f   : > { %3665 = vperm.xlu1 %5725, %v6794_v36   ;;  %v3828_v36 = vrot.slane %v7189_v33, %v6045_v5  ;;  %v3638_v29 = vrot.slane %v7240_v19, %v6045_v5 }
 0x250   : > { %v7251_v52 = vpop.permute.xlu0 %4102 }
 0x251   : > { %v3904_v61 = vmul.bf16 %v3828_v36, %v3712_v34  ;;  %v3705_v36 = vld [vmem:[%s6069_s12 + $0x8] sm:$0xf]  ;;  %v3490_v34 = vld [vmem:[%s6057_s9 + $0x2c] sm:$0xf] }
 0x252   : > { %v3698_v19 = vmul.bf16 %v3638_v29, %v3490_v34  ;;  %v4233_v34 = vld [vmem:[%s6069_s12 + $0x24] sm:$0xf] }
 0x253   : > { %5727 = vset.pattern.permute.xlu1 %v7641_v22  ;;  %v3732_v13 = vpop.permute.xlu1 %3731  ;;  %v3911_v22 = vadd.bf16 %v3895_v28, %v3687_v21  ;;  %v3920_v60 = vadd.bf16 %v3904_v61, %v3696_v9  ;;  %v5812_v28 = vld [vmem:[%s5943_s6 + $0x3c] sm:$0xf] }
 0x254   : > { %v3740_v50 = vrot.slane %v3732_v13, %v6045_v5  ;;  %3786 = vperm.xlu1 %5727, %v5811_v27   ;;  %v3489_v13 = vld [vmem:[%s6057_s9 + $0x28] sm:$0xf] }
 0x255   : > { %v7265_v33 = vpop.permute.xlu0 %4241  ;;  %v3697_v1 = vmul.bf16 %v3626_v63, %v3489_v13  ;;  %v5813_v13 = vld [vmem:[%s5943_s6 + $0x14] sm:$0xf] }
 0x256   : > { %v3896_v40 = vmul.bf16 %v3740_v50, %v3704_v4  ;;  %v3714_v4 = vld [vmem:[%s6069_s12 + $0x2c] sm:$0xf] }
 0x257   : > { %v3809_v53 = vpop.permute.xlu1 %3808 }
 0x258   : > { %v3912_v51 = vadd.bf16 %v3896_v40, %v3688_v45  ;;  %v3817_v25 = vrot.slane %v3809_v53, %v6045_v5  ;;  %3797 = vperm.xlu1 %5727, %v6811_v59   ;;  %v3898_v45 = vmul.bf16 %v3762_v10, %v3706_v31  ;;  %v3906_v40 = vmul.bf16 %v3850_v38, %v3714_v4  ;;  %v3996_v31 = vld [vmem:[%s5943_s6 + $0x30] sm:$0xf]  ;;  %v4001_v38 = vld [vmem:[%s6057_s9 + $0x4] sm:$0xf]  ;;  %v4224_v4 = vld [vmem:[%s6069_s12] sm:$0xf] }
 0x259   : > { %v7278_v30 = vpop.permute.xlu0 %4340 }
 0x25a   : > { %v5522_v0 = vcombine.low %v3911_v22, %v3912_v51  ;;  %v3903_v24 = vmul.bf16 %v3817_v25, %v3711_v6  ;;  %v3914_v10 = vadd.bf16 %v3898_v45, %v3690_v42  ;;  %v7642_v6 = vmov 7  }
 0x25b   : > { %v3743_v59 = vpop.permute.xlu1 %3742  ;;  %v3922_v51 = vadd.bf16 %v3906_v40, %v3698_v19  ;;  %v4039_v42 = vrot.slane %v7229_v26, %v6045_v5  ;;  %v7643_v45 = vmov 16   ;;  %v4349_v29 = vrot.slane %v7278_v30, %v6045_v5  ;;  %v4008_v30 = vld [vmem:[%s6057_s9 + $0x20] sm:$0xf] }
 0x25c   : > { %3976 = vst.msk [vmem:[#allocation2] sm:$0xff] %vm3975_vm7, %v5522_v0  ;;  %v3919_v21 = vadd.bf16 %v3903_v24, %v3695_v18  ;;  %v3751_v35 = vrot.slane %v3743_v59, %v6045_v5  ;;  %3885 = vperm.xlu1 %5727, %v5812_v28   ;;  %v4250_v59 = vrot.slane %v7265_v33, %v6045_v5 }
 0x25d   : > { %v7294_v27 = vpop.permute.xlu0 %4263 }
 0x25e   : > { %v5526_v50 = vcombine.low %v3919_v21, %v3920_v60  ;;  %v3897_v48 = vmul.bf16 %v3751_v35, %v3705_v36  ;;  %v4209_v60 = vmul.bf16 %v4039_v42, %v4001_v38  ;;  %v4225_v21 = vld [vmem:[%s6069_s12 + $0x4] sm:$0xf]  ;;  %v4416_v35 = vmul.bf16 %v4250_v59, %v4224_v4 }
 0x25f   : > { %v3831_v61 = vpop.permute.xlu1 %3830  ;;  %v4063_v59 = vrot.slane %v7234_v41, %v6045_v5 }
 0x260   : > { %3980 = vst.msk [vmem:[#allocation2 + $0x20] sm:$0xff] %vm3975_vm7, %v5526_v50  ;;  %v3913_v18 = vadd.bf16 %v3897_v48, %v3689_v2  ;;  %v3839_v53 = vrot.slane %v3831_v61, %v6045_v5  ;;  %5729 = vset.pattern.permute.xlu1 %v7642_v6  ;;  %v4009_v48 = vld [vmem:[%s6057_s9 + $0x24] sm:$0xf]  ;;  %v4425_v61 = vmul.bf16 %v4349_v29, %v4233_v34  ;;  %v4226_v29 = vld [vmem:[%s6069_s12 + $0x8] sm:$0xf] }
 0x261   : > { %4066 = vperm.xlu1 %5729, %v6942_v23   ;;  %v7302_v9 = vpop.permute.xlu0 %4362 }
 0x262   : > { %v5523_v22 = vcombine.low %v3913_v18, %v3914_v10  ;;  %v3905_v55 = vmul.bf16 %v3839_v53, %v3713_v62  ;;  %v4232_v10 = vld [vmem:[%s6069_s12 + $0x20] sm:$0xf]  ;;  %v4371_v41 = vrot.slane %v7302_v9, %v6045_v5  ;;  %v4010_v9 = vld [vmem:[%s6057_s9 + $0x28] sm:$0xf] }
 0x264   : > { %3977 = vst.msk [vmem:[#allocation2 + $0x8] sm:$0xff] %vm3975_vm7, %v5523_v22  ;;  %v3921_v25 = vadd.bf16 %v3905_v55, %v3697_v1  ;;  %v4019_v17 = vpop.permute.xlu1 %4018 }
 0x265   : > { %4162 = vperm.xlu1 %5729, %v3996_v31   ;;  %v7305_v24 = vpop.permute.xlu0 %4285  ;;  %v4027_v36 = vrot.slane %v4019_v17, %v6045_v5 }
 0x266   : > { %v5527_v0 = vcombine.low %v3921_v25, %v3922_v51  ;;  %v3998_v25 = vld [vmem:[%s5943_s6 + $0x38] sm:$0xf] }
 0x268   : > { %3981 = vst.msk [vmem:[#allocation2 + $0x28] sm:$0xff] %vm3975_vm7, %v5527_v0  ;;  %v4115_v23 = vpop.permute.xlu1 %4114 }
 0x269   : > { %4174 = vperm.xlu1 %5729, %v6960_v12   ;;  %v7309_v46 = vpop.permute.xlu0 %4384  ;;  %v4000_v12 = vld [vmem:[%s6057_s9] sm:$0xf]  ;;  %v4123_v1 = vrot.slane %v4115_v23, %v6045_v5 }
 0x26a   : > { %v4208_v28 = vmul.bf16 %v4027_v36, %v4000_v12  ;;  %v4003_v36 = vld [vmem:[%s6057_s9 + $0xc] sm:$0xf]  ;;  %v5814_v12 = vld [vmem:[%s5943_s6 + $0x1c] sm:$0xf] }
 0x26b   : > { %v4216_v55 = vmul.bf16 %v4123_v1, %v4008_v30 }
 0x26c   : > { %v4127_v63 = vpop.permute.xlu1 %4126  ;;  %v4432_v19 = vadd.bf16 %v4416_v35, %v4208_v28  ;;  %v4235_v28 = vld [vmem:[%s6069_s12 + $0x2c] sm:$0xf] }
 0x26d   : > { %5730 = vset.pattern.permute.xlu1 %v7643_v45  ;;  %v4135_v33 = vrot.slane %v4127_v63, %v6045_v5  ;;  %v7327_v50 = vpop.permute.xlu0 %4307 }
 0x26e   : > { %4296 = vperm.xlu1 %5730, %v5813_v13   ;;  %v4272_v13 = vrot.slane %v7294_v27, %v6045_v5 }
 0x26f   : > { %v4217_v18 = vmul.bf16 %v4135_v33, %v4009_v48 }
 0x270   : > { %v4418_v35 = vmul.bf16 %v4272_v13, %v4226_v29  ;;  %v4521_v29 = vld [vmem:[%s6057_s9] sm:$0xf] }
 0x271   : > { %v4253_v26 = vpop.permute.xlu1 %4252  ;;  %v7337_v17 = vpop.permute.xlu0 %4406  ;;  %v4441_v0 = vadd.bf16 %v4425_v61, %v4217_v18  ;;  %v4427_v61 = vmul.bf16 %v4371_v41, %v4235_v28  ;;  %v4746_v41 = vld [vmem:[%s6069_s12 + $0x4] sm:$0xf] }
 0x272   : > { %v4261_v2 = vrot.slane %v4253_v26, %v6045_v5  ;;  %4373 = vperm.xlu1 %5730, %v3996_v31   ;;  %v4211_v26 = vmul.bf16 %v4063_v59, %v4003_v36  ;;  %v4522_v36 = vld [vmem:[%s6057_s9 + $0x4] sm:$0xf] }
 0x273   : > { %v4754_v28 = vld [vmem:[%s6069_s12 + $0x24] sm:$0xf] }
 0x274   : > { %v4417_v40 = vmul.bf16 %v4261_v2, %v4225_v21  ;;  %v4227_v21 = vld [vmem:[%s6069_s12 + $0xc] sm:$0xf] }
 0x275   : > { %v4330_v62 = vpop.permute.xlu1 %4329  ;;  %v4011_v2 = vld [vmem:[%s6057_s9 + $0x2c] sm:$0xf] }
 0x276   : > { %v4433_v53 = vadd.bf16 %v4417_v40, %v4209_v60  ;;  %v4338_v22 = vrot.slane %v4330_v62, %v6045_v5  ;;  %5731 = vset.pattern.permute.xlu1 %v7642_v6  ;;  %v7341_v42 = vpop.permute.xlu0 %4551  ;;  %v4234_v62 = vld [vmem:[%s6069_s12 + $0x28] sm:$0xf] }
 0x277   : > { %4090 = vperm.xlu1 %5731, %v6971_v11   ;;  %v4560_v59 = vrot.slane %v7341_v42, %v6045_v5 }
 0x278   : > { %v5530_v31 = vcombine.low %v4432_v19, %v4433_v53  ;;  %v4424_v51 = vmul.bf16 %v4338_v22, %v4232_v10 }
 0x27a   : > { %4497 = vst.msk [vmem:[#allocation2] sm:$0xff] %vm4496_vm8, %v5530_v31  ;;  %v4440_v23 = vadd.bf16 %v4424_v51, %v4216_v55  ;;  %v4043_v63 = vpop.permute.xlu1 %4042  ;;  %v7352_v60 = vpop.permute.xlu0 %4575  ;;  %v4517_v51 = vld [vmem:[%s5943_s6 + $0x30] sm:$0xf] }
 0x27b   : > { %4186 = vperm.xlu1 %5731, %v3998_v25   ;;  %v4051_v4 = vrot.slane %v4043_v63, %v6045_v5 }
 0x27c   : > { %v5534_v6 = vcombine.low %v4440_v23, %v4441_v0 }
 0x27e   : > { %4501 = vst.msk [vmem:[#allocation2 + $0x20] sm:$0xff] %vm4496_vm8, %v5534_v6  ;;  %v4139_v11 = vpop.permute.xlu1 %4138  ;;  %v7364_v40 = vpop.permute.xlu0 %4599 }
 0x27f   : > { %4198 = vperm.xlu1 %5731, %v6979_v49   ;;  %v4002_v49 = vld [vmem:[%s6057_s9 + $0x8] sm:$0xf]  ;;  %v4147_v48 = vrot.slane %v4139_v11, %v6045_v5 }
 0x280   : > { %v4210_v27 = vmul.bf16 %v4051_v4, %v4002_v49  ;;  %v4730_v49 = vmul.bf16 %v4560_v59, %v4522_v36  ;;  %v4747_v36 = vld [vmem:[%s6069_s12 + $0x8] sm:$0xf] }
 0x281   : > { %v4218_v22 = vmul.bf16 %v4147_v48, %v4010_v9 }
 0x282   : > { %v4151_v38 = vpop.permute.xlu1 %4150  ;;  %v4434_v10 = vadd.bf16 %v4418_v35, %v4210_v27  ;;  %v7373_v23 = vpop.permute.xlu0 %4623 }
 0x283   : > { %5733 = vset.pattern.permute.xlu1 %v7643_v45  ;;  %v4159_v34 = vrot.slane %v4151_v38, %v6045_v5 }
 0x284   : > { %4318 = vperm.xlu1 %5733, %v5814_v12  }
 0x285   : > { %v4219_v19 = vmul.bf16 %v4159_v34, %v4011_v2  ;;  %v4530_v34 = vld [vmem:[%s6057_s9 + $0x24] sm:$0xf]  ;;  %v4529_v2 = vld [vmem:[%s6057_s9 + $0x20] sm:$0xf] }
 0x287   : > { %v4275_v45 = vpop.permute.xlu1 %4274 }
 0x288   : > { %v4283_v33 = vrot.slane %v4275_v45, %v6045_v5  ;;  %4395 = vperm.xlu1 %5733, %v3998_v25   ;;  %v4443_v25 = vadd.bf16 %v4427_v61, %v4219_v19  ;;  %v4753_v61 = vld [vmem:[%s6069_s12 + $0x20] sm:$0xf] }
 0x28a   : > { %v4419_v1 = vmul.bf16 %v4283_v33, %v4227_v21 }
 0x28b   : > { %v4352_v30 = vpop.permute.xlu1 %4351 }
 0x28c   : > { %v4435_v18 = vadd.bf16 %v4419_v1, %v4211_v26  ;;  %v4360_v53 = vrot.slane %v4352_v30, %v6045_v5  ;;  %5735 = vset.pattern.permute.xlu1 %v5872_v57 }
 0x28d   : > { %4587 = vperm.xlu1 %5735, %v7074_v58   ;;  %v4763_v58 = vpop.permute.xlu0 %4762 }
 0x28e   : > { %v5531_v55 = vcombine.low %v4434_v10, %v4435_v18  ;;  %v4426_v31 = vmul.bf16 %v4360_v53, %v4234_v62  ;;  %v4771_v4 = vrot.slane %v4763_v58, %v6045_v5 }
 0x290   : > { %4498 = vst.msk [vmem:[#allocation2 + $0x8] sm:$0xff] %vm4496_vm8, %v5531_v55  ;;  %v4442_v0 = vadd.bf16 %v4426_v31, %v4218_v22  ;;  %v4540_v63 = vpop.permute.xlu1 %4539  ;;  %v4519_v22 = vld [vmem:[%s5943_s6 + $0x38] sm:$0xf]  ;;  %s5473_s6 = sshll.u32 %s5934_s27, 3 }
 0x291   : > { %4683 = vperm.xlu1 %5735, %v4517_v51   ;;  %v4548_v13 = vrot.slane %v4540_v63, %v6045_v5  ;;  %v4862_v12 = vpop.permute.xlu0 %4861 }
 0x292   : > { %v5535_v6 = vcombine.low %v4442_v0, %v4443_v25  ;;  %v4870_v26 = vrot.slane %v4862_v12, %v6045_v5  ;;  %v4748_v12 = vld [vmem:[%s6069_s12 + $0xc] sm:$0xf] }
 0x293   : > { %v4729_v45 = vmul.bf16 %v4548_v13, %v4521_v29 }
 0x294   : > { %4502 = vst.msk [vmem:[#allocation2 + $0x28] sm:$0xff] %vm4496_vm8, %v5535_v6  ;;  %v4636_v11 = vpop.permute.xlu1 %4635  ;;  %v4946_v48 = vmul.bf16 %v4870_v26, %v4754_v28  ;;  %v4584_v6 = vrot.slane %v7352_v60, %v6045_v5  ;;  %v4756_v26 = vld [vmem:[%s6069_s12 + $0x2c] sm:$0xf] }
 0x295   : > { %4695 = vperm.xlu1 %5735, %v7094_v44   ;;  %v4745_v44 = vld [vmem:[%s6069_s12] sm:$0xf] }
 0x296   : > { %v4937_v21 = vmul.bf16 %v4771_v4, %v4745_v44 }
 0x298   : > { %v4648_v38 = vpop.permute.xlu1 %4647  ;;  %v4953_v9 = vadd.bf16 %v4937_v21, %v4729_v45  ;;  %v4531_v21 = vld [vmem:[%s6057_s9 + $0x28] sm:$0xf] }
 0x299   : > { %5736 = vset.pattern.permute.xlu1 %v5873_v47  ;;  %v4656_v35 = vrot.slane %v4648_v38, %v6045_v5 }
 0x29a   : > { %4817 = vperm.xlu1 %5736, %v7010_v16   ;;  %v4644_v16 = vrot.slane %v4636_v11, %v6045_v5  ;;  %v4524_v11 = vld [vmem:[%s6057_s9 + $0xc] sm:$0xf] }
 0x29b   : > { %v4738_v30 = vmul.bf16 %v4656_v35, %v4530_v34  ;;  %v4732_v4 = vmul.bf16 %v4584_v6, %v4524_v11 }
 0x29c   : > { %v4737_v19 = vmul.bf16 %v4644_v16, %v4529_v2 }
 0x29d   : > { %v4774_v42 = vpop.permute.xlu1 %4773  ;;  %v4962_v55 = vadd.bf16 %v4946_v48, %v4738_v30 }
 0x29e   : > { %v4782_v27 = vrot.slane %v4774_v42, %v6045_v5  ;;  %4894 = vperm.xlu1 %5736, %v4517_v51  }
 0x2a0   : > { %v4938_v33 = vmul.bf16 %v4782_v27, %v4746_v41  ;;  %v4755_v27 = vld [vmem:[%s6069_s12 + $0x28] sm:$0xf] }
 0x2a1   : > { %v4851_v1 = vpop.permute.xlu1 %4850 }
 0x2a2   : > { %v4954_v62 = vadd.bf16 %v4938_v33, %v4730_v49  ;;  %v4859_v10 = vrot.slane %v4851_v1, %v6045_v5  ;;  %5737 = vset.pattern.permute.xlu1 %v5872_v57 }
 0x2a3   : > { %4611 = vperm.xlu1 %5737, %v7115_v39   ;;  %v4785_v39 = vpop.permute.xlu0 %4784 }
 0x2a4   : > { %v5538_v18 = vcombine.low %v4953_v9, %v4954_v62  ;;  %v4945_v53 = vmul.bf16 %v4859_v10, %v4753_v61  ;;  %v4793_v38 = vrot.slane %v4785_v39, %v6045_v5 }
 0x2a6   : > { %5018 = vst.msk [vmem:[#allocation2] sm:$0xff] %vm5017_vm9, %v5538_v18  ;;  %v4961_v31 = vadd.bf16 %v4945_v53, %v4737_v19  ;;  %v4564_v51 = vpop.permute.xlu1 %4563  ;;  %v4939_v44 = vmul.bf16 %v4793_v38, %v4747_v36  ;;  %v3707_v53 = vld [vmem:[%s6069_s12 + $0x10] sm:$0xf] }
 0x2a7   : > { %4707 = vperm.xlu1 %5737, %v4519_v22   ;;  %v4572_v58 = vrot.slane %v4564_v51, %v6045_v5  ;;  %v4884_v59 = vpop.permute.xlu0 %4883  ;;  %v3483_v51 = vld [vmem:[%s6057_s9 + $0x10] sm:$0xf] }
 0x2a8   : > { %v5542_v25 = vcombine.low %v4961_v31, %v4962_v55  ;;  %v3554_v55 = vrot.slane %v7062_v3, %v6045_v5  ;;  %v3566_v31 = vrot.slane %v7227_v15, %v6045_v5 }
 0x2aa   : > { %5022 = vst.msk [vmem:[#allocation2 + $0x20] sm:$0xff] %vm5017_vm9, %v5542_v25  ;;  %v4660_v57 = vpop.permute.xlu1 %4659  ;;  %v3484_v25 = vld [vmem:[%s6057_s9 + $0x14] sm:$0xf]  ;;  %v3691_v15 = vmul.bf16 %v3554_v55, %v3483_v51  ;;  %v3718_v55 = vld [vmem:[%s6069_s12 + $0x3c] sm:$0xf] }
 0x2ab   : > { %4719 = vperm.xlu1 %5737, %v7133_v56   ;;  %v4523_v56 = vld [vmem:[%s6057_s9 + $0x8] sm:$0xf]  ;;  %v4668_v41 = vrot.slane %v4660_v57, %v6045_v5  ;;  %v3861_v57 = vrot.slane %v7215_v54, %v6045_v5  ;;  %v3492_v54 = vld [vmem:[%s6057_s9 + $0x34] sm:$0xf] }
 0x2ac   : > { %v4731_v29 = vmul.bf16 %v4572_v58, %v4523_v56  ;;  %v3491_v58 = vld [vmem:[%s6057_s9 + $0x30] sm:$0xf]  ;;  %v3692_v56 = vmul.bf16 %v3566_v31, %v3484_v25 }
 0x2ad   : > { %v5026_v0 = vld [vmem:[#allocation2] sm:$0xff]  ;;  %v4739_v48 = vmul.bf16 %v4668_v41, %v4531_v21 }
 0x2ae   : > { %v4672_v63 = vpop.permute.xlu1 %4671  ;;  %5601 = vmatprep.mubr.msk.bf16.mxu0 %vm5077_vm10, %v5026_v0  ;;  %v4955_v34 = vadd.bf16 %v4939_v44, %v4731_v29  ;;  %v3708_v0 = vld [vmem:[%s6069_s12 + $0x14] sm:$0xf] }
 0x2af   : > { %5739 = vset.pattern.permute.xlu1 %v5873_v47  ;;  %v4892_v47 = vrot.slane %v4884_v59, %v6045_v5  ;;  %v4680_v49 = vrot.slane %v4672_v63, %v6045_v5  ;;  %v3715_v63 = vld [vmem:[%s6069_s12 + $0x30] sm:$0xf]  ;;  %v3662_v59 = vrot.slane %v7136_v7, %v6045_v5 }
 0x2b0   : > { %4839 = vperm.xlu1 %5739, %v7018_v8   ;;  %v4532_v8 = vld [vmem:[%s6057_s9 + $0x2c] sm:$0xf] }
 0x2b1   : > { %v5030_v13 = vld [vmem:[#allocation2 + $0x20] sm:$0xff]  ;;  %v4948_v35 = vmul.bf16 %v4892_v47, %v4756_v26  ;;  %v4740_v16 = vmul.bf16 %v4680_v49, %v4532_v8  ;;  %v3716_v47 = vld [vmem:[%s6069_s12 + $0x34] sm:$0xf]  ;;  %v3700_v49 = vmul.bf16 %v3662_v59, %v3492_v54  ;;  %v4087_v54 = vrot.slane %v7237_v14, %v6045_v5  ;;  %v4012_v14 = vld [vmem:[%s6057_s9 + $0x30] sm:$0xf] }
 0x2b2   : > { %5609 = vmatprep.mubr.msk.bf16.mxu1 %vm5077_vm10, %v5030_v13  ;;  %v3907_v13 = vmul.bf16 %v3861_v57, %v3715_v63 }
 0x2b3   : > { %v4796_v60 = vpop.permute.xlu1 %4795  ;;  %v4964_v9 = vadd.bf16 %v4948_v35, %v4740_v16  ;;  %v3590_v16 = vrot.slane %v7232_v37, %v6045_v5  ;;  %v3494_v37 = vld [vmem:[%s6057_s9 + $0x3c] sm:$0xf] }
 0x2b4   : > { %v4804_v42 = vrot.slane %v4796_v60, %v6045_v5  ;;  %4916 = vperm.xlu1 %5739, %v4519_v22  }
 0x2b6   : > { %v4940_v45 = vmul.bf16 %v4804_v42, %v4748_v12 }
 0x2b7   : > { %v4873_v28 = vpop.permute.xlu1 %4872 }
 0x2b8   : > { %v4956_v33 = vadd.bf16 %v4940_v45, %v4732_v4  ;;  %v4881_v2 = vrot.slane %v4873_v28, %v6045_v5  ;;  %v3578_v28 = vrot.slane %v7079_v32, %v6045_v5  ;;  %v3686_v32 = vrot.slane %v7153_v20, %v6045_v5 }
 0x2ba   : > { %v5539_v1 = vcombine.low %v4955_v34, %v4956_v33  ;;  %v4947_v61 = vmul.bf16 %v4881_v2, %v4755_v27  ;;  %v3709_v27 = vld [vmem:[%s6069_s12 + $0x18] sm:$0xf]  ;;  %v3486_v33 = vld [vmem:[%s6057_s9 + $0x1c] sm:$0xf] }
 0x2bb   : > { %v3485_v34 = vld [vmem:[%s6057_s9 + $0x18] sm:$0xf] }
 0x2bc   : > { %5019 = vst.msk [vmem:[#allocation2 + $0x8] sm:$0xff] %vm5017_vm9, %v5539_v1  ;;  %v4963_v30 = vadd.bf16 %v4947_v61, %v4739_v48  ;;  %v3642_v62 = vpop.permute.xlu1 %3641  ;;  %v3710_v48 = vld [vmem:[%s6069_s12 + $0x1c] sm:$0xf] }
 0x2bd   : > { %v3650_v6 = vrot.slane %v3642_v62, %v6045_v5  ;;  %v3493_v62 = vld [vmem:[%s6057_s9 + $0x38] sm:$0xf] }
 0x2be   : > { %v5543_v10 = vcombine.low %v4963_v30, %v4964_v9  ;;  %v3693_v30 = vmul.bf16 %v3578_v28, %v3485_v34 }
 0x2bf   : > { %v3699_v60 = vmul.bf16 %v3650_v6, %v3491_v58 }
 0x2c0   : > { %5023 = vst.msk [vmem:[#allocation2 + $0x28] sm:$0xff] %vm5017_vm9, %v5543_v10  ;;  %v3694_v10 = vmul.bf16 %v3590_v16, %v3486_v33 }
 0x2c1   : > { %v3765_v19 = vpop.permute.xlu1 %3764  ;;  %v3923_v42 = vadd.bf16 %v3907_v13, %v3699_v60  ;;  %v4005_v13 = vld [vmem:[%s6057_s9 + $0x14] sm:$0xf] }
 0x2c2   : > { %v3773_v18 = vrot.slane %v3765_v19, %v6045_v5  ;;  %v3883_v19 = vrot.slane %v7223_v43, %v6045_v5 }
 0x2c3   : > { %v5027_v22 = vld [vmem:[#allocation2 + $0x8] sm:$0xff] }
 0x2c4   : > { %5602 = vmatmul.mubr.msk.bf16.vlgmr.msra.gmra.mrb[0].mxu0 %vm5077_vm10, %v5027_v22  ;;  %v3899_v11 = vmul.bf16 %v3773_v18, %v3707_v53  ;;  %v3717_v53 = vld [vmem:[%s6069_s12 + $0x38] sm:$0xf] }
 0x2c5   : > { %v3776_v39 = vpop.permute.xlu1 %3775 }
 0x2c6   : > { %v3784_v3 = vrot.slane %v3776_v39, %v6045_v5  ;;  %v3915_v12 = vadd.bf16 %v3899_v11, %v3691_v15  ;;  %v3702_v39 = vmul.bf16 %v3686_v32, %v3494_v37  ;;  %v4294_v15 = vrot.slane %v7305_v24, %v6045_v5  ;;  %v4013_v24 = vld [vmem:[%s6057_s9 + $0x34] sm:$0xf]  ;;  %v4230_v37 = vld [vmem:[%s6069_s12 + $0x18] sm:$0xf] }
 0x2c7   : > { %v5031_v38 = vld [vmem:[#allocation2 + $0x28] sm:$0xff]  ;;  %v4111_v32 = vrot.slane %v7251_v52, %v6045_v5  ;;  %v4415_v52 = vrot.slane %v7337_v17, %v6045_v5 }
 0x2c8   : > { %v3900_v36 = vmul.bf16 %v3784_v3, %v3708_v0  ;;  %5610 = vmatmul.mubr.msk.bf16.vlgmr.msra.gmra.mrb[0].mxu1 %vm5077_vm10, %v5031_v38  ;;  %v3909_v0 = vmul.bf16 %v3883_v19, %v3717_v53  ;;  %v4007_v19 = vld [vmem:[%s6057_s9 + $0x1c] sm:$0xf] }
 0x2c9   : > { %v3864_v4 = vpop.permute.xlu1 %3863 }
 0x2ca   : > { %v3916_v29 = vadd.bf16 %v3900_v36, %v3692_v56  ;;  %v3872_v44 = vrot.slane %v3864_v4, %v6045_v5  ;;  %v4228_v56 = vld [vmem:[%s6069_s12 + $0x10] sm:$0xf] }
 0x2cb   : > { %v4004_v36 = vld [vmem:[%s6057_s9 + $0x10] sm:$0xf]  ;;  %v4420_v60 = vmul.bf16 %v4294_v15, %v4228_v56 }
 0x2cc   : > { %v5524_v26 = vcombine.low %v3915_v12, %v3916_v29  ;;  %v3908_v7 = vmul.bf16 %v3872_v44, %v3716_v47  ;;  %v4229_v47 = vld [vmem:[%s6069_s12 + $0x14] sm:$0xf] }
 0x2ce   : > { %3978 = vst.msk [vmem:[#allocation2 + $0x10] sm:$0xff] %vm3975_vm7, %v5524_v26  ;;  %v3924_v8 = vadd.bf16 %v3908_v7, %v3700_v49  ;;  %v3666_v41 = vpop.permute.xlu1 %3665  ;;  %v4213_v49 = vmul.bf16 %v4087_v54, %v4005_v13  ;;  %v4393_v26 = vrot.slane %v7309_v46, %v6045_v5 }
 0x2cf   : > { %v3674_v1 = vrot.slane %v3666_v41, %v6045_v5 }
 0x2d0   : > { %v5528_v45 = vcombine.low %v3923_v42, %v3924_v8  ;;  %v4237_v8 = vld [vmem:[%s6069_s12 + $0x34] sm:$0xf] }
 0x2d1   : > { %v3701_v31 = vmul.bf16 %v3674_v1, %v3493_v62  ;;  %v4429_v34 = vmul.bf16 %v4393_v26, %v4237_v8  ;;  %v4608_v26 = vrot.slane %v7364_v40, %v6045_v5 }
 0x2d2   : > { %3982 = vst.msk [vmem:[#allocation2 + $0x30] sm:$0xff] %vm3975_vm7, %v5528_v45  ;;  %v4236_v45 = vld [vmem:[%s6069_s12 + $0x30] sm:$0xf] }
 0x2d3   : > { %v3787_v21 = vpop.permute.xlu1 %3786  ;;  %v3925_v6 = vadd.bf16 %v3909_v0, %v3701_v31 }
 0x2d4   : > { %v3795_v35 = vrot.slane %v3787_v21, %v6045_v5 }
 0x2d6   : > { %v3901_v61 = vmul.bf16 %v3795_v35, %v3709_v27 }
 0x2d7   : > { %v3798_v2 = vpop.permute.xlu1 %3797 }
 0x2d8   : > { %v3806_v9 = vrot.slane %v3798_v2, %v6045_v5  ;;  %v3917_v51 = vadd.bf16 %v3901_v61, %v3693_v30 }
 0x2da   : > { %v3902_v18 = vmul.bf16 %v3806_v9, %v3710_v48 }
 0x2db   : > { %v3886_v22 = vpop.permute.xlu1 %3885 }
 0x2dc   : > { %v3918_v25 = vadd.bf16 %v3902_v18, %v3694_v10  ;;  %v3894_v57 = vrot.slane %v3886_v22, %v6045_v5  ;;  %v4006_v10 = vld [vmem:[%s6057_s9 + $0x18] sm:$0xf]  ;;  %v4316_v18 = vrot.slane %v7327_v50, %v6045_v5  ;;  %v4231_v22 = vld [vmem:[%s6069_s12 + $0x1c] sm:$0xf] }
 0x2dd   : > { %v4014_v50 = vld [vmem:[%s6057_s9 + $0x38] sm:$0xf] }
 0x2de   : > { %v5525_v20 = vcombine.low %v3917_v51, %v3918_v25  ;;  %v3910_v63 = vmul.bf16 %v3894_v57, %v3718_v55  ;;  %v4215_v25 = vmul.bf16 %v4111_v32, %v4007_v19  ;;  %v4015_v57 = vld [vmem:[%s6057_s9 + $0x3c] sm:$0xf] }
 0x2e0   : > { %3979 = vst.msk [vmem:[#allocation2 + $0x18] sm:$0xff] %vm3975_vm7, %v5525_v20  ;;  %v3926_v43 = vadd.bf16 %v3910_v63, %v3702_v39  ;;  %v4067_v11 = vpop.permute.xlu1 %4066  ;;  %v4422_v39 = vmul.bf16 %v4316_v18, %v4230_v37  ;;  %v4239_v63 = vld [vmem:[%s6069_s12 + $0x3c] sm:$0xf] }
 0x2e1   : > { %v4075_v59 = vrot.slane %v4067_v11, %v6045_v5  ;;  %v4431_v15 = vmul.bf16 %v4415_v52, %v4239_v63  ;;  %v4527_v52 = vld [vmem:[%s6057_s9 + $0x18] sm:$0xf] }
 0x2e2   : > { %v5529_v3 = vcombine.low %v3925_v6, %v3926_v43  ;;  %v4238_v43 = vld [vmem:[%s6069_s12 + $0x38] sm:$0xf] }
 0x2e3   : > { %v4212_v12 = vmul.bf16 %v4075_v59, %v4004_v36 }
 0x2e4   : > { %3983 = vst.msk [vmem:[#allocation2 + $0x38] sm:$0xff] %vm3975_vm7, %v5529_v3  ;;  %v4163_v58 = vpop.permute.xlu1 %4162 }
 0x2e5   : > { %v4171_v7 = vrot.slane %v4163_v58, %v6045_v5  ;;  %v4436_v21 = vadd.bf16 %v4420_v60, %v4212_v12  ;;  %v4807_v60 = vpop.permute.xlu0 %4806 }
 0x2e7   : > { %v4220_v16 = vmul.bf16 %v4171_v7, %v4012_v14 }
 0x2e8   : > { %v4175_v38 = vpop.permute.xlu1 %4174 }
 0x2e9   : > { %v4183_v29 = vrot.slane %v4175_v38, %v6045_v5  ;;  %v4906_v7 = vpop.permute.xlu0 %4905 }
 0x2ea   : > { %v4914_v8 = vrot.slane %v4906_v7, %v6045_v5 }
 0x2eb   : > { %v4221_v35 = vmul.bf16 %v4183_v29, %v4013_v24  ;;  %v4815_v29 = vrot.slane %v4807_v60, %v6045_v5  ;;  %v4749_v24 = vld [vmem:[%s6069_s12 + $0x10] sm:$0xf] }
 0x2ed   : > { %v4297_v4 = vpop.permute.xlu1 %4296  ;;  %v4445_v46 = vadd.bf16 %v4429_v34, %v4221_v35  ;;  %v4758_v35 = vld [vmem:[%s6069_s12 + $0x34] sm:$0xf] }
 0x2ee   : > { %v4305_v44 = vrot.slane %v4297_v4, %v6045_v5  ;;  %v4534_v34 = vld [vmem:[%s6057_s9 + $0x34] sm:$0xf] }
 0x2f0   : > { %v4421_v42 = vmul.bf16 %v4305_v44, %v4229_v47 }
 0x2f1   : > { %v4374_v41 = vpop.permute.xlu1 %4373 }
 0x2f2   : > { %v4437_v28 = vadd.bf16 %v4421_v42, %v4213_v49  ;;  %v4382_v27 = vrot.slane %v4374_v41, %v6045_v5  ;;  %v4525_v49 = vld [vmem:[%s6057_s9 + $0x10] sm:$0xf]  ;;  %v4526_v42 = vld [vmem:[%s6057_s9 + $0x14] sm:$0xf] }
 0x2f3   : > { %v4750_v41 = vld [vmem:[%s6069_s12 + $0x14] sm:$0xf] }
 0x2f4   : > { %v5532_v33 = vcombine.low %v4436_v21, %v4437_v28  ;;  %v4428_v2 = vmul.bf16 %v4382_v27, %v4236_v45  ;;  %v4941_v45 = vmul.bf16 %v4815_v29, %v4749_v24 }
 0x2f6   : > { %4499 = vst.msk [vmem:[#allocation2 + $0x10] sm:$0xff] %vm4496_vm8, %v5532_v33  ;;  %v4444_v48 = vadd.bf16 %v4428_v2, %v4220_v16  ;;  %v4091_v1 = vpop.permute.xlu1 %4090  ;;  %v4734_v16 = vmul.bf16 %v4608_v26, %v4526_v42  ;;  %v4950_v2 = vmul.bf16 %v4914_v8, %v4758_v35 }
 0x2f7   : > { %v4099_v62 = vrot.slane %v4091_v1, %v6045_v5  ;;  %v4757_v1 = vld [vmem:[%s6069_s12 + $0x30] sm:$0xf] }
 0x2f8   : > { %v5536_v61 = vcombine.low %v4444_v48, %v4445_v46  ;;  %v4533_v46 = vld [vmem:[%s6057_s9 + $0x30] sm:$0xf] }
 0x2f9   : > { %v4214_v55 = vmul.bf16 %v4099_v62, %v4006_v10 }
 0x2fa   : > { %4503 = vst.msk [vmem:[#allocation2 + $0x30] sm:$0xff] %vm4496_vm8, %v5536_v61  ;;  %v4187_v9 = vpop.permute.xlu1 %4186 }
 0x2fb   : > { %v4195_v0 = vrot.slane %v4187_v9, %v6045_v5  ;;  %v4438_v11 = vadd.bf16 %v4422_v39, %v4214_v55  ;;  %v4632_v39 = vrot.slane %v7373_v23, %v6045_v5 }
 0x2fd   : > { %v4222_v59 = vmul.bf16 %v4195_v0, %v4014_v50  ;;  %v4751_v50 = vld [vmem:[%s6069_s12 + $0x18] sm:$0xf] }
 0x2fe   : > { %v4199_v30 = vpop.permute.xlu1 %4198 }
 0x2ff   : > { %v4207_v31 = vrot.slane %v4199_v30, %v6045_v5 }
 0x301   : > { %v4223_v3 = vmul.bf16 %v4207_v31, %v4015_v57  ;;  %v4829_v31 = vpop.permute.xlu0 %4828 }
 0x302   : > { %v4837_v63 = vrot.slane %v4829_v31, %v6045_v5 }
 0x303   : > { %v4319_v53 = vpop.permute.xlu1 %4318  ;;  %v4447_v17 = vadd.bf16 %v4431_v15, %v4223_v3  ;;  %v4536_v15 = vld [vmem:[%s6057_s9 + $0x3c] sm:$0xf] }
 0x304   : > { %v4327_v51 = vrot.slane %v4319_v53, %v6045_v5 }
 0x306   : > { %v4423_v20 = vmul.bf16 %v4327_v51, %v4231_v22 }
 0x307   : > { %v4396_v6 = vpop.permute.xlu1 %4395 }
 0x308   : > { %v4439_v58 = vadd.bf16 %v4423_v20, %v4215_v25  ;;  %v4404_v38 = vrot.slane %v4396_v6, %v6045_v5  ;;  %v4528_v20 = vld [vmem:[%s6057_s9 + $0x1c] sm:$0xf]  ;;  %v4928_v6 = vpop.permute.xlu0 %4927 }
 0x309   : > { %v4736_v23 = vmul.bf16 %v4632_v39, %v4528_v20 }
 0x30a   : > { %v5533_v56 = vcombine.low %v4438_v11, %v4439_v58  ;;  %v4430_v36 = vmul.bf16 %v4404_v38, %v4238_v43  ;;  %v4752_v11 = vld [vmem:[%s6069_s12 + $0x1c] sm:$0xf] }
 0x30c   : > { %4500 = vst.msk [vmem:[#allocation2 + $0x18] sm:$0xff] %vm4496_vm8, %v5533_v56  ;;  %v4446_v54 = vadd.bf16 %v4430_v36, %v4222_v59  ;;  %v4588_v13 = vpop.permute.xlu1 %4587  ;;  %v4943_v59 = vmul.bf16 %v4837_v63, %v4751_v50  ;;  %v4936_v56 = vrot.slane %v4928_v6, %v6045_v5 }
 0x30d   : > { %v4596_v44 = vrot.slane %v4588_v13, %v6045_v5  ;;  %v4535_v13 = vld [vmem:[%s6057_s9 + $0x38] sm:$0xf]  ;;  %s7572_s9 = scalar_lea.vmem %s7634_s5, %s5473_s6 }
 0x30e   : > { %v5537_v4 = vcombine.low %v4446_v54, %v4447_v17  ;;  %v4760_v54 = vld [vmem:[%s6069_s12 + $0x3c] sm:$0xf] }
 0x30f   : > { %v4733_v21 = vmul.bf16 %v4596_v44, %v4525_v49  ;;  %v4952_v24 = vmul.bf16 %v4936_v56, %v4760_v54 }
 0x310   : > { %4504 = vst.msk [vmem:[#allocation2 + $0x38] sm:$0xff] %vm4496_vm8, %v5537_v4  ;;  %v4684_v47 = vpop.permute.xlu1 %4683 }
 0x311   : > { %v4692_v33 = vrot.slane %v4684_v47, %v6045_v5  ;;  %v4957_v61 = vadd.bf16 %v4941_v45, %v4733_v21  ;;  %v4759_v47 = vld [vmem:[%s6069_s12 + $0x38] sm:$0xf] }
 0x313   : > { %v4741_v32 = vmul.bf16 %v4692_v33, %v4533_v46 }
 0x314   : > { %v4696_v12 = vpop.permute.xlu1 %4695 }
 0x315   : > { %v4704_v28 = vrot.slane %v4696_v12, %v6045_v5 }
 0x317   : > { %v4742_v9 = vmul.bf16 %v4704_v28, %v4534_v34 }
 0x319   : > { %v4818_v14 = vpop.permute.xlu1 %4817  ;;  %v4966_v18 = vadd.bf16 %v4950_v2, %v4742_v9 }
 0x31a   : > { %v4826_v27 = vrot.slane %v4818_v14, %v6045_v5 }
 0x31c   : > { %v4942_v40 = vmul.bf16 %v4826_v27, %v4750_v41 }
 0x31d   : > { %v4895_v48 = vpop.permute.xlu1 %4894 }
 0x31e   : > { %v4958_v30 = vadd.bf16 %v4942_v40, %v4734_v16  ;;  %v4903_v62 = vrot.slane %v4895_v48, %v6045_v5 }
 0x320   : > { %v5540_v10 = vcombine.low %v4957_v61, %v4958_v30  ;;  %v4949_v19 = vmul.bf16 %v4903_v62, %v4757_v1 }
 0x322   : > { %5020 = vst.msk [vmem:[#allocation2 + $0x10] sm:$0xff] %vm5017_vm9, %v5540_v10  ;;  %v4965_v37 = vadd.bf16 %v4949_v19, %v4741_v32  ;;  %v4612_v53 = vpop.permute.xlu1 %4611 }
 0x323   : > { %v4620_v57 = vrot.slane %v4612_v53, %v6045_v5 }
 0x324   : > { %v5544_v22 = vcombine.low %v4965_v37, %v4966_v18 }
 0x325   : > { %v4735_v3 = vmul.bf16 %v4620_v57, %v4527_v52 }
 0x326   : > { %5024 = vst.msk [vmem:[#allocation2 + $0x30] sm:$0xff] %vm5017_vm9, %v5544_v22  ;;  %v4708_v55 = vpop.permute.xlu1 %4707 }
 0x327   : > { %v4716_v36 = vrot.slane %v4708_v55, %v6045_v5  ;;  %v4959_v60 = vadd.bf16 %v4943_v59, %v4735_v3 }
 0x329   : > { %v5028_v51 = vld [vmem:[#allocation2 + $0x10] sm:$0xff]  ;;  %v4743_v49 = vmul.bf16 %v4716_v36, %v4535_v13 }
 0x32a   : > { %v4720_v25 = vpop.permute.xlu1 %4719  ;;  %5605 = vmatprep.mubr.msk.bf16.mxu0 %vm5077_vm10, %v5028_v51 }
 0x32b   : > { %v4728_v58 = vrot.slane %v4720_v25, %v6045_v5 }
 0x32d   : > { %v5032_v0 = vld [vmem:[#allocation2 + $0x30] sm:$0xff]  ;;  %v4744_v12 = vmul.bf16 %v4728_v58, %v4536_v15 }
 0x32e   : > { %5613 = vmatprep.mubr.msk.bf16.mxu1 %vm5077_vm10, %v5032_v0 }
 0x32f   : > { %v4840_v43 = vpop.permute.xlu1 %4839  ;;  %v4968_v42 = vadd.bf16 %v4952_v24, %v4744_v12 }
 0x330   : > { %v4848_v38 = vrot.slane %v4840_v43, %v6045_v5 }
 0x332   : > { %v4944_v17 = vmul.bf16 %v4848_v38, %v4752_v11 }
 0x333   : > { %v4917_v4 = vpop.permute.xlu1 %4916 }
 0x334   : > { %v4960_v29 = vadd.bf16 %v4944_v17, %v4736_v23  ;;  %v4925_v44 = vrot.slane %v4917_v4, %v6045_v5  ;;  %v7558_v5 = vld [vmem:[%s7633_s4] ss:$0 sm:$0xff] }
 0x336   : > { %v5541_v26 = vcombine.low %v4959_v60, %v4960_v29  ;;  %v4951_v7 = vmul.bf16 %v4925_v44, %v4759_v47 }
 0x338   : > { %5021 = vst.msk [vmem:[#allocation2 + $0x18] sm:$0xff] %vm5017_vm9, %v5541_v26  ;;  %v4967_v8 = vadd.bf16 %v4951_v7, %v4743_v49 }
 0x33a   : > { %v5545_v14 = vcombine.low %v4967_v8, %v4968_v42 }
 0x33c   : > { %5025 = vst.msk [vmem:[#allocation2 + $0x38] sm:$0xff] %vm5017_vm9, %v5545_v14 }
 0x33f   : > { %v5029_v41 = vld [vmem:[#allocation2 + $0x18] sm:$0xff] }
 0x340   : > { %5606 = vmatmul.mubr.msk.bf16.gmra.mrb[4].mxu0 %vm5077_vm10, %v5029_v41 }
 0x343   : > { %v5033_v45 = vld [vmem:[#allocation2 + $0x38] sm:$0xff] }
 0x344   : > { %5614 = vmatmul.mubr.msk.bf16.gmra.mrb[4].mxu1 %vm5077_vm10, %v5033_v45 }
 0x397   : > { %v5603_v21 = vpop.f32.mrb[0].mxu0 }
 0x398   : > { %v5149_v35 = vadd.f32 %v5603_v21, %v7558_v5  ;;  %v5140_v28 = vpop.f32.mrb[1].mxu0 }
 0x399   : > { %v5141_v27 = vadd.f32 %v7558_v5, %v5140_v28  ;;  %v5604_v34 = vpop.f32.mrb[2].mxu0 }
 0x39a   : > { %v5562_v16 = vmul.f32 -1.442695, %v5149_v35  ;;  %v5152_v33 = vadd.f32 %v5604_v34, %v7558_v5  ;;  %v5143_v40 = vpop.f32.mrb[3].mxu0 }
 0x39b   : > { %v5560_v2 = vmul.f32 -1.442695, %v5141_v27  ;;  %v5144_v46 = vadd.f32 %v7558_v5, %v5143_v40  ;;  %v5611_v48 = vpop.f32.mrb[0].mxu1 }
 0x39c   : > { %5745 = vpow2.f32 %v5562_v16  ;;  %v5563_v1 = vmul.f32 -1.442695, %v5152_v33  ;;  %v5181_v61 = vadd.f32 %v5611_v48, %v7558_v5  ;;  %v5172_v9 = vpop.f32.mrb[1].mxu1 }
 0x39d   : > { %5747 = vpow2.f32 %v5560_v2  ;;  %v5561_v30 = vmul.f32 -1.442695, %v5144_v46  ;;  %v5173_v62 = vadd.f32 %v7558_v5, %v5172_v9  ;;  %v5612_v32 = vpop.f32.mrb[2].mxu1 }
 0x39e   : > { %5749 = vpow2.f32 %v5563_v1  ;;  %v5570_v10 = vmul.f32 -1.442695, %v5181_v61  ;;  %v5184_v19 = vadd.f32 %v5612_v32, %v7558_v5  ;;  %v5175_v18 = vpop.f32.mrb[3].mxu1 }
 0x39f   : > { %5751 = vpow2.f32 %v5561_v30  ;;  %v5568_v37 = vmul.f32 -1.442695, %v5173_v62  ;;  %v5176_v53 = vadd.f32 %v7558_v5, %v5175_v18 }
 0x3a0   : > { %5753 = vpow2.f32 %v5570_v10  ;;  %v5571_v22 = vmul.f32 -1.442695, %v5184_v19 }
 0x3a1   : > { %5755 = vpow2.f32 %v5568_v37  ;;  %v5569_v55 = vmul.f32 -1.442695, %v5176_v53 }
 0x3a2   : > { %5757 = vpow2.f32 %v5571_v22 }
 0x3a3   : > { %5759 = vpow2.f32 %v5569_v55 }
 0x3a6   : > { %v5746_v31 = vpop.eup %5745 }
 0x3a7   : > { %v5748_v51 = vpop.eup %5747  ;;  %v5253_v25 = vadd.f32 1.0, %v5746_v31 }
 0x3a8   : > { %v5750_v57 = vpop.eup %5749  ;;  %v5251_v39 = vadd.f32 1.0, %v5748_v51 }
 0x3a9   : > { %v5752_v52 = vpop.eup %5751  ;;  %5761 = vrcp.f32 %v5253_v25  ;;  %v5254_v0 = vadd.f32 1.0, %v5750_v57 }
 0x3aa   : > { %v5754_v20 = vpop.eup %5753  ;;  %5763 = vrcp.f32 %v5251_v39  ;;  %v5252_v63 = vadd.f32 1.0, %v5752_v52 }
 0x3ab   : > { %v5756_v50 = vpop.eup %5755  ;;  %5765 = vrcp.f32 %v5254_v0  ;;  %v5261_v6 = vadd.f32 1.0, %v5754_v20 }
 0x3ac   : > { %v5758_v43 = vpop.eup %5757  ;;  %5767 = vrcp.f32 %v5252_v63  ;;  %v5259_v11 = vadd.f32 1.0, %v5756_v50 }
 0x3ad   : > { %v5760_v3 = vpop.eup %5759  ;;  %5769 = vrcp.f32 %v5261_v6  ;;  %v5262_v58 = vadd.f32 1.0, %v5758_v43 }
 0x3ae   : > { %5771 = vrcp.f32 %v5259_v11  ;;  %v5260_v38 = vadd.f32 1.0, %v5760_v3 }
 0x3af   : > { %5773 = vrcp.f32 %v5262_v58 }
 0x3b0   : > { %5775 = vrcp.f32 %v5260_v38 }
 0x3b3   : > { %v5762_v23 = vpop.eup %5761 }
 0x3b4   : > { %v5764_v15 = vpop.eup %5763  ;;  %v5301_v59 = vmul.f32 %v5762_v23, %v5149_v35 }
 0x3b5   : > { %v5766_v56 = vpop.eup %5765  ;;  %v5299_v36 = vmul.f32 %v5764_v15, %v5141_v27 }
 0x3b6   : > { %v5768_v17 = vpop.eup %5767  ;;  %5317 = vst.msk [vmem:[%s7572_s9 + $0x10] sm:$0xff] %vm849_vm0, %v5301_v59  ;;  %v5302_v54 = vmul.f32 %v5766_v56, %v5152_v33 }
 0x3b7   : > { %v5770_v13 = vpop.eup %5769  ;;  %5315 = vst.msk [vmem:[%s7572_s9] sm:$0xff] %vm849_vm0, %v5299_v36  ;;  %v5300_v4 = vmul.f32 %v5768_v17, %v5144_v46 }
 0x3b8   : > { %v5772_v47 = vpop.eup %5771  ;;  %5318 = vst.msk [vmem:[%s7572_s9 + $0x18] sm:$0xff] %vm849_vm0, %v5302_v54  ;;  %v5309_v60 = vmul.f32 %v5770_v13, %v5181_v61 }
 0x3b9   : > { %v5774_v12 = vpop.eup %5773  ;;  %5316 = vst.msk [vmem:[%s7572_s9 + $0x8] sm:$0xff] %vm849_vm0, %v5300_v4  ;;  %v5307_v29 = vmul.f32 %v5772_v47, %v5173_v62 }
 0x3ba   : > { %v5776_v44 = vpop.eup %5775  ;;  %5325 = vst.msk [vmem:[%s7572_s9 + $0x50] sm:$0xff] %vm849_vm0, %v5309_v60  ;;  %v5310_v24 = vmul.f32 %v5774_v12, %v5184_v19 }
 0x3bb   : > { %5323 = vst.msk [vmem:[%s7572_s9 + $0x40] sm:$0xff] %vm849_vm0, %v5307_v29  ;;  %v5308_v49 = vmul.f32 %v5776_v44, %v5176_v53 }
 0x3bc   : > { %5326 = vst.msk [vmem:[%s7572_s9 + $0x58] sm:$0xff] %vm849_vm0, %v5310_v24 }
 0x3bd   : > { %5324 = vst.msk [vmem:[%s7572_s9 + $0x48] sm:$0xff] %vm849_vm0, %v5308_v49 }
 0x413   : > { %v5607_v26 = vpop.f32.mrb[4].mxu0 }
 0x414   : > { %v5165_v7 = vadd.f32 %v5607_v26, %v7558_v5  ;;  %v5156_v42 = vpop.f32.mrb[5].mxu0 }
 0x415   : > { %v5157_v8 = vadd.f32 %v7558_v5, %v5156_v42  ;;  %v5608_v14 = vpop.f32.mrb[6].mxu0 }
 0x416   : > { %v5566_v41 = vmul.f32 -1.442695, %v5165_v7  ;;  %v5168_v45 = vadd.f32 %v5608_v14, %v7558_v5  ;;  %v5159_v21 = vpop.f32.mrb[7].mxu0 }
 0x417   : > { %v5564_v35 = vmul.f32 -1.442695, %v5157_v8  ;;  %v5160_v28 = vadd.f32 %v7558_v5, %v5159_v21  ;;  %v5615_v27 = vpop.f32.mrb[4].mxu1 }
 0x418   : > { %5777 = vpow2.f32 %v5566_v41  ;;  %v5567_v34 = vmul.f32 -1.442695, %v5168_v45  ;;  %v5197_v16 = vadd.f32 %v5615_v27, %v7558_v5  ;;  %v5188_v33 = vpop.f32.mrb[5].mxu1 }
 0x419   : > { %5779 = vpow2.f32 %v5564_v35  ;;  %v5565_v40 = vmul.f32 -1.442695, %v5160_v28  ;;  %v5189_v2 = vadd.f32 %v7558_v5, %v5188_v33  ;;  %v5616_v46 = vpop.f32.mrb[6].mxu1 }
 0x41a   : > { %5781 = vpow2.f32 %v5567_v34  ;;  %v5574_v48 = vmul.f32 -1.442695, %v5197_v16  ;;  %v5200_v1 = vadd.f32 %v5616_v46, %v7558_v5  ;;  %v5191_v61 = vpop.f32.mrb[7].mxu1 }
 0x41b   : > { %5783 = vpow2.f32 %v5565_v40  ;;  %v5572_v9 = vmul.f32 -1.442695, %v5189_v2  ;;  %v5192_v30 = vadd.f32 %v7558_v5, %v5191_v61 }
 0x41c   : > { %5785 = vpow2.f32 %v5574_v48  ;;  %v5575_v62 = vmul.f32 -1.442695, %v5200_v1 }
 0x41d   : > { %5787 = vpow2.f32 %v5572_v9  ;;  %v5573_v32 = vmul.f32 -1.442695, %v5192_v30 }
 0x41e   : > { %5789 = vpow2.f32 %v5575_v62 }
 0x41f   : > { %5791 = vpow2.f32 %v5573_v32 }
 0x422   : > { %v5778_v10 = vpop.eup %5777 }
 0x423   : > { %v5780_v19 = vpop.eup %5779  ;;  %v5257_v18 = vadd.f32 1.0, %v5778_v10 }
 0x424   : > { %v5782_v37 = vpop.eup %5781  ;;  %v5255_v53 = vadd.f32 1.0, %v5780_v19 }
 0x425   : > { %v5784_v22 = vpop.eup %5783  ;;  %5793 = vrcp.f32 %v5257_v18  ;;  %v5258_v55 = vadd.f32 1.0, %v5782_v37 }
 0x426   : > { %v5786_v31 = vpop.eup %5785  ;;  %5795 = vrcp.f32 %v5255_v53  ;;  %v5256_v51 = vadd.f32 1.0, %v5784_v22 }
 0x427   : > { %v5788_v25 = vpop.eup %5787  ;;  %5797 = vrcp.f32 %v5258_v55  ;;  %v5265_v5 = vadd.f32 1.0, %v5786_v31 }
 0x428   : > { %v5790_v57 = vpop.eup %5789  ;;  %5799 = vrcp.f32 %v5256_v51  ;;  %v5263_v39 = vadd.f32 1.0, %v5788_v25 }
 0x429   : > { %v5792_v52 = vpop.eup %5791  ;;  %5801 = vrcp.f32 %v5265_v5  ;;  %v5266_v0 = vadd.f32 1.0, %v5790_v57 }
 0x42a   : > { %5803 = vrcp.f32 %v5263_v39  ;;  %v5264_v20 = vadd.f32 1.0, %v5792_v52 }
 0x42b   : > { %5805 = vrcp.f32 %v5266_v0 }
 0x42c   : > { %5807 = vrcp.f32 %v5264_v20 }
 0x42f   : > { %v5794_v63 = vpop.eup %5793 }
 0x430   : > { %v5796_v50 = vpop.eup %5795  ;;  %v5305_v6 = vmul.f32 %v5794_v63, %v5165_v7 }
 0x431   : > { %v5798_v43 = vpop.eup %5797  ;;  %v5303_v11 = vmul.f32 %v5796_v50, %v5157_v8 }
 0x432   : > { %v5800_v3 = vpop.eup %5799  ;;  %5321 = vst.msk [vmem:[%s7572_s9 + $0x30] sm:$0xff] %vm849_vm0, %v5305_v6  ;;  %v5306_v58 = vmul.f32 %v5798_v43, %v5168_v45 }
 0x433   : > { %v5802_v38 = vpop.eup %5801  ;;  %5319 = vst.msk [vmem:[%s7572_s9 + $0x20] sm:$0xff] %vm849_vm0, %v5303_v11  ;;  %v5304_v23 = vmul.f32 %v5800_v3, %v5160_v28 }
 0x434   : > { %v5804_v15 = vpop.eup %5803  ;;  %5322 = vst.msk [vmem:[%s7572_s9 + $0x38] sm:$0xff] %vm849_vm0, %v5306_v58  ;;  %v5313_v59 = vmul.f32 %v5802_v38, %v5197_v16 }
 0x435   : > { %v5806_v56 = vpop.eup %5805  ;;  %5320 = vst.msk [vmem:[%s7572_s9 + $0x28] sm:$0xff] %vm849_vm0, %v5304_v23  ;;  %v5311_v36 = vmul.f32 %v5804_v15, %v5189_v2 }
 0x436   : > { %v5808_v17 = vpop.eup %5807  ;;  %5329 = vst.msk [vmem:[%s7572_s9 + $0x70] sm:$0xff] %vm849_vm0, %v5313_v59  ;;  %v5314_v54 = vmul.f32 %v5806_v56, %v5200_v1 }
 0x437   : > { %5327 = vst.msk [vmem:[%s7572_s9 + $0x60] sm:$0xff] %vm849_vm0, %v5311_v36  ;;  %v5312_v13 = vmul.f32 %v5808_v17, %v5192_v30 }
 0x438   : > { %5330 = vst.msk [vmem:[%s7572_s9 + $0x78] sm:$0xff] %vm849_vm0, %v5314_v54 }
 0x439   : > { %5328 = vst.msk [vmem:[%s7572_s9 + $0x68] sm:$0xff] %vm849_vm0, %v5312_v13 }
 0x43a PF: > { %s15_s22 = sadd.s32 1, %s5853_s22   ;;  %s7644_s18 = smov %s5845_s20 }
 0x43b   : > { %p12_p7 = scmp.ge.s32.totalorder %s15_s22, 6   ;;  %s7645_s19 = smov %s5849_s21 }
 0x43c   : > { %s7646_s20 = smov %s7649_s23  ;;  %s7647_s21 = smov %s7653_s24 }
 0x43d   :  { %14 = sbr.rel (!%p12_p7) target bundleno = 3 (0x3), region = 76 }

</bundles_post_ra>
